<compile_context>
chip_gen: v7x
topology: tpu7x:2x2x1
jax: 0.10.0
libtpu: 0.0.40
codegen_flags: <defaults>
</compile_context>

<pallas_src>
import functools

import numpy as np

import jax
import jax.numpy as jnp
from jax import lax
from jax.experimental import pallas as pl
from jax.experimental.pallas import tpu as pltpu

NUM_KP = 21  # hardcoded in the PyTorch module (range(21))


# --------------------------------------------------------------------------
# Fused kernel
# --------------------------------------------------------------------------
def _window_means_kernel(pre1_ref, pre2_ref, f1_ref, f2_ref, o_ref,
                         *, w, hw, bblk, c, fdtype):
    i0 = pl.program_id(0) * bblk

    # Flattened spatial position -> (H index, W index).  W is a power of two
    # in the intended 64x64 configuration, so use shift/and (cheap VPU ops).
    pos = lax.broadcasted_iota(jnp.int32, (1, hw), 1)
    if (w & (w - 1)) == 0:
        shift = w.bit_length() - 1
        row = pos >> shift          # H index of flattened position
        col = pos & (w - 1)         # W index of flattened position
    else:
        row = pos // w
        col = pos % w

    def body(b, carry):
        idx = i0 + b
        # Both keypoint sets for this item, stacked: (42, 2) f32.
        pre = jnp.concatenate([pre1_ref[idx], pre2_ref[idx]],
                              axis=0).astype(jnp.float32)
        x = pre[:, 0:1]                               # (42, 1): H coordinate
        y = pre[:, 1:2]                               # (42, 1): W coordinate

        # torch: clamp (min=0 / max=63 hardcoded) then .int() (trunc toward 0).
        left = jnp.maximum(x - 6.0, 0.0).astype(jnp.int32)
        right = jnp.minimum(x + 6.0, 63.0).astype(jnp.int32)
        down = jnp.maximum(y - 6.0, 0.0).astype(jnp.int32)
        upper = jnp.minimum(y + 6.0, 63.0).astype(jnp.int32)

        # reproduces feature[:, left:right, down:upper] (exclusive upper bounds);
        # comparisons stay in int32, cast to the feature dtype only for the dot.
        mask = ((row >= left) & (row < right) &
                (col >= down) & (col < upper)).astype(fdtype)        # (42, HW)

        # torch divisor: s1*s2 = (upper-down+1)*(right-left+1)
        # (intentionally NOT the actual slice size -- faithful to the module).
        inv = pl.reciprocal(
            ((upper - down + 1) * (right - left + 1)).astype(jnp.float32),
            approx=True)                                             # (42, 1)

        # Single fused MXU matmul for both maps (feature concat stays in VMEM).
        feat = jnp.concatenate([f1_ref[b], f2_ref[b]], axis=0)       # (2C, HW)
        res = lax.dot_general(mask, feat, (((1,), (1,)), ((), ())),
                              preferred_element_type=jnp.float32)    # (42, 2C)

        means = jnp.concatenate(
            [res[:NUM_KP, :c] * inv[:NUM_KP],        # map-1 per-channel means
             res[NUM_KP:, c:] * inv[NUM_KP:]],       # map-2 per-channel means
            axis=0)                                                  # (42, C)
        o_ref[b] = means
        return carry

    lax.fori_loop(0, bblk, body, 0, unroll=True)


def _pick_bblk(B, C, HW, itemsize, budget_bytes=12 << 20):
    """Largest batch block <= 8 that (a) divides B, (b) keeps the double-
    buffered feature blocks under ~12 MiB, (c) leaves >= 2 grid steps."""
    best = 1
    for d in range(1, min(B, 8) + 1):
        if B % d:
            continue
        if 4 * d * C * HW * itemsize > budget_bytes:   # 2 maps x 2 buffers
            continue
        if B >= 2 and B // d < 2:                      # keep megacore fed
            continue
        best = d
    return best


def _window_means_call(f1f, f2f, pre1, pre2, w):
    B, C, HW = f1f.shape
    itemsize = jnp.dtype(f1f.dtype).itemsize
    bblk = _pick_bblk(B, C, HW, itemsize)

    kern = functools.partial(_window_means_kernel, w=w, hw=HW, bblk=bblk, c=C,
                             fdtype=jnp.dtype(f1f.dtype))
    grid_spec = pltpu.PrefetchScalarGridSpec(
        num_scalar_prefetch=0,
        grid=(B // bblk,),
        in_specs=[
            # keypoints are grid-resident (copied to VMEM once)
            pl.BlockSpec((B, NUM_KP, 2), lambda i: (0, 0, 0)),
            pl.BlockSpec((B, NUM_KP, 2), lambda i: (0, 0, 0)),
            # batch-blocked feature maps
            pl.BlockSpec((bblk, C, HW), lambda i: (i, 0, 0)),
            pl.BlockSpec((bblk, C, HW), lambda i: (i, 0, 0)),
        ],
        out_specs=pl.BlockSpec((bblk, 2 * NUM_KP, C), lambda i: (i, 0, 0)),
    )
    out = pl.pallas_call(
        kern,
        out_shape=jax.ShapeDtypeStruct((B, 2 * NUM_KP, C), jnp.float32),
        grid_spec=grid_spec,
        compiler_params=pltpu.CompilerParams(
            dimension_semantics=("parallel",),
            vmem_limit_bytes=32 * 1024 * 1024),
    )(pre1, pre2, f1f, f2f)
    return out[:, :NUM_KP, :], out[:, NUM_KP:, :]      # (B, 21, C) each


# --------------------------------------------------------------------------
# Tiny (42 x 42) MMD-RBF loss in plain JAX glue -- negligible next to the
# feature-map pass, so a dedicated kernel would only add launch overhead.
# --------------------------------------------------------------------------
def _guassian_kernel(source, target, kernel_mul=2.0, kernel_num=5, fix_sigma=None):
    n_samples = source.shape[0] + target.shape[0]
    total = jnp.concatenate([source, target], axis=0)
    l2 = jnp.sum((total[None, :, :] - total[:, None, :]) ** 2, axis=2)
    if fix_sigma:
        bandwidth = fix_sigma
    else:
        # torch uses L2_distance.data for the bandwidth -> detach it here too.
        bandwidth = lax.stop_gradient(jnp.sum(l2)) / (n_samples ** 2 - n_samples)
    bandwidth = bandwidth / (kernel_mul ** (kernel_num // 2))
    return sum(jnp.exp(-l2 / (bandwidth * (kernel_mul ** i)))
               for i in range(kernel_num))


def _mmd_rbf(source, target, kernel_mul=2.0, kernel_num=5, fix_sigma=None):
    bs = source.shape[0]
    kernels = _guassian_kernel(source, target, kernel_mul, kernel_num, fix_sigma)
    xx = kernels[:bs, :bs]
    yy = kernels[bs:, bs:]
    xy = kernels[:bs, bs:]
    yx = kernels[bs:, :bs]
    return jnp.mean(xx + yy - xy - yx)


# --------------------------------------------------------------------------
# Full forward pass
# --------------------------------------------------------------------------
@jax.jit
def lossx2_forward(f1, f2, pre1, pre2, val1, val2):
    B, C, H, W = f1.shape
    # reshape only -- keep the native dtype (bf16 inputs take the bf16 MXU path)
    f1f = jnp.reshape(f1, (B, C, H * W))
    f2f = jnp.reshape(f2, (B, C, H * W))

    means1, means2 = _window_means_call(f1f, f2f, pre1, pre2, W)  # (B, 21, C)

    m = 0.999
    fea_c1 = m * (jnp.sum(means1, axis=0) / B) + (1.0 - m) * val1   # (21, C)
    fea_c2 = m * (jnp.sum(means2, axis=0) / B) + (1.0 - m) * val2
    loss = _mmd_rbf(fea_c1, fea_c2)
    return loss, fea_c1, fea_c2


class Lossx2:
    """Stateful wrapper mirroring the PyTorch module (val1/val2 EMA buffers)."""

    def __init__(self, reduction='mean', epsilon=0.0):
        self.reduction = reduction
        self.epsilon = epsilon
        self.reset()

    def reset(self):
        self.val1 = 0.0
        self.val2 = 0.0

    def updata(self, val1, val2):
        self.val1 = val1
        self.val2 = val2

    def __call__(self, f1, f2, pre1, pre2):
        v1 = jnp.asarray(self.val1, jnp.float32)
        v2 = jnp.asarray(self.val2, jnp.float32)
        loss, fea_c1, fea_c2 = lossx2_forward(f1, f2, pre1, pre2, v1, v2)
        # .detach() equivalents -- forward values only, no grad tracking here.
        self.val1 = fea_c1
        self.val2 = fea_c2
        return loss


# --------------------------------------------------------------------------
# Reference (numpy) implementation of the per-batch window means, used as a
# correctness check for the Pallas kernel output.
# --------------------------------------------------------------------------
def _np_window_means(f, pre):
    f = np.asarray(f, np.float64)
    pre = np.asarray(pre, np.float32)
    B, C, H, W = f.shape
    out = np.zeros((B, NUM_KP, C), np.float64)
    six = np.float32(6.0)
    z = np.float32(0.0)
    mx = np.float32(63.0)
    for i in range(B):
        for j in range(NUM_KP):
            x = pre[i, j, 0]
            y = pre[i, j, 1]
            left = int(np.maximum(x - six, z))
            right = int(np.minimum(x + six, mx))
            down = int(np.maximum(y - six, z))
            upper = int(np.minimum(y + six, mx))
            s1 = upper - down + 1
            s2 = right - left + 1
            win = f[i, :, left:right, down:upper]
            out[i, j] = win.sum(axis=(1, 2)) / float(s1 * s2)
    return out


if __name__ == "__main__":
    key = jax.random.PRNGKey(0)
    k1, k2, k3, k4 = jax.random.split(key, 4)

    # Module semantics require 64x64 spatial maps (clamp to 63 is hardcoded).
    B, C, H, W = 2, 8, 64, 64
    # ReLU-like features; bf16 is the intended fast path (bf16 MXU, half HBM).
    f1 = jax.random.uniform(k1, (B, C, H, W), jnp.float32).astype(jnp.bfloat16)
    f2 = jax.random.uniform(k2, (B, C, H, W), jnp.float32).astype(jnp.bfloat16)
    pre1 = jax.random.uniform(k3, (B, NUM_KP, 2), jnp.float32, minval=0.0, maxval=63.0)
    pre2 = jax.random.uniform(k4, (B, NUM_KP, 2), jnp.float32, minval=0.0, maxval=63.0)

    # Correctness check of the kernel output against a numpy reference
    # (reference computed on the same bf16-rounded values).
    f1_np = np.asarray(f1.astype(jnp.float32))
    f2_np = np.asarray(f2.astype(jnp.float32))
    m1, m2 = _window_means_call(jnp.reshape(f1, (B, C, H * W)),
                                jnp.reshape(f2, (B, C, H * W)),
                                pre1, pre2, W)
    jax.block_until_ready((m1, m2))
    np.testing.assert_allclose(np.asarray(m1), _np_window_means(f1_np, pre1),
                               rtol=2e-2, atol=1e-3)
    np.testing.assert_allclose(np.asarray(m2), _np_window_means(f2_np, pre2),
                               rtol=2e-2, atol=1e-3)

    # Full forward pass (EMA state + MMD-RBF loss).
    crit = Lossx2()
    loss = crit(f1, f2, pre1, pre2)
    jax.block_until_ready(loss)
    print("KERNEL_OK")
</pallas_src>

<mosaic_0001>
module attributes {stable_mosaic.version = 11 : i64} {
  func.func @_window_means_kernel(%arg0: i32, %arg1: memref<2x21x2xf32, #tpu.memory_space<vmem>>, %arg2: memref<2x21x2xf32, #tpu.memory_space<vmem>>, %arg3: memref<1x8x4096xbf16, #tpu.memory_space<vmem>>, %arg4: memref<1x8x4096xbf16, #tpu.memory_space<vmem>>, %arg5: memref<1x42x8xf32, #tpu.memory_space<vmem>>) attributes {dimension_semantics = [#tpu.dimension_semantics<parallel>], iteration_bounds = array<i64: 2>, scalar_prefetch = 0 : i64, scratch_operands = 0 : i64, tpu.core_type = #tpu.core_type<tc>, window_params = [{pipeline_mode = #tpu.pipeline_mode<synchronous>, transform_indices = @transform_0, window_bounds = array<i64: 2, 21, 2>}, {pipeline_mode = #tpu.pipeline_mode<synchronous>, transform_indices = @transform_1, window_bounds = array<i64: 2, 21, 2>}, {transform_indices = @transform_2, window_bounds = array<i64: 1, 8, 4096>}, {transform_indices = @transform_3, window_bounds = array<i64: 1, 8, 4096>}, {transform_indices = @transform_4, window_bounds = array<i64: 1, 42, 8>}]} {
    %c1_i32 = arith.constant 1 : i32
    %0 = arith.muli %arg0, %c1_i32 : i32
    %1 = tpu.iota {dimensions = array<i32: 1>} : vector<1x4096xi32>
    %c6_i32 = arith.constant 6 : i32
    %2 = vector.broadcast %c6_i32 : i32 to vector<1x4096xi32>
    %3 = arith.shrsi %1, %2 : vector<1x4096xi32>
    %c63_i32 = arith.constant 63 : i32
    %4 = vector.broadcast %c63_i32 : i32 to vector<1x4096xi32>
    %5 = arith.andi %1, %4 : vector<1x4096xi32>
    %c0_i32 = arith.constant 0 : i32
    %6 = arith.addi %0, %c0_i32 : i32
    %7 = arith.index_cast %6 : i32 to index
    %c0 = arith.constant 0 : index
    %c0_0 = arith.constant 0 : index
    %8 = vector.load %arg1[%7, %c0, %c0_0] : memref<2x21x2xf32, #tpu.memory_space<vmem>>, vector<1x21x2xf32>
    %9 = vector.shape_cast %8 : vector<1x21x2xf32> to vector<21x2xf32>
    %10 = arith.index_cast %6 : i32 to index
    %c0_1 = arith.constant 0 : index
    %c0_2 = arith.constant 0 : index
    %11 = vector.load %arg2[%10, %c0_1, %c0_2] : memref<2x21x2xf32, #tpu.memory_space<vmem>>, vector<1x21x2xf32>
    %12 = vector.shape_cast %11 : vector<1x21x2xf32> to vector<21x2xf32>
    %13 = tpu.concatenate %9, %12 in 0 : vector<21x2xf32>, vector<21x2xf32> -> vector<42x2xf32>
    %14 = vector.extract_strided_slice %13 {offsets = [0, 0], sizes = [42, 1], strides = [1, 1]} : vector<42x2xf32> to vector<42x1xf32>
    %15 = vector.extract_strided_slice %13 {offsets = [0, 1], sizes = [42, 1], strides = [1, 1]} : vector<42x2xf32> to vector<42x1xf32>
    %cst = arith.constant 6.000000e+00 : f32
    %16 = vector.broadcast %cst : f32 to vector<42x1xf32>
    %17 = arith.subf %14, %16 : vector<42x1xf32>
    %cst_3 = arith.constant 0.000000e+00 : f32
    %18 = vector.broadcast %cst_3 : f32 to vector<42x1xf32>
    %19 = arith.maximumf %17, %18 : vector<42x1xf32>
    %20 = arith.fptosi %19 : vector<42x1xf32> to vector<42x1xi32>
    %cst_4 = arith.constant 6.000000e+00 : f32
    %21 = vector.broadcast %cst_4 : f32 to vector<42x1xf32>
    %22 = arith.addf %14, %21 : vector<42x1xf32>
    %cst_5 = arith.constant 6.300000e+01 : f32
    %23 = vector.broadcast %cst_5 : f32 to vector<42x1xf32>
    %24 = arith.minimumf %22, %23 : vector<42x1xf32>
    %25 = arith.fptosi %24 : vector<42x1xf32> to vector<42x1xi32>
    %cst_6 = arith.constant 6.000000e+00 : f32
    %26 = vector.broadcast %cst_6 : f32 to vector<42x1xf32>
    %27 = arith.subf %15, %26 : vector<42x1xf32>
    %cst_7 = arith.constant 0.000000e+00 : f32
    %28 = vector.broadcast %cst_7 : f32 to vector<42x1xf32>
    %29 = arith.maximumf %27, %28 : vector<42x1xf32>
    %30 = arith.fptosi %29 : vector<42x1xf32> to vector<42x1xi32>
    %cst_8 = arith.constant 6.000000e+00 : f32
    %31 = vector.broadcast %cst_8 : f32 to vector<42x1xf32>
    %32 = arith.addf %15, %31 : vector<42x1xf32>
    %cst_9 = arith.constant 6.300000e+01 : f32
    %33 = vector.broadcast %cst_9 : f32 to vector<42x1xf32>
    %34 = arith.minimumf %32, %33 : vector<42x1xf32>
    %35 = arith.fptosi %34 : vector<42x1xf32> to vector<42x1xi32>
    %36 = vector.broadcast %3 : vector<1x4096xi32> to vector<42x4096xi32>
    %37 = vector.broadcast %20 : vector<42x1xi32> to vector<42x4096xi32>
    %38 = arith.cmpi sge, %36, %37 : vector<42x4096xi32>
    %39 = vector.broadcast %3 : vector<1x4096xi32> to vector<42x4096xi32>
    %40 = vector.broadcast %25 : vector<42x1xi32> to vector<42x4096xi32>
    %41 = arith.cmpi slt, %39, %40 : vector<42x4096xi32>
    %42 = arith.andi %38, %41 : vector<42x4096xi1>
    %43 = vector.broadcast %5 : vector<1x4096xi32> to vector<42x4096xi32>
    %44 = vector.broadcast %30 : vector<42x1xi32> to vector<42x4096xi32>
    %45 = arith.cmpi sge, %43, %44 : vector<42x4096xi32>
    %46 = arith.andi %42, %45 : vector<42x4096xi1>
    %47 = vector.broadcast %5 : vector<1x4096xi32> to vector<42x4096xi32>
    %48 = vector.broadcast %35 : vector<42x1xi32> to vector<42x4096xi32>
    %49 = arith.cmpi slt, %47, %48 : vector<42x4096xi32>
    %50 = arith.andi %46, %49 : vector<42x4096xi1>
    %51 = arith.extui %50 : vector<42x4096xi1> to vector<42x4096xi32>
    %52 = arith.sitofp %51 : vector<42x4096xi32> to vector<42x4096xf32>
    %53 = arith.truncf %52 : vector<42x4096xf32> to vector<42x4096xbf16>
    %54 = arith.subi %35, %30 : vector<42x1xi32>
    %c1_i32_10 = arith.constant 1 : i32
    %55 = vector.broadcast %c1_i32_10 : i32 to vector<42x1xi32>
    %56 = arith.addi %54, %55 : vector<42x1xi32>
    %57 = arith.subi %25, %20 : vector<42x1xi32>
    %c1_i32_11 = arith.constant 1 : i32
    %58 = vector.broadcast %c1_i32_11 : i32 to vector<42x1xi32>
    %59 = arith.addi %57, %58 : vector<42x1xi32>
    %60 = arith.muli %56, %59 : vector<42x1xi32>
    %61 = arith.sitofp %60 : vector<42x1xi32> to vector<42x1xf32>
    %62 = tpu.reciprocal %61 {approx = true} : vector<42x1xf32> -> vector<42x1xf32>
    %63 = arith.index_cast %c0_i32 : i32 to index
    %c0_12 = arith.constant 0 : index
    %c0_13 = arith.constant 0 : index
    %64 = vector.load %arg3[%63, %c0_12, %c0_13] : memref<1x8x4096xbf16, #tpu.memory_space<vmem>>, vector<1x8x4096xbf16>
    %65 = vector.shape_cast %64 : vector<1x8x4096xbf16> to vector<8x4096xbf16>
    %66 = arith.index_cast %c0_i32 : i32 to index
    %c0_14 = arith.constant 0 : index
    %c0_15 = arith.constant 0 : index
    %67 = vector.load %arg4[%66, %c0_14, %c0_15] : memref<1x8x4096xbf16, #tpu.memory_space<vmem>>, vector<1x8x4096xbf16>
    %68 = vector.shape_cast %67 : vector<1x8x4096xbf16> to vector<8x4096xbf16>
    %69 = tpu.concatenate %65, %68 in 0 : vector<8x4096xbf16>, vector<8x4096xbf16> -> vector<16x4096xbf16>
    %cst_16 = arith.constant dense<0.000000e+00> : vector<42x16xf32>
    %70 = tpu.matmul %53, %69, %cst_16 {dimension_numbers = #tpu.dot_dimension_numbers<[1], [1], [0], [0], [0, 0, 1, 0], [], []>} : vector<42x4096xbf16>, vector<16x4096xbf16>, vector<42x16xf32> -> vector<42x16xf32>
    %71 = vector.extract_strided_slice %70 {offsets = [0, 0], sizes = [21, 8], strides = [1, 1]} : vector<42x16xf32> to vector<21x8xf32>
    %72 = vector.extract_strided_slice %62 {offsets = [0, 0], sizes = [21, 1], strides = [1, 1]} : vector<42x1xf32> to vector<21x1xf32>
    %73 = vector.broadcast %72 : vector<21x1xf32> to vector<21x8xf32>
    %74 = arith.mulf %71, %73 : vector<21x8xf32>
    %75 = vector.extract_strided_slice %70 {offsets = [21, 8], sizes = [21, 8], strides = [1, 1]} : vector<42x16xf32> to vector<21x8xf32>
    %76 = vector.extract_strided_slice %62 {offsets = [21, 0], sizes = [21, 1], strides = [1, 1]} : vector<42x1xf32> to vector<21x1xf32>
    %77 = vector.broadcast %76 : vector<21x1xf32> to vector<21x8xf32>
    %78 = arith.mulf %75, %77 : vector<21x8xf32>
    %79 = tpu.concatenate %74, %78 in 0 : vector<21x8xf32>, vector<21x8xf32> -> vector<42x8xf32>
    %80 = arith.index_cast %c0_i32 : i32 to index
    %c0_17 = arith.constant 0 : index
    %c0_18 = arith.constant 0 : index
    %81 = vector.load %arg5[%80, %c0_17, %c0_18] : memref<1x42x8xf32, #tpu.memory_space<vmem>>, vector<1x42x8xf32>
    %82 = vector.shape_cast %81 : vector<1x42x8xf32> to vector<42x8xf32>
    %83 = vector.shape_cast %79 : vector<42x8xf32> to vector<1x42x8xf32>
    tpu.vector_store %arg5[%80, %c0_17, %c0_18], %83 {strides = array<i32>} : memref<1x42x8xf32, #tpu.memory_space<vmem>>, vector<1x42x8xf32>,
    %c1_i32_19 = arith.constant 1 : i32
    return
  }
  func.func @transform_0(%arg0: i32) -> (i32, i32, i32) {
    %c0_i32 = arith.constant 0 : i32
    %c0_i32_0 = arith.constant 0 : i32
    %c0_i32_1 = arith.constant 0 : i32
    %c0_i32_2 = arith.constant 0 : i32
    return %c0_i32, %c0_i32_0, %c0_i32_1 : i32, i32, i32
  }
  func.func @transform_1(%arg0: i32) -> (i32, i32, i32) {
    %c0_i32 = arith.constant 0 : i32
    %c0_i32_0 = arith.constant 0 : i32
    %c0_i32_1 = arith.constant 0 : i32
    %c0_i32_2 = arith.constant 0 : i32
    return %c0_i32, %c0_i32_0, %c0_i32_1 : i32, i32, i32
  }
  func.func @transform_2(%arg0: i32) -> (i32, i32, i32) {
    %c0_i32 = arith.constant 0 : i32
    %c0_i32_0 = arith.constant 0 : i32
    %c0_i32_1 = arith.constant 0 : i32
    return %arg0, %c0_i32, %c0_i32_0 : i32, i32, i32
  }
  func.func @transform_3(%arg0: i32) -> (i32, i32, i32) {
    %c0_i32 = arith.constant 0 : i32
    %c0_i32_0 = arith.constant 0 : i32
    %c0_i32_1 = arith.constant 0 : i32
    return %arg0, %c0_i32, %c0_i32_0 : i32, i32, i32
  }
  func.func @transform_4(%arg0: i32) -> (i32, i32, i32) {
    %c0_i32 = arith.constant 0 : i32
    %c0_i32_0 = arith.constant 0 : i32
    %c0_i32_1 = arith.constant 0 : i32
    return %arg0, %c0_i32, %c0_i32_0 : i32, i32, i32
  }
}

</mosaic_0001>

<bundles_post_ra>
// kernel: tpu_custom_call.1
= control target key start
LH: loop header
LB: loop body
LE: loop exit
PB: predicated region body
PF: predicated region fallthrough
CT: control target
= control target key end

     0   :  { %9 = vsyncpa [#allocation3], 0  ;;  %s7136_s0 = inlined_call_operand.vmem [shape: f32[2,21,2], index: 0, kind: input, shape index: {}]   ;;  %s7137_s1 = inlined_call_operand.vmem [shape: f32[2,21,2], index: 1, kind: input, shape index: {}]   ;;  %s7138_s2 = inlined_call_operand.hbm [shape: bf16[2,8,4096], index: 2, kind: input, shape index: {}]   ;;  %s7139_s3 = inlined_call_operand.hbm [shape: bf16[2,8,4096], index: 3, kind: input, shape index: {}]   ;;  %s7140_s4 = inlined_call_operand.vmem [shape: f32[2,42,8], index: 4, kind: output, shape index: {}]  }
   0x1   :  { %11 = vsyncpa [#allocation3 + $0x1], 0 }
   0x2   :  { %12 = vsyncpa [#allocation5], 0 }
   0x3   :  { %14 = vsyncpa [#allocation5 + $0x1], 0  ;;  %s4672_s15 = smov 0   ;;  %s4674_s16 = smov 0  }
   0x4   :  { %s4676_s17 = smov 0   ;;  %s4678_s18 = smov 0  }
   0x5 LB: > { %s4691_s19 = sadd.s32 4294967295, %s4638_s18   ;;  %s4694_s20 = sadd.s32 1, %s4638_s18   ;;  %s4638_s18 = sphi %s4678_s18, %s7214_s18   ;;  %s4634_s17 = sphi %s4676_s17, %s7213_s17   ;;  %s4630_s16 = sphi %s4674_s16, %s7212_s16   ;;  %s4626_s15 = sphi %s4672_s15, %s7211_s15  }
   0x6   : > { %s66_s21 = ssub.s32 %s4638_s18, %s4694_s20  ;;  %s69_s22 = sadd.s32 1, %s4634_s17 }
   0x7   : > { %p67_p0 = scmp.eq.s32.totalorder %s66_s21, 0  ;;  %p76_p1 = scmp.ne.s32.totalorder %s4634_s17, %s4630_s16 }
   0x8   : > { %p77_p2 = scmp.eq.s32.totalorder %s4638_s18, 0  ;;  %p82_p3 = scmp.ne.s32.totalorder %s4630_s16, %s4626_s15 }
   0x9   : > { %s4704_s23 = scalar_select %p67_p0, %s4634_s17, %s69_s22  }
   0xa   : > { %p78_p4 = por %p77_p2, %p76_p1  ;;  %p83_p5 = scmp.eq.s32.totalorder %s4691_s19, 0 }
   0xb   : > { %p4418_p6 = scmp.lt.s32.totalorder %s4638_s18, 2  ;;  %s4713_s25 = sand.u32 1, %s4634_s17  }
   0xc   : > { %p4708_p7 = por %p83_p5, %p82_p3  ;;  %s3740_s26 = sshll.u32 %s4713_s25, 7 }
   0xd   : > { %s4206_s27 = sshll.u32 %s4638_s18, 11  ;;  %s168_s5 = scalar_lea.vmem [#allocation2], %s3740_s26 }
   0xe   : > { %s7144_s24 = scalar_select %p4708_p7, 1, 0 }
   0xf   : > { %s4722_s30 = scalar_lea.hbm %s7138_s2, %s4206_s27  ;;  %s176_s6 = sshll.u32 %s168_s5, 4  ;;  %s4726_s6 = int_to_ptr.vmem [resolvable:$true] %s176_s6 }
  0x10   : > { %p4728_p8 = pnand %p4418_p6, %p78_p4  ;;  %s165_s8 = scalar_lea.sflag [#allocation3], %s4713_s25 }
  0x11   : > { %s4540_s9 = scalar_lea.hbm %s4722_s30, 2048  ;;  %s4545_s12 = scalar_lea.hbm %s7138_s2, 4096 }
  0x12   : > { %p4541_p11 = scmp.ne.s32.totalorder %s4722_s30, %s4540_s9  ;;  %p4542_p12 = pneg %p4728_p8 }
  0x13   : > { %p4546_p1 = scmp.lt.u32.totalorder %s4722_s30, %s7138_s2  ;;  %p4547_p2 = scmp.lt.u32.totalorder %s4545_s12, %s4540_s9 }
  0x14   : > { %p4543_p13 = pnand %p4542_p12, %p4541_p11  ;;  %p4549_p4 = scmp.lt.u32.totalorder %s4540_s9, %s4722_s30 }
  0x15   : > { %p4548_p3 = por %p4547_p2, %p4546_p1 }
  0x16   : > { %p4544_p0 = pneg %p4543_p13 }
  0x17   : > { %p4550_p5 = por %p4549_p4, %p4548_p3 }
  0x19   : > { %p4551_p6 = pnand %p4550_p5, %p4544_p0 }
  0x1b   : > { %4554 = shalt.err (!%p4551_p6)
}
  0x1c   : > { %s4555_s15 = scalar_lea.vmem %s4726_s6, 2048  ;;  %s4640_s21 = smov [#allocation2]  }
  0x1d   : > { %p4556_p11 = scmp.ne.s32.totalorder %s4726_s6, %s4555_s15  ;;  %s4560_s22 = sshll.u32 %s4640_s21, 4  ;;  %s4561_s22 = int_to_ptr.vmem [resolvable:$false] %s4560_s22 }
  0x1e   : > { %s4562_s28 = scalar_lea.vmem %s4561_s22, 4096  ;;  %p4563_p10 = scmp.lt.s32.totalorder %s4726_s6, %s4561_s22 }
  0x1f   : > { %p4558_p13 = pnand %p4556_p11, %p4542_p12  ;;  %p4564_p1 = scmp.lt.s32.totalorder %s4562_s28, %s4555_s15 }
  0x21   : > { %p4559_p9 = pneg %p4558_p13  ;;  %p4565_p2 = por %p4564_p1, %p4563_p10 }
  0x23   : > { %p4566_p3 = pnand %p4565_p2, %p4559_p9 }
  0x25   : > { %4569 = shalt.err (!%p4566_p3)
}
  0x26   : > { %4414 = dma.hbm_to_vmem [thread:$0]  (!%p4728_p8), %s4722_s30, 2048, %s4726_s6, %s165_s8  }
  0x27   : > { %p7146_p0 = scmp.lt.s32.totalorder %s4638_s18, 3  ;;  %p7147_p4 = scmp.ge.s32.totalorder %s4638_s18, 1 }
  0x28   : > { %s4773_s10 = scalar_lea.hbm %s7139_s3, %s4206_s27  ;;  %s187_s11 = scalar_lea.vmem [#allocation4], %s3740_s26 }
  0x29   : > { %p4764_p5 = pnand %p7147_p4, %p7146_p0  ;;  %s195_s12 = sshll.u32 %s187_s11, 4  ;;  %s196_s12 = int_to_ptr.vmem [resolvable:$true] %s195_s12 }
  0x2a   : > { %s184_s30 = scalar_lea.sflag [#allocation5], %s4713_s25  ;;  %s4570_s6 = scalar_lea.hbm %s4773_s10, 2048 }
  0x2b   : > { %s7148_s29 = scalar_select %p4764_p5, 1, 0 }
  0x2c   : > { %p4571_p9 = scmp.ne.s32.totalorder %s4773_s10, %s4570_s6  ;;  %s4575_s27 = scalar_lea.hbm %s7139_s3, 4096 }
  0x2d   : > { %p4576_p11 = scmp.lt.u32.totalorder %s4773_s10, %s7139_s3  ;;  %p4577_p13 = scmp.lt.u32.totalorder %s4575_s27, %s4570_s6 }
  0x2e   : > { %p4573_p10 = pnand %p4571_p9, %p4542_p12  ;;  %p4579_p2 = scmp.lt.u32.totalorder %s4570_s6, %s4773_s10 }
  0x2f   : > { %p4578_p1 = por %p4577_p13, %p4576_p11 }
  0x30   : > { %p4574_p6 = pneg %p4573_p10 }
  0x31   : > { %p4580_p3 = por %p4579_p2, %p4578_p1 }
  0x33   : > { %p4581_p0 = pnand %p4580_p3, %p4574_p6 }
  0x35   : > { %4584 = shalt.err (!%p4581_p0)
}
  0x36   : > { %s4585_s25 = scalar_lea.vmem %s196_s12, 2048  ;;  %s4641_s26 = smov [#allocation4]  }
  0x37   : > { %p4586_p4 = scmp.ne.s32.totalorder %s196_s12, %s4585_s25  ;;  %s4590_s15 = sshll.u32 %s4641_s26, 4  ;;  %s4591_s15 = int_to_ptr.vmem [resolvable:$false] %s4590_s15 }
  0x38   : > { %s4592_s21 = scalar_lea.vmem %s4591_s15, 4096  ;;  %p4593_p7 = scmp.lt.s32.totalorder %s196_s12, %s4591_s15 }
  0x39   : > { %p4588_p9 = pnand %p4586_p4, %p4542_p12  ;;  %p4594_p5 = scmp.lt.s32.totalorder %s4592_s21, %s4585_s25 }
  0x3b   : > { %p4589_p10 = pneg %p4588_p9  ;;  %p4595_p11 = por %p4594_p5, %p4593_p7 }
  0x3d   : > { %p4596_p13 = pnand %p4595_p11, %p4589_p10 }
  0x3f   : > { %4599 = shalt.err (!%p4596_p13)
}
  0x40   : > { %4417 = dma.hbm_to_vmem [thread:$0]  (!%p4728_p8), %s4773_s10, 2048, %s196_s12, %s184_s30  }
  0x41   : > { %p7149_p6 = scmp.ne.s32.totalorder %s7148_s29, 0 }
  0x42   : > { %s206_s22 = sand.u32 (!%p7149_p6), 1, %s4630_s16   ;;  %p7150_p12 = scmp.ne.s32.totalorder (!%p7149_p6), %s7144_s24, 0 }
  0x43   : > { %204 = sbr.rel (%p7149_p6) target bundleno = 1236 (0x4d4), region = 36  ;;  %s3747_s28 = sshll.u32 (!%p7149_p6), %s206_s22, 7 }
  0x44   : > { %s207_s5 = scalar_lea.sflag (!%p7149_p6), [#allocation3], %s206_s22  ;;  %s4800_s9 = scalar_lea.vmem (!%p7149_p6), [#allocation2], %s3747_s28 }
  0x4a   : > { %4617 = dma.done.wait (%p7150_p12), %s207_s5, 2048  }
  0x4b   : > { %4619 = vsyncadd (%p7150_p12), %s207_s5, 4294965248  ;;  %s216_s11 = scalar_lea.sflag [#allocation5], %s206_s22  ;;  %s4806_s7 = scalar_lea.vmem [#allocation4], %s3747_s28 }
  0x4c   : > { %4621 = dma.done.wait (%p7150_p12), %s216_s11, 2048  }
  0x4d   : > { %4623 = vsyncadd (%p7150_p12), %s216_s11, 4294965248  ;;  %s352_s29 = smul.u32 24, %s4691_s19  ;;  %v4642_v0 = vmov 0   ;;  %vm7142_vm0 = vcmask 1044480   ;;  %v4643_v39 = vmov 1   ;;  %v2349_v47 = vld [vmem:[%s4800_s9] sm:$0xff] }
  0x4e   : > { %4457 = vset.pattern.permute.xlu1 %v4642_v0  ;;  %4456 = vset.pattern.permute.xlu0 %v4642_v0  ;;  %v2365_v48 = vld [vmem:[%s4806_s7] sm:$0xff]  ;;  %v3949_v51 = vcombine.high %v2349_v47, %v2349_v47  ;;  %vm7143_vm1 = vcmask 1043456   ;;  %v3948_v56 = vcombine.low %v2349_v47, %v2349_v47  ;;  %s4644_s24 = smov 1   ;;  %v4931_v47 = vld [vmem:[%s4800_s9 + $0x50] sm:$0xff]  ;;  %p249_p7 = scmp.lt.s32.totalorder %s4691_s19, 1 }
  0x4f   : > { %s353_s30 = scalar_lea.vmem %s7136_s0, %s352_s29  ;;  %s357_s8 = scalar_lea.vmem %s7137_s1, %s352_s29  ;;  %v2357_v49 = vld [vmem:[%s4800_s9 + $0x40] sm:$0xff]  ;;  %v3981_v52 = vcombine.high %v2365_v48, %v2365_v48  ;;  %v3980_v57 = vcombine.low %v2365_v48, %v2365_v48  ;;  %v4934_v48 = vld [vmem:[%s4806_s7 + $0x50] sm:$0xff] }
  0x50   : > { %v354_v1 = vld [vmem:[%s353_s30] sm:$0xff]  ;;  %v355_v2 = vld [vmem:[%s353_s30 + $0x8] sm:$0xff]  ;;  %v360_v11 = vld [vmem:[%s357_s8 + $0x10] sm:$0x1f]  ;;  %v3965_v54 = vcombine.high %v2357_v49, %v2357_v49  ;;  %v3964_v59 = vcombine.low %v2357_v49, %v2357_v49  ;;  %v3968_v49 = vcombine.low %v4931_v47, %v4931_v47  ;;  %s7216_s19 = smov (!%p249_p7, %s4691_s19), 1 }
  0x51   : > { %v358_v3 = vld [vmem:[%s357_s8] sm:$0xff]  ;;  %v393_v4 = vadd.f32 6.0, %v354_v1  ;;  %v3750_v5 = vadd.f32 -6.0, %v354_v1  ;;  %v394_v6 = vadd.f32 6.0, %v355_v2  ;;  %v3751_v7 = vadd.f32 -6.0, %v355_v2  ;;  %v359_v8 = vld [vmem:[%s357_s8 + $0x8] sm:$0xff] }
  0x52   : > { %v365_v9 = vrot.slane %v358_v3, 3  ;;  %v366_v10 = vrot.slane %v359_v8, 3  ;;  %v4822_v17 = vrot.slane %v360_v11, 3  ;;  %v356_v22 = vld [vmem:[%s353_s30 + $0x10] sm:$0x1f]  ;;  %v2373_v53 = vld [vmem:[%s4806_s7 + $0x40] sm:$0xff]  ;;  %v2548_v58 = vsel %vm7143_vm1, %v3949_v51, %v3981_v52 }
  0x53   : > { %v399_v12 = vmin.f32 %v393_v4, 63.0  ;;  %v381_v13 = vmax.f32 %v3750_v5, 0.0  ;;  %v400_v14 = vmin.f32 %v394_v6, 63.0  ;;  %v382_v15 = vmax.f32 %v3751_v7, 0.0  ;;  %2670 = vmatprep.subr.bf16.mxu1 %v2548_v58  ;;  %s4382_s27 = smul.u32 48, %s7216_s19  ;;  %s4646_s19 = smov 120  }
  0x54   : > { %v367_v16 = vsel %vm7142_vm0, %v365_v9, %v366_v10  ;;  %v3755_v24 = vadd.f32 -6.0, %v4822_v17  ;;  %v374_v28 = vsel %vm7142_vm0, %v356_v22, %v365_v9  ;;  %v369_v46 = vsel %vm7142_vm0, %v366_v10, %v4822_v17 }
  0x55   : > { %v4395_v18 = vtrunc.f32 %v399_v12  ;;  %v4383_v19 = vtrunc.f32 %v381_v13  ;;  %v4397_v20 = vtrunc.f32 %v400_v14  ;;  %v4385_v21 = vtrunc.f32 %v382_v15  ;;  %s7109_s25 = scalar_lea.vmem %s7140_s4, %s4382_s27 }
  0x56   : > { %v3753_v23 = vadd.f32 -6.0, %v367_v16  ;;  %v386_v31 = vmax.f32 %v3755_v24, 0.0  ;;  %v3752_v33 = vadd.f32 -6.0, %v374_v28  ;;  %v395_v36 = vadd.f32 6.0, %v374_v28  ;;  %v2366_v28 = vld [vmem:[%s4806_s7 + $0x8] sm:$0xff] }
  0x57   : > { %v4825_v25 = vcvt.f32.s32 %v4395_v18  ;;  %v4827_v26 = vcvt.f32.s32 %v4383_v19  ;;  %v4832_v29 = vcvt.f32.s32 %v4397_v20  ;;  %v4834_v30 = vcvt.f32.s32 %v4385_v21 }
  0x58   : > { %v384_v27 = vmax.f32 %v3753_v23, 0.0  ;;  %v4393_v35 = vtrunc.f32 %v386_v31  ;;  %v383_v38 = vmax.f32 %v3752_v33, 0.0  ;;  %v401_v41 = vmin.f32 %v395_v36, 63.0 }
  0x59   : > { %622 = vperm.xlu1 %4457, %v4825_v25   ;;  %412 = vperm.xlu0 %4456, %v4827_v26   ;;  %v2307_v37 = vsub.s32 %v4825_v25, %v4827_v26  ;;  %v396_v42 = vadd.f32 6.0, %v367_v16  ;;  %v3997_v55 = vcombine.high %v2373_v53, %v2373_v53  ;;  %v3996_v60 = vcombine.low %v2373_v53, %v2373_v53 }
  0x5a   : > { %v4389_v32 = vtrunc.f32 %v384_v27  ;;  %v4844_v40 = vcvt.f32.s32 %v4393_v35  ;;  %v4387_v43 = vtrunc.f32 %v383_v38  ;;  %v4399_v44 = vtrunc.f32 %v401_v41  ;;  %v2350_v27 = vld [vmem:[%s4800_s9 + $0x8] sm:$0xff] }
  0x5b   : > { %v402_v45 = vmin.f32 %v396_v42, 63.0  ;;  %v3754_v61 = vadd.f32 -6.0, %v369_v46  ;;  %v2612_v62 = vsel %vm7143_vm1, %v3965_v54, %v3997_v55  ;;  %v2544_v63 = vsel %vm7143_vm1, %v3948_v56, %v3980_v57 }
  0x5c   : > { %v4838_v34 = vcvt.f32.s32 %v4389_v32  ;;  %v4854_v50 = vcvt.f32.s32 %v4387_v43  ;;  %v4400_v1 = vcvt.f32.s32 %v4399_v44  ;;  %v2608_v3 = vsel %vm7143_vm1, %v3964_v59, %v3996_v60  ;;  %3126 = vmatprep.subr.bf16.mxu0 %v2612_v62  ;;  %2671 = vmatpush1.bf16.xpose.msra.mxu1 %v2544_v63  ;;  %v2374_v32 = vld [vmem:[%s4806_s7 + $0x48] sm:$0xff] }
  0x5d   : > { %625 = vperm.xlu1 %4457, %v4832_v29   ;;  %415 = vperm.xlu0 %4456, %v4834_v30   ;;  %v4401_v2 = vtrunc.f32 %v402_v45  ;;  %v385_v4 = vmax.f32 %v3754_v61, 0.0  ;;  %v398_v5 = vadd.f32 6.0, %v4822_v17  ;;  %v397_v9 = vadd.f32 6.0, %v369_v46  ;;  %v4918_v45 = vld [vmem:[%s4800_s9 + $0x10] sm:$0xff] }
  0x5e   : > { %3127 = vmatpush1.bf16.xpose.msra.mxu0 %v2608_v3  ;;  %v2308_v20 = vsub.s32 %v4832_v29, %v4834_v30  ;;  %v3983_v31 = vcombine.high %v2366_v28, %v2366_v28  ;;  %v3999_v35 = vcombine.high %v2374_v32, %v2374_v32  ;;  %v3982_v36 = vcombine.low %v2366_v28, %v2366_v28 }
  0x5f   : > { %v4402_v6 = vcvt.f32.s32 %v4401_v2  ;;  %v4391_v7 = vtrunc.f32 %v385_v4  ;;  %v404_v8 = vmin.f32 %v398_v5, 63.0  ;;  %v403_v12 = vmin.f32 %v397_v9, 63.0 }
  0x60   : > { %v4883_v21 = vadd.s32 1, %v2308_v20  ;;  %v255_v52 = vlaneseq  ;;  %v7163_v20 = vmov 0 }
  0x61   : > { %4458 = vset.pattern.permute.xlu1 %v4643_v39  ;;  %421 = vperm.xlu0 %4456, %v4838_v34   ;;  %v4392_v10 = vcvt.f32.s32 %v4391_v7  ;;  %v4405_v11 = vtrunc.f32 %v404_v8  ;;  %v2310_v14 = vsub.s32 %v4402_v6, %v4838_v34  ;;  %v4403_v15 = vtrunc.f32 %v403_v12 }
  0x62   : > { %1027 = vperm.xlu1 %4458, %v4834_v30   ;;  %v3951_v30 = vcombine.high %v2350_v27, %v2350_v27  ;;  %v4943_v53 = vand.u32 127, %v255_v52  ;;  %v7157_v12 = vmov 0 }
  0x63   : > { %v4406_v13 = vcvt.f32.s32 %v4405_v11  ;;  %v4871_v16 = vadd.s32 1, %v2310_v14  ;;  %v4404_v18 = vcvt.f32.s32 %v4403_v15  ;;  %v7159_v14 = vmov 0 }
  0x64   : > { %v2556_v41 = vsel %vm7143_vm1, %v3951_v30, %v3983_v31  ;;  %v257_v56 = vadd.s32 128, %v4943_v53  ;;  %v273_v57 = vadd.s32 2176, %v4943_v53  ;;  %v272_v62 = vadd.s32 2048, %v4943_v53 }
  0x65   : > { %427 = vperm.xlu0 %4456, %v4844_v40   ;;  %v2312_v17 = vsub.s32 %v4406_v13, %v4844_v40  ;;  %v2311_v23 = vsub.s32 %v4404_v18, %v4392_v10  ;;  %2727 = vmatprep.subr.bf16.mxu1 %v2556_v41  ;;  %v4979_v3 = vshra.s32 %v4943_v53, 6  ;;  %v3969_v41 = vcombine.high %v4931_v47, %v4931_v47 }
  0x66   : > { %1426 = vperm.xlu1 %4458, %v4825_v25   ;;  %v4921_v25 = vld [vmem:[%s4806_s7 + $0x10] sm:$0xff]  ;;  %v4955_v60 = vshra.s32 %v257_v56, 6  ;;  %v4957_v61 = vshra.s32 %v273_v57, 6  ;;  %v4972_v2 = vand.u32 63, %v257_v56  ;;  %v4985_v5 = vand.u32 63, %v273_v57 }
  0x67   : > { %v4877_v19 = vadd.s32 1, %v2312_v17  ;;  %v4894_v24 = vadd.s32 1, %v2311_v23  ;;  %v5036_v15 = vand.u32 63, %v272_v62  ;;  %v7167_v23 = vmov 0 }
  0x69   : > { %4462 = vset.pattern.permute.xlu0 %v4643_v39 }
  0x6a   : > { %4459 = vset.pattern.permute.xlu1 %v4642_v0  ;;  %1024 = vperm.xlu0 %4462, %v4827_v26   ;;  %v3952_v26 = vcombine.low %v4918_v45, %v4918_v45 }
  0x6b   : > { %418 = vperm.xlu1 %4459, %v4854_v50  }
  0x6e   : > { %1429 = vperm.xlu0 %4462, %v4832_v29   ;;  %v2358_v29 = vld [vmem:[%s4800_s9 + $0x48] sm:$0xff] }
  0x6f   : > { %628 = vperm.xlu1 %4459, %v4400_v1   ;;  %v3967_v33 = vcombine.high %v2358_v29, %v2358_v29  ;;  %v3966_v38 = vcombine.low %v2358_v29, %v2358_v29 }
  0x71   : > { %v2620_v42 = vsel %vm7143_vm1, %v3967_v33, %v3999_v35  ;;  %v3953_v35 = vcombine.high %v4918_v45, %v4918_v45 }
  0x72   : > { %1030 = vperm.xlu0 %4462, %v4854_v50   ;;  %3183 = vmatprep.subr.bf16.mxu0 %v2620_v42  ;;  %v4001_v42 = vcombine.high %v4934_v48, %v4934_v48 }
  0x73   : > { %631 = vperm.xlu1 %4459, %v4402_v6  }
  0x76   : > { %1435 = vperm.xlu0 %4462, %v4402_v6   ;;  %v4991_v6 = vshra.s32 %v272_v62, 6 }
  0x77   : > { %4460 = vset.pattern.permute.xlu1 %v4643_v39 }
  0x78   : > { %1033 = vperm.xlu1 %4460, %v4838_v34   ;;  %v3950_v34 = vcombine.low %v2350_v27, %v2350_v27 }
  0x7a   : > { %1036 = vperm.xlu0 %4462, %v4392_v10   ;;  %v4910_v43 = vsel %vm7143_vm1, %v3950_v34, %v3982_v36  ;;  %v3985_v36 = vcombine.high %v4921_v25, %v4921_v25 }
  0x7c   : > { %1432 = vperm.xlu1 %4460, %v4400_v1  }
  0x7e   : > { %1441 = vperm.xlu0 %4462, %v4406_v13  }
  0x80   : > { %4461 = vset.pattern.permute.xlu1 %v4642_v0  ;;  %v2309_v0 = vsub.s32 %v4400_v1, %v4854_v50  ;;  %v4000_v50 = vcombine.low %v4934_v48, %v4934_v48 }
  0x81   : > { %424 = vperm.xlu1 %4461, %v4392_v10   ;;  %v5006_v10 = vand.u32 63, %v4943_v53 }
  0x82   : > { %2325 = vrot.lane.b32.xlu0 %v4871_v16, %s4644_s24  ;;  %v4890_v22 = vadd.s32 1, %v2309_v0  ;;  %v4941_v51 = vsel %vm7143_vm1, %v3968_v49, %v4000_v50 }
  0x85   : > { %634 = vperm.xlu1 %4461, %v4404_v18  }
  0x86   : > { %2329 = vrot.lane.b32.xlu0 %v4877_v19, %s4644_s24 }
  0x89   : > { %637 = vperm.xlu1 %4461, %v4406_v13  }
  0x8a   : > { %2321 = vrot.lane.b32.xlu0 %v4883_v21, %s4644_s24 }
  0x8d   : > { %4463 = vset.pattern.permute.xlu1 %v4643_v39  ;;  %v3998_v39 = vcombine.low %v2374_v32, %v2374_v32  ;;  %v4645_v32 = vmov 1.0|1.0  }
  0x8e   : > { %1039 = vperm.xlu1 %4463, %v4844_v40   ;;  %v4905_v40 = vadd.s32 1, %v2307_v37  ;;  %v3984_v37 = vcombine.low %v4921_v25, %v4921_v25 }
  0x8f   : > { %v4913_v44 = vsel %vm7143_vm1, %v3966_v38, %v3998_v39 }
  0x90   : > { %v4928_v46 = vsel %vm7143_vm1, %v3952_v26, %v3984_v37 }
  0x92   : > { %1438 = vperm.xlu1 %4463, %v4404_v18   ;;  %v7161_v18 = vmov 0 }
  0x96   : > { %2323 = vrot.lane.b32.xlu1 %v4890_v22, %s4644_s24 }
  0x9a   : > { %2327 = vrot.lane.b32.xlu1 %v4894_v24, %s4644_s24 }
  0x9e   : > { %2319 = vrot.lane.b32.xlu1 %v4905_v40, %s4644_s24 }
  0xd8   : > { %v4945_v54 = vpop.permute.xlu1 %622  ;;  %v4947_v55 = vpop.permute.xlu0 %412 }
  0xd9   : > { %vm430_vm2 = vcmp.ge.s32.totalorder %v4955_v60, %v4947_v55  ;;  %vm640_vm3 = vcmp.lt.s32.totalorder %v4955_v60, %v4945_v54  ;;  %vm446_vm4 = vcmp.ge.s32.totalorder %v4957_v61, %v4947_v55  ;;  %vm656_vm5 = vcmp.lt.s32.totalorder %v4957_v61, %v4945_v54 }
  0xda   : > { %vm4981_vm8 = vmand %vm430_vm2, %vm640_vm3  ;;  %vm429_vm0 = vcmp.ge.s32.totalorder %v4979_v3, %v4947_v55 }
  0xdb   : > { %vm4995_vm11 = vmand %vm446_vm4, %vm656_vm5 }
  0xdc   : > { %v4951_v58 = vpop.permute.xlu1 %625  ;;  %v4953_v59 = vpop.permute.xlu0 %415 }
  0xdd   : > { %vm462_vm6 = vcmp.ge.s32.totalorder %v4955_v60, %v4953_v59  ;;  %vm672_vm7 = vcmp.lt.s32.totalorder %v4955_v60, %v4951_v58  ;;  %vm478_vm9 = vcmp.ge.s32.totalorder %v4957_v61, %v4953_v59  ;;  %vm688_vm10 = vcmp.lt.s32.totalorder %v4957_v61, %v4951_v58 }
  0xde   : > { %vm461_vm12 = vcmp.ge.s32.totalorder %v4979_v3, %v4953_v59  ;;  %vm671_vm13 = vcmp.lt.s32.totalorder %v4979_v3, %v4951_v58  ;;  %vm864_vm14 = vmand %vm462_vm6, %vm672_vm7  ;;  %vm477_vm15 = vcmp.ge.s32.totalorder %v4991_v6, %v4953_v59  ;;  %vm687_vm2 = vcmp.lt.s32.totalorder %v4991_v6, %v4951_v58 }
  0xdf   : > { %vm880_vm4 = vmand %vm478_vm9, %vm688_vm10  ;;  %vm639_vm6 = vcmp.lt.s32.totalorder %v4979_v3, %v4945_v54 }
  0xe0   : > { %v4960_v63 = vpop.permute.xlu0 %421  ;;  %vm5020_vm7 = vmand %vm461_vm12, %vm671_vm13 }
  0xe1   : > { %v4966_v1 = vpop.permute.xlu1 %1027  ;;  %vm5024_vm1 = vmand %vm477_vm15, %vm687_vm2 }
  0xe2   : > { %vm1074_vm3 = vcmp.ge.s32.totalorder %v4972_v2, %v4966_v1  ;;  %vm1090_vm5 = vcmp.ge.s32.totalorder %v4985_v5, %v4966_v1  ;;  %v7158_v12 = vsel %vm5024_vm1, 4294967295, %v7157_v12  ;;  %vm1073_vm10 = vcmp.ge.s32.totalorder %v5006_v10, %v4966_v1 }
  0xe3   : > { %vm5030_vm9 = vmand %vm864_vm14, %vm1074_vm3  ;;  %vm445_vm1 = vcmp.ge.s32.totalorder %v4991_v6, %v4947_v55 }
  0xe4   : > { %v4993_v7 = vpop.permute.xlu0 %427  ;;  %v7160_v14 = vsel %vm5030_vm9, 4294967295, %v7159_v14  ;;  %vm5044_vm15 = vmand %vm880_vm4, %vm1090_vm5  ;;  %vm655_vm9 = vcmp.lt.s32.totalorder %v4991_v6, %v4945_v54 }
  0xe5   : > { %v5003_v9 = vpop.permute.xlu1 %1426  ;;  %v7162_v18 = vsel %vm5044_vm15, 4294967295, %v7161_v18  ;;  %vm5048_vm14 = vmand %vm429_vm0, %vm639_vm6  ;;  %vm1089_vm6 = vcmp.ge.s32.totalorder %v5036_v15, %v4966_v1 }
  0xe6   : > { %v7164_v20 = vsel %vm5048_vm14, 4294967295, %v7163_v20  ;;  %vm1444_vm3 = vcmp.lt.s32.totalorder %v4972_v2, %v5003_v9  ;;  %vm5066_vm0 = vmand %vm5020_vm7, %vm1073_vm10  ;;  %vm1460_vm5 = vcmp.lt.s32.totalorder %v4985_v5, %v5003_v9  ;;  %vm7174_vm14 = vnez %v7158_v12 }
  0xe7   : > { %v7168_v23 = vsel %vm5066_vm0, 4294967295, %v7167_v23  ;;  %vm5100_vm15 = vmand %vm7174_vm14, %vm1089_vm6  ;;  %vm7178_vm14 = vnez %v7164_v20  ;;  %vm1443_vm6 = vcmp.lt.s32.totalorder %v5006_v10, %v5003_v9 }
  0xe9   : > { %v5028_v13 = vpop.permute.xlu0 %1024 }
  0xea   : > { %v5038_v17 = vpop.permute.xlu1 %418  ;;  %vm1042_vm12 = vcmp.ge.s32.totalorder %v4972_v2, %v5028_v13  ;;  %vm1058_vm13 = vcmp.ge.s32.totalorder %v4985_v5, %v5028_v13  ;;  %vm1041_vm0 = vcmp.ge.s32.totalorder %v5006_v10, %v5028_v13 }
  0xeb   : > { %vm1234_vm2 = vmand %vm4981_vm8, %vm1042_vm12 }
  0xec   : > { %vm5060_vm4 = vmand %vm1234_vm2, %vm1444_vm3 }
  0xed   : > { %v5070_v27 = vpop.permute.xlu0 %1429  ;;  %vm1250_vm8 = vmand %vm4995_vm11, %vm1058_vm13  ;;  %vm7173_vm11 = vnez %v7160_v14  ;;  %v5239_v14 = vld [vmem:[%s4800_s9 + $0x18] sm:$0xff] }
  0xee   : > { %v5078_v28 = vpop.permute.xlu1 %628  ;;  %vm1476_vm12 = vcmp.lt.s32.totalorder %v4972_v2, %v5070_v27  ;;  %vm1492_vm7 = vcmp.lt.s32.totalorder %v4985_v5, %v5070_v27  ;;  %vm5084_vm10 = vmand %vm1250_vm8, %vm1460_vm5  ;;  %vm1475_vm8 = vcmp.lt.s32.totalorder %v5006_v10, %v5070_v27 }
  0xef   : > { %vm5088_vm2 = vmand %vm445_vm1, %vm655_vm9  ;;  %vm7177_vm1 = vnez %v7162_v18  ;;  %v5242_v18 = vld [vmem:[%s4806_s7 + $0x18] sm:$0xff] }
  0xf0   : > { %vm1668_vm13 = vmand %vm7173_vm11, %vm1476_vm12  ;;  %v3986_v29 = vcombine.low %v5242_v18, %v5242_v18 }
  0xf1   : > { %vm4012_vm3 = vmpackc.low %vm1668_vm13, %vm5060_vm4  ;;  %v5107_v33 = vpop.permute.xlu0 %1030 }
  0xf2   : > { %4013 = vmatprep.mubr.msk.bf16.mxu1 %vm4012_vm3, %v4645_v32  ;;  %vm1684_vm9 = vmand %vm7177_vm1, %vm1492_vm7  ;;  %v5111_v34 = vpop.permute.xlu1 %631  ;;  %vm1057_vm7 = vcmp.ge.s32.totalorder %v5036_v15, %v5028_v13  ;;  %vm1491_vm3 = vcmp.lt.s32.totalorder %v5036_v15, %v5070_v27  ;;  %vm7180_vm1 = vcmask 1043456  }
  0xf3   : > { %vm4108_vm4 = vmpackc.low %vm1684_vm9, %vm5084_vm10  ;;  %vm7179_vm10 = vnez %v7168_v23  ;;  %v2564_v39 = vsel %vm7180_vm1, %v3953_v35, %v3985_v36  ;;  %vm1459_vm9 = vcmp.lt.s32.totalorder %v5036_v15, %v5003_v9  ;;  %v3954_v23 = vcombine.low %v5239_v14, %v5239_v14 }
  0xf4   : > { %4109 = vmatprep.mubr.msk.bf16.mxu0 %vm4108_vm4, %v4645_v32  ;;  %vm1233_vm5 = vmand %vm7178_vm14, %vm1041_vm0 }
  0xf5   : > { %vm1635_vm12 = vmand %vm1233_vm5, %vm1443_vm6  ;;  %v5128_v38 = vpop.permute.xlu0 %1435  ;;  %vm736_vm5 = vcmp.lt.s32.totalorder %v4955_v60, %v5111_v34  ;;  %vm494_vm6 = vcmp.ge.s32.totalorder %v4955_v60, %v5038_v17 }
  0xf6   : > { %vm1667_vm11 = vmand %vm7179_vm10, %vm1475_vm8  ;;  %vm704_vm8 = vcmp.lt.s32.totalorder %v4955_v60, %v5078_v28 }
  0xf7   : > { %vm4014_vm13 = vmpackc.low %vm1667_vm11, %vm1635_vm12  ;;  %v5142_v45 = vpop.permute.xlu1 %1033  ;;  %vm1106_vm12 = vcmp.ge.s32.totalorder %v4972_v2, %v5107_v33 }
  0xf8   : > { %4015 = vmatmul.mubr.msk.bf16.vlgmr.msra.gmra.mrb[0].mxu1 %vm4014_vm13, %v4645_v32  ;;  %vm1249_vm0 = vmand %vm5088_vm2, %vm1057_vm7  ;;  %vm1138_vm11 = vcmp.ge.s32.totalorder %v4972_v2, %v5142_v45 }
  0xf9   : > { %vm1651_vm4 = vmand %vm1249_vm0, %vm1459_vm9  ;;  %2728 = vmatpush1.bf16.xpose.msra.mxu1 %v4910_v43  ;;  %v5149_v25 = vpop.permute.xlu0 %1036  ;;  %vm1540_vm0 = vcmp.lt.s32.totalorder %v4972_v2, %v5128_v38 }
  0xfa   : > { %vm1683_vm14 = vmand %vm5100_vm15, %vm1491_vm3  ;;  %2784 = vmatprep.subr.bf16.mxu1 %v2564_v39  ;;  %vm526_vm15 = vcmp.ge.s32.totalorder %v4955_v60, %v4960_v63  ;;  %v5272_v39 = vld [vmem:[%s4800_s9 + $0x58] sm:$0xff] }
  0xfb   : > { %vm4110_vm2 = vmpackc.low %vm1683_vm14, %vm1651_vm4  ;;  %v5159_v43 = vpop.permute.xlu1 %1432 }
  0xfc   : > { %vm7181_vm7 = vmmov %vm7180_vm1  ;;  %4111 = vmatmul.mubr.msk.bf16.vlgmr.msra.gmra.mrb[0].mxu0 %vm4110_vm2, %v4645_v32  ;;  %vm1508_vm3 = vcmp.lt.s32.totalorder %v4972_v2, %v5159_v43 }
  0xfd   : > { %v2628_v26 = vsel %vm7181_vm7, %v3969_v41, %v4001_v42  ;;  %vm896_vm10 = vmand %vm494_vm6, %vm704_vm8  ;;  %3184 = vmatpush1.bf16.xpose.msra.mxu0 %v4913_v44  ;;  %v5168_v37 = vpop.permute.xlu0 %1441  ;;  %vm720_vm8 = vcmp.lt.s32.totalorder %v4957_v61, %v5078_v28  ;;  %vm510_vm6 = vcmp.ge.s32.totalorder %v4957_v61, %v5038_v17  ;;  %vm542_vm7 = vcmp.ge.s32.totalorder %v4957_v61, %v4960_v63  ;;  %v5275_v41 = vld [vmem:[%s4806_s7 + $0x58] sm:$0xff] }
  0xfe   : > { %vm928_vm13 = vmand %vm526_vm15, %vm736_vm5  ;;  %3240 = vmatprep.subr.bf16.mxu0 %v2628_v26  ;;  %vm752_vm5 = vcmp.lt.s32.totalorder %v4957_v61, %v5111_v34 }
  0xff   : > { %vm1298_vm1 = vmand %vm896_vm10, %vm1106_vm12  ;;  %vm1122_vm12 = vcmp.ge.s32.totalorder %v4985_v5, %v5107_v33  ;;  %vm1154_vm10 = vcmp.ge.s32.totalorder %v4985_v5, %v5142_v45 }
 0x100   : > { %vm1330_vm9 = vmand %vm928_vm13, %vm1138_vm11  ;;  %v5176_v47 = vpop.permute.xlu1 %424  ;;  %vm1524_vm13 = vcmp.lt.s32.totalorder %v4985_v5, %v5159_v43 }
 0x101   : > { %vm1700_vm4 = vmand %vm1298_vm1, %vm1508_vm3  ;;  %v2326_v44 = vpop.permute.xlu0 %2325  ;;  %vm1556_vm1 = vcmp.lt.s32.totalorder %v4985_v5, %v5128_v38 }
 0x102   : > { %vm1732_vm14 = vmand %vm1330_vm9, %vm1540_vm0  ;;  %v2334_v48 = vmul.u32 %v2326_v44, %v4871_v16  ;;  %v3970_v44 = vcombine.low %v5272_v39, %v5272_v39 }
 0x103   : > { %vm4016_vm2 = vmpackc.low %vm1732_vm14, %vm1700_vm4  ;;  %vm703_vm4 = vcmp.lt.s32.totalorder %v4979_v3, %v5078_v28  ;;  %vm735_vm14 = vcmp.lt.s32.totalorder %v4979_v3, %v5111_v34 }
 0x104   : > { %4017 = vmatprep.mubr.msk.bf16.mxu1 %vm4016_vm2, %v4645_v32  ;;  %vm912_vm15 = vmand %vm510_vm6, %vm720_vm8  ;;  %v2340_v49 = vcvt.s32.f32 %v2334_v48  ;;  %v5192_v50 = vpop.permute.xlu1 %634  ;;  %vm493_vm2 = vcmp.ge.s32.totalorder %v4979_v3, %v5038_v17  ;;  %vm1105_vm6 = vcmp.ge.s32.totalorder %v5006_v10, %v5107_v33  ;;  %v4002_v48 = vcombine.low %v5275_v41, %v5275_v41 }
 0x105   : > { %vm944_vm11 = vmand %vm542_vm7, %vm752_vm5  ;;  %v2330_v52 = vpop.permute.xlu0 %2329 }
 0x106   : > { %vm1314_vm3 = vmand %vm912_vm15, %vm1122_vm12  ;;  %4528 = vrcp.f32 %v2340_v49  ;;  %v2336_v16 = vmul.u32 %v2330_v52, %v4877_v19  ;;  %vm525_vm12 = vcmp.ge.s32.totalorder %v4979_v3, %v4960_v63  ;;  %vm1137_vm15 = vcmp.ge.s32.totalorder %v5006_v10, %v5142_v45 }
 0x107   : > { %vm1346_vm0 = vmand %vm944_vm11, %vm1154_vm10  ;;  %vm1507_vm11 = vcmp.lt.s32.totalorder %v5006_v10, %v5159_v43  ;;  %v275_v52 = vadd.s32 2432, %v4943_v53 }
 0x108   : > { %vm1716_vm9 = vmand %vm1314_vm3, %vm1524_vm13  ;;  %v2342_v56 = vcvt.s32.f32 %v2336_v16  ;;  %v5203_v57 = vpop.permute.xlu1 %637  ;;  %vm1539_vm3 = vcmp.lt.s32.totalorder %v5006_v10, %v5128_v38 }
 0x109   : > { %vm1748_vm8 = vmand %vm1346_vm0, %vm1556_vm1  ;;  %v2322_v19 = vpop.permute.xlu0 %2321 }
 0x10a   : > { %vm4112_vm5 = vmpackc.low %vm1748_vm8, %vm1716_vm9  ;;  %4530 = vrcp.f32 %v2342_v56  ;;  %v2332_v62 = vmul.u32 %v2322_v19, %v4883_v21  ;;  %vm719_vm9 = vcmp.lt.s32.totalorder %v4991_v6, %v5078_v28  ;;  %vm751_vm8 = vcmp.lt.s32.totalorder %v4991_v6, %v5111_v34 }
 0x10b   : > { %4113 = vmatprep.mubr.msk.bf16.mxu0 %vm4112_vm5, %v4645_v32  ;;  %vm895_vm7 = vmand %vm493_vm2, %vm703_vm4  ;;  %vm509_vm5 = vcmp.ge.s32.totalorder %v4991_v6, %v5038_v17  ;;  %vm1121_vm2 = vcmp.ge.s32.totalorder %v5036_v15, %v5107_v33  ;;  %v7186_v19 = vmov 0 }
 0x10c   : > { %vm927_vm10 = vmand %vm525_vm12, %vm735_vm14  ;;  %v2338_v4 = vcvt.s32.f32 %v2332_v62  ;;  %v7188_v62 = vmov 0 }
 0x10d   : > { %vm1297_vm13 = vmand %vm895_vm7, %vm1105_vm6  ;;  %v5217_v8 = vpop.permute.xlu1 %1039  ;;  %vm541_vm6 = vcmp.ge.s32.totalorder %v4991_v6, %v4960_v63  ;;  %vm1153_vm7 = vcmp.ge.s32.totalorder %v5036_v15, %v5142_v45 }
 0x10e   : > { %vm1329_vm1 = vmand %vm927_vm10, %vm1137_vm15  ;;  %4532 = vrcp.f32 %v2338_v4  ;;  %vm1523_vm10 = vcmp.lt.s32.totalorder %v5036_v15, %v5159_v43 }
 0x10f   : > { %vm1699_vm0 = vmand %vm1297_vm13, %vm1507_vm11  ;;  %vm1555_vm13 = vcmp.lt.s32.totalorder %v5036_v15, %v5128_v38 }
 0x110   : > { %vm1731_vm4 = vmand %vm1329_vm1, %vm1539_vm3  ;;  %v4529_v21 = vpop.eup %4528 }
 0x111   : > { %vm4018_vm14 = vmpackc.low %vm1731_vm4, %vm1699_vm0  ;;  %v5232_v11 = vpop.permute.xlu1 %1438  ;;  %3602 = vperm.xlu0 %4462, %v4529_v21   ;;  %vm768_vm0 = vcmp.lt.s32.totalorder %v4955_v60, %v5192_v50  ;;  %vm800_vm4 = vcmp.lt.s32.totalorder %v4955_v60, %v5203_v57  ;;  %v5389_v21 = vand.u32 63, %v275_v52 }
 0x112   : > { %4019 = vmatmul.mubr.msk.bf16.gmra.mrb[4].mxu1 %vm4018_vm14, %v4645_v32  ;;  %vm911_vm12 = vmand %vm509_vm5, %vm719_vm9  ;;  %vm558_vm14 = vcmp.ge.s32.totalorder %v4955_v60, %v5176_v47  ;;  %vm590_vm5 = vcmp.ge.s32.totalorder %v4955_v60, %v4993_v7  ;;  %v259_v60 = vadd.s32 384, %v4943_v53 }
 0x113   : > { %vm943_vm15 = vmand %vm541_vm6, %vm751_vm8  ;;  %vm1202_vm6 = vcmp.ge.s32.totalorder %v4972_v2, %v5217_v8 }
 0x114   : > { %vm1313_vm11 = vmand %vm911_vm12, %vm1121_vm2  ;;  %v4531_v12 = vpop.eup %4530 }
 0x115   : > { %vm1345_vm3 = vmand %vm943_vm15, %vm1153_vm7  ;;  %v2324_v20 = vpop.permute.xlu1 %2323  ;;  %3612 = vperm.xlu0 %4462, %v4531_v12   ;;  %vm1170_vm7 = vcmp.ge.s32.totalorder %v4972_v2, %v5149_v25  ;;  %vm1572_vm15 = vcmp.lt.s32.totalorder %v4972_v2, %v5232_v11  ;;  %v258_v12 = vadd.s32 256, %v4943_v53 }
 0x116   : > { %vm1715_vm1 = vmand %vm1313_vm11, %vm1523_vm10  ;;  %v2333_v0 = vmul.u32 %v2324_v20, %v4890_v22  ;;  %vm7182_vm11 = vcmask 1043456  }
 0x117   : > { %vm1747_vm9 = vmand %vm1345_vm3, %vm1555_vm13  ;;  %v5264_v35 = vsel %vm7182_vm11, %v3954_v23, %v3986_v29  ;;  %vm1604_vm3 = vcmp.lt.s32.totalorder %v4972_v2, %v5168_v37  ;;  %v5416_v20 = vand.u32 63, %v258_v12  ;;  %v3955_v29 = vcombine.high %v5239_v14, %v5239_v14 }
 0x118   : > { %vm4114_vm8 = vmpackc.low %vm1747_vm9, %vm1715_vm1  ;;  %v4533_v30 = vpop.eup %4532  ;;  %v2339_v22 = vcvt.s32.f32 %v2333_v0  ;;  %v274_v0 = vadd.s32 2304, %v4943_v53 }
 0x119   : > { %4115 = vmatmul.mubr.msk.bf16.gmra.mrb[4].mxu0 %vm4114_vm8, %v4645_v32  ;;  %vm960_vm2 = vmand %vm558_vm14, %vm768_vm0  ;;  %v2328_v31 = vpop.permute.xlu1 %2327  ;;  %3589 = vperm.xlu0 %4462, %v4533_v30   ;;  %vm784_vm0 = vcmp.lt.s32.totalorder %v4957_v61, %v5192_v50  ;;  %vm574_vm14 = vcmp.ge.s32.totalorder %v4957_v61, %v5176_v47  ;;  %v3987_v30 = vcombine.high %v5242_v18, %v5242_v18 }
 0x11a   : > { %vm992_vm12 = vmand %vm590_vm5, %vm800_vm4  ;;  %4534 = vrcp.f32 %v2339_v22  ;;  %v2335_v36 = vmul.u32 %v2328_v31, %v4894_v24  ;;  %vm816_vm4 = vcmp.lt.s32.totalorder %v4957_v61, %v5203_v57  ;;  %vm606_vm5 = vcmp.ge.s32.totalorder %v4957_v61, %v4993_v7  ;;  %v5556_v31 = vld [vmem:[%s4806_s7 + $0x20] sm:$0xff] }
 0x11b   : > { %vm1362_vm10 = vmand %vm960_vm2, %vm1170_vm7  ;;  %vm1218_vm2 = vcmp.ge.s32.totalorder %v4985_v5, %v5217_v8  ;;  %v5285_v24 = vshra.s32 %v259_v60, 6  ;;  %vm1186_vm7 = vcmp.ge.s32.totalorder %v4985_v5, %v5149_v25  ;;  %v5432_v23 = vshra.s32 %v274_v0, 6 }
 0x11c   : > { %vm1394_vm13 = vmand %vm992_vm12, %vm1202_vm6  ;;  %v2341_v42 = vcvt.s32.f32 %v2335_v36  ;;  %v5442_v22 = vand.u32 63, %v274_v0  ;;  %v3971_v18 = vcombine.high %v5272_v39, %v5272_v39  ;;  %v3988_v39 = vcombine.low %v5556_v31, %v5556_v31  ;;  %v5818_v0 = vld [vmem:[%s4806_s7 + $0x28] sm:$0xff] }
 0x11d   : > { %vm1764_vm1 = vmand %vm1362_vm10, %vm1572_vm15  ;;  %v2320_v2 = vpop.permute.xlu1 %2319  ;;  %vm1588_vm15 = vcmp.lt.s32.totalorder %v4985_v5, %v5232_v11  ;;  %vm464_vm11 = vcmp.ge.s32.totalorder %v5285_v24, %v4953_v59  ;;  %v3989_v4 = vcombine.high %v5556_v31, %v5556_v31 }
 0x11e   : > { %vm1796_vm9 = vmand %vm1394_vm13, %vm1604_vm3  ;;  %4536 = vrcp.f32 %v2341_v42  ;;  %v2331_v26 = vmul.u32 %v2320_v2, %v4905_v40  ;;  %vm674_vm13 = vcmp.lt.s32.totalorder %v5285_v24, %v4951_v58  ;;  %vm7183_vm3 = vcmask 1043456   ;;  %v5583_v42 = vld [vmem:[%s4800_s9 + $0x60] sm:$0xff] }
 0x11f   : > { %vm4020_vm8 = vmpackc.low %vm1796_vm9, %vm1764_vm1  ;;  %v5302_v61 = vsel %vm7183_vm3, %v3970_v44, %v4002_v48  ;;  %v3972_v2 = vcombine.low %v5583_v42, %v5583_v42  ;;  %v261_v48 = vadd.s32 640, %v4943_v53 }
 0x120   : > { %4021 = vmatprep.mubr.msk.bf16.mxu1 %vm4020_vm8, %v4645_v32  ;;  %vm976_vm6 = vmand %vm574_vm14, %vm784_vm0  ;;  %v2337_v40 = vcvt.s32.f32 %v2331_v26  ;;  %vm1620_vm0 = vcmp.lt.s32.totalorder %v4985_v5, %v5168_v37  ;;  %vm799_vm14 = vcmp.lt.s32.totalorder %v4979_v3, %v5203_v57  ;;  %v5325_v5 = vand.u32 63, %v259_v60 }
 0x121   : > { %vm1008_vm12 = vmand %vm606_vm5, %vm816_vm4  ;;  %vm767_vm4 = vcmp.lt.s32.totalorder %v4979_v3, %v5192_v50  ;;  %v4003_v60 = vcombine.high %v5275_v41, %v5275_v41  ;;  %v5632_v49 = vand.u32 63, %v261_v48 }
 0x122   : > { %vm1378_vm10 = vmand %vm976_vm6, %vm1186_vm7  ;;  %4538 = vrcp.f32 %v2337_v40  ;;  %vm557_vm6 = vcmp.ge.s32.totalorder %v4979_v3, %v5176_v47  ;;  %v5626_v40 = vshra.s32 %v261_v48, 6 }
 0x123   : > { %vm1410_vm1 = vmand %vm1008_vm12, %vm1218_vm2  ;;  %vm589_vm12 = vcmp.ge.s32.totalorder %v4979_v3, %v4993_v7  ;;  %v5335_v3 = vshra.s32 %v275_v52, 6  ;;  %v277_v52 = vadd.s32 2688, %v4943_v53 }
 0x124   : > { %vm1780_vm9 = vmand %vm1378_vm10, %vm1588_vm15  ;;  %v4535_v16 = vpop.eup %4534  ;;  %vm1201_vm15 = vcmp.ge.s32.totalorder %v5006_v10, %v5217_v8 }
 0x125   : > { %vm1812_vm8 = vmand %vm1410_vm1, %vm1620_vm0  ;;  %3594 = vperm.xlu1 %4463, %v4535_v16   ;;  %vm432_vm1 = vcmp.ge.s32.totalorder %v5285_v24, %v4947_v55  ;;  %vm642_vm0 = vcmp.lt.s32.totalorder %v5285_v24, %v4945_v54  ;;  %v5650_v16 = vshra.s32 %v277_v52, 6 }
 0x126   : > { %vm5313_vm5 = vmand %vm464_vm11, %vm674_vm13  ;;  %vm1169_vm11 = vcmp.ge.s32.totalorder %v5006_v10, %v5149_v25  ;;  %vm1571_vm13 = vcmp.lt.s32.totalorder %v5006_v10, %v5232_v11 }
 0x127   : > { %vm4116_vm2 = vmpackc.low %vm1812_vm8, %vm1780_vm9 }
 0x128   : > { %4117 = vmatprep.mubr.msk.bf16.mxu0 %vm4116_vm2, %v4645_v32  ;;  %vm959_vm7 = vmand %vm557_vm6, %vm767_vm4  ;;  %v4537_v56 = vpop.eup %4536  ;;  %vm1603_vm4 = vcmp.lt.s32.totalorder %v5006_v10, %v5168_v37  ;;  %vm1076_vm2 = vcmp.ge.s32.totalorder %v5325_v5, %v4966_v1 }
 0x129   : > { %vm991_vm10 = vmand %vm589_vm12, %vm799_vm14  ;;  %vm783_vm14 = vcmp.lt.s32.totalorder %v4991_v6, %v5192_v50  ;;  %3607 = vperm.xlu1 %4463, %v4537_v56   ;;  %vm815_vm12 = vcmp.lt.s32.totalorder %v4991_v6, %v5203_v57 }
 0x12a   : > { %vm1361_vm3 = vmand %vm959_vm7, %vm1169_vm11  ;;  %vm448_vm11 = vcmp.ge.s32.totalorder %v5335_v3, %v4947_v55 }
 0x12b   : > { %vm1393_vm9 = vmand %vm991_vm10, %vm1201_vm15  ;;  %vm573_vm10 = vcmp.ge.s32.totalorder %v4991_v6, %v5176_v47 }
 0x12c   : > { %vm1763_vm8 = vmand %vm1361_vm3, %vm1571_vm13  ;;  %vm658_vm13 = vcmp.lt.s32.totalorder %v5335_v3, %v4945_v54  ;;  %v4539_v10 = vpop.eup %4538  ;;  %vm605_vm3 = vcmp.ge.s32.totalorder %v4991_v6, %v4993_v7 }
 0x12d   : > { %vm1795_vm6 = vmand %vm1393_vm9, %vm1603_vm4  ;;  %vm480_vm4 = vcmp.ge.s32.totalorder %v5335_v3, %v4953_v59  ;;  %3584 = vperm.xlu1 %4463, %v4539_v10   ;;  %v276_v10 = vadd.s32 2560, %v4943_v53 }
 0x12e   : > { %vm5345_vm7 = vmand %vm432_vm1, %vm642_vm0  ;;  %vm1217_vm0 = vcmp.ge.s32.totalorder %v5036_v15, %v5217_v8 }
 0x12f   : > { %v7187_v19 = vsel %vm5345_vm7, 4294967295, %v7186_v19  ;;  %vm4022_vm15 = vmpackc.low %vm1795_vm6, %vm1763_vm8  ;;  %vm690_vm8 = vcmp.lt.s32.totalorder %v5335_v3, %v4951_v58  ;;  %vm1044_vm7 = vcmp.ge.s32.totalorder %v5325_v5, %v5028_v13 }
 0x130   : > { %4023 = vmatmul.mubr.msk.bf16.gmra.mrb[8].mxu1 %vm4022_vm15, %v4645_v32  ;;  %vm975_vm1 = vmand %vm573_vm10, %vm783_vm14  ;;  %vm1185_vm15 = vcmp.ge.s32.totalorder %v5036_v15, %v5149_v25  ;;  %vm1587_vm14 = vcmp.lt.s32.totalorder %v5036_v15, %v5232_v11 }
 0x131   : > { %vm5362_vm9 = vmand %vm5313_vm5, %vm1076_vm2 }
 0x132   : > { %v7189_v62 = vsel %vm5362_vm9, 4294967295, %v7188_v62  ;;  %vm1007_vm6 = vmand %vm605_vm3, %vm815_vm12  ;;  %vm1619_vm12 = vcmp.lt.s32.totalorder %v5036_v15, %v5168_v37  ;;  %v5405_v15 = vshra.s32 %v258_v12, 6 }
 0x133   : > { %vm1377_vm10 = vmand %vm975_vm1, %vm1185_vm15  ;;  %vm1060_vm15 = vcmp.ge.s32.totalorder %v5389_v21, %v5028_v13 }
 0x134   : > { %vm5377_vm5 = vmand %vm448_vm11, %vm658_vm13  ;;  %vm1478_vm13 = vcmp.lt.s32.totalorder %v5325_v5, %v5070_v27 }
 0x135   : > { %vm1409_vm2 = vmand %vm1007_vm6, %vm1217_vm0  ;;  %vm7194_vm0 = vnez %v7187_v19 }
 0x136   : > { %vm5381_vm9 = vmand %vm480_vm4, %vm690_vm8  ;;  %vm1446_vm8 = vcmp.lt.s32.totalorder %v5325_v5, %v5003_v9 }
 0x137   : > { %vm1779_vm3 = vmand %vm1377_vm10, %vm1587_vm14  ;;  %vm7195_vm14 = vnez %v7189_v62  ;;  %v5694_v62 = vshra.s32 %v276_v10, 6 }
 0x138   : > { %vm1811_vm1 = vmand %vm1409_vm2, %vm1619_vm12  ;;  %vm1092_vm2 = vcmp.ge.s32.totalorder %v5389_v21, %v4966_v1 }
 0x139   : > { %vm4118_vm11 = vmpackc.low %vm1811_vm1, %vm1779_vm3  ;;  %vm1494_vm3 = vcmp.lt.s32.totalorder %v5389_v21, %v5070_v27 }
 0x13a   : > { %4119 = vmatmul.mubr.msk.bf16.gmra.mrb[8].mxu0 %vm4118_vm11, %v4645_v32  ;;  %vm1236_vm4 = vmand %vm7194_vm0, %vm1044_vm7  ;;  %vm1462_vm11 = vcmp.lt.s32.totalorder %v5389_v21, %v5003_v9  ;;  %vm431_vm0 = vcmp.ge.s32.totalorder %v5405_v15, %v4947_v55 }
 0x13b   : > { %vm1638_vm6 = vmand %vm1236_vm4, %vm1446_vm8  ;;  %vm463_vm8 = vcmp.ge.s32.totalorder %v5405_v15, %v4953_v59 }
 0x13c   : > { %vm1670_vm10 = vmand %vm7195_vm14, %vm1478_vm13 }
 0x13d   : > { %vm4024_vm12 = vmpackc.low %vm1670_vm10, %vm1638_vm6  ;;  %vm1075_vm10 = vcmp.ge.s32.totalorder %v5416_v20, %v4966_v1 }
 0x13e   : > { %4025 = vmatprep.mubr.msk.bf16.mxu1 %vm4024_vm12, %v4645_v32  ;;  %vm1252_vm7 = vmand %vm5377_vm5, %vm1060_vm15  ;;  %vm641_vm5 = vcmp.lt.s32.totalorder %v5405_v15, %v4945_v54  ;;  %vm1043_vm15 = vcmp.ge.s32.totalorder %v5416_v20, %v5028_v13 }
 0x13f   : > { %vm1284_vm1 = vmand %vm5381_vm9, %vm1092_vm2  ;;  %vm673_vm9 = vcmp.lt.s32.totalorder %v5405_v15, %v4951_v58 }
 0x140   : > { %vm1654_vm13 = vmand %vm1252_vm7, %vm1462_vm11  ;;  %vm1477_vm7 = vcmp.lt.s32.totalorder %v5416_v20, %v5070_v27 }
 0x141   : > { %vm1686_vm4 = vmand %vm1284_vm1, %vm1494_vm3  ;;  %vm1445_vm1 = vcmp.lt.s32.totalorder %v5416_v20, %v5003_v9 }
 0x142   : > { %vm4120_vm6 = vmpackc.low %vm1686_vm4, %vm1654_vm13  ;;  %vm447_vm13 = vcmp.ge.s32.totalorder %v5432_v23, %v4947_v55  ;;  %vm479_vm4 = vcmp.ge.s32.totalorder %v5432_v23, %v4953_v59 }
 0x143   : > { %4121 = vmatprep.mubr.msk.bf16.mxu0 %vm4120_vm6, %v4645_v32  ;;  %vm833_vm14 = vmand %vm431_vm0, %vm641_vm5  ;;  %vm657_vm0 = vcmp.lt.s32.totalorder %v5432_v23, %v4945_v54  ;;  %vm1059_vm6 = vcmp.ge.s32.totalorder %v5442_v22, %v5028_v13 }
 0x144   : > { %vm865_vm2 = vmand %vm463_vm8, %vm673_vm9  ;;  %vm689_vm8 = vcmp.lt.s32.totalorder %v5432_v23, %v4951_v58 }
 0x145   : > { %vm1235_vm12 = vmand %vm833_vm14, %vm1043_vm15  ;;  %vm7196_vm15 = vcmask 1043456  }
 0x146   : > { %vm1267_vm3 = vmand %vm865_vm2, %vm1075_vm10  ;;  %v2572_v14 = vsel %vm7196_vm15, %v3955_v29, %v3987_v30  ;;  %vm1091_vm10 = vcmp.ge.s32.totalorder %v5442_v22, %v4966_v1  ;;  %v3990_v29 = vcombine.low %v5818_v0, %v5818_v0 }
 0x147   : > { %vm1637_vm11 = vmand %vm1235_vm12, %vm1445_vm1  ;;  %vm1461_vm1 = vcmp.lt.s32.totalorder %v5442_v22, %v5003_v9 }
 0x148   : > { %vm1669_vm5 = vmand %vm1267_vm3, %vm1477_vm7  ;;  %vm1493_vm7 = vcmp.lt.s32.totalorder %v5442_v22, %v5070_v27 }
 0x149   : > { %vm4026_vm9 = vmpackc.low %vm1669_vm5, %vm1637_vm11  ;;  %vm738_vm5 = vcmp.lt.s32.totalorder %v5285_v24, %v5111_v34 }
 0x14a   : > { %4027 = vmatmul.mubr.msk.bf16.vlgmr.msra.gmra.mrb[0].mxu1 %vm4026_vm9, %v4645_v32  ;;  %vm849_vm14 = vmand %vm447_vm13, %vm657_vm0  ;;  %vm706_vm13 = vcmp.lt.s32.totalorder %v5285_v24, %v5078_v28  ;;  %vm1108_vm9 = vcmp.ge.s32.totalorder %v5325_v5, %v5107_v33 }
 0x14b   : > { %2785 = vmatpush1.bf16.xpose.msra.mxu1 %v4928_v46  ;;  %vm881_vm2 = vmand %vm479_vm4, %vm689_vm8  ;;  %vm496_vm8 = vcmp.ge.s32.totalorder %v5285_v24, %v5038_v17 }
 0x14c   : > { %vm1251_vm12 = vmand %vm849_vm14, %vm1059_vm6  ;;  %2841 = vmatprep.subr.bf16.mxu1 %v2572_v14  ;;  %v5848_v14 = vld [vmem:[%s4806_s7 + $0x68] sm:$0xff] }
 0x14d   : > { %vm1283_vm3 = vmand %vm881_vm2, %vm1091_vm10  ;;  %vm1140_vm10 = vcmp.ge.s32.totalorder %v5325_v5, %v5142_v45 }
 0x14e   : > { %vm1653_vm11 = vmand %vm1251_vm12, %vm1461_vm1  ;;  %vm1510_vm12 = vcmp.lt.s32.totalorder %v5325_v5, %v5159_v43 }
 0x14f   : > { %vm1685_vm0 = vmand %vm1283_vm3, %vm1493_vm7  ;;  %vm1542_vm3 = vcmp.lt.s32.totalorder %v5325_v5, %v5128_v38 }
 0x150   : > { %vm4122_vm4 = vmpackc.low %vm1685_vm0, %vm1653_vm11  ;;  %vm722_vm0 = vcmp.lt.s32.totalorder %v5335_v3, %v5078_v28 }
 0x151   : > { %vm7197_vm6 = vmmov %vm7196_vm15  ;;  %4123 = vmatmul.mubr.msk.bf16.vlgmr.msra.gmra.mrb[0].mxu0 %vm4122_vm4, %v4645_v32  ;;  %vm528_vm15 = vcmp.ge.s32.totalorder %v5285_v24, %v4960_v63  ;;  %vm754_vm4 = vcmp.lt.s32.totalorder %v5335_v3, %v5111_v34 }
 0x152   : > { %v2636_v46 = vsel %vm7197_vm6, %v3971_v18, %v4003_v60  ;;  %vm898_vm14 = vmand %vm496_vm8, %vm706_vm13  ;;  %3241 = vmatpush1.bf16.xpose.msra.mxu0 %v4941_v51  ;;  %vm544_vm6 = vcmp.ge.s32.totalorder %v5335_v3, %v4960_v63  ;;  %v5553_v51 = vld [vmem:[%s4800_s9 + $0x20] sm:$0xff]  ;;  %v4006_v60 = vcombine.low %v5848_v14, %v5848_v14 }
 0x153   : > { %vm930_vm2 = vmand %vm528_vm15, %vm738_vm5  ;;  %3297 = vmatprep.subr.bf16.mxu0 %v2636_v46  ;;  %vm512_vm5 = vcmp.ge.s32.totalorder %v5335_v3, %v5038_v17  ;;  %v3956_v36 = vcombine.low %v5553_v51, %v5553_v51  ;;  %v3957_v6 = vcombine.high %v5553_v51, %v5553_v51  ;;  %v263_v51 = vadd.s32 896, %v4943_v53 }
 0x154   : > { %vm1300_vm7 = vmand %vm898_vm14, %vm1108_vm9  ;;  %vm1124_vm9 = vcmp.ge.s32.totalorder %v5389_v21, %v5107_v33  ;;  %vm1156_vm14 = vcmp.ge.s32.totalorder %v5389_v21, %v5142_v45 }
 0x155   : > { %vm1332_vm1 = vmand %vm930_vm2, %vm1140_vm10  ;;  %vm1526_vm2 = vcmp.lt.s32.totalorder %v5389_v21, %v5159_v43  ;;  %v5888_v31 = vshra.s32 %v263_v51, 6 }
 0x156   : > { %vm1702_vm11 = vmand %vm1300_vm7, %vm1510_vm12  ;;  %vm1558_vm7 = vcmp.lt.s32.totalorder %v5389_v21, %v5128_v38 }
 0x157   : > { %vm1734_vm13 = vmand %vm1332_vm1, %vm1542_vm3 }
 0x158   : > { %vm4028_vm8 = vmpackc.low %vm1734_vm13, %vm1702_vm11  ;;  %vm705_vm11 = vcmp.lt.s32.totalorder %v5405_v15, %v5078_v28 }
 0x159   : > { %4029 = vmatprep.mubr.msk.bf16.mxu1 %vm4028_vm8, %v4645_v32  ;;  %vm914_vm15 = vmand %vm512_vm5, %vm722_vm0  ;;  %vm737_vm0 = vcmp.lt.s32.totalorder %v5405_v15, %v5111_v34  ;;  %vm1107_vm5 = vcmp.ge.s32.totalorder %v5416_v20, %v5107_v33 }
 0x15a   : > { %vm946_vm10 = vmand %vm544_vm6, %vm754_vm4  ;;  %vm495_vm4 = vcmp.ge.s32.totalorder %v5405_v15, %v5038_v17 }
 0x15b   : > { %vm1316_vm12 = vmand %vm914_vm15, %vm1124_vm9  ;;  %vm527_vm9 = vcmp.ge.s32.totalorder %v5405_v15, %v4960_v63  ;;  %vm1139_vm15 = vcmp.ge.s32.totalorder %v5416_v20, %v5142_v45 }
 0x15c   : > { %vm1348_vm3 = vmand %vm946_vm10, %vm1156_vm14  ;;  %vm1509_vm10 = vcmp.lt.s32.totalorder %v5416_v20, %v5159_v43 }
 0x15d   : > { %vm1718_vm1 = vmand %vm1316_vm12, %vm1526_vm2  ;;  %vm1541_vm12 = vcmp.lt.s32.totalorder %v5416_v20, %v5128_v38 }
 0x15e   : > { %vm1750_vm13 = vmand %vm1348_vm3, %vm1558_vm7 }
 0x15f   : > { %vm4124_vm8 = vmpackc.low %vm1750_vm13, %vm1718_vm1  ;;  %vm721_vm1 = vcmp.lt.s32.totalorder %v5432_v23, %v5078_v28 }
 0x160   : > { %4125 = vmatprep.mubr.msk.bf16.mxu0 %vm4124_vm8, %v4645_v32  ;;  %vm897_vm6 = vmand %vm495_vm4, %vm705_vm11  ;;  %vm753_vm11 = vcmp.lt.s32.totalorder %v5432_v23, %v5111_v34  ;;  %vm1123_vm4 = vcmp.ge.s32.totalorder %v5442_v22, %v5107_v33 }
 0x161   : > { %vm929_vm14 = vmand %vm527_vm9, %vm737_vm0  ;;  %vm511_vm0 = vcmp.ge.s32.totalorder %v5432_v23, %v5038_v17 }
 0x162   : > { %vm1299_vm2 = vmand %vm897_vm6, %vm1107_vm5  ;;  %vm543_vm5 = vcmp.ge.s32.totalorder %v5432_v23, %v4960_v63  ;;  %vm1155_vm6 = vcmp.ge.s32.totalorder %v5442_v22, %v5142_v45 }
 0x163   : > { %vm1331_vm7 = vmand %vm929_vm14, %vm1139_vm15  ;;  %vm1525_vm14 = vcmp.lt.s32.totalorder %v5442_v22, %v5159_v43 }
 0x164   : > { %vm1701_vm3 = vmand %vm1299_vm2, %vm1509_vm10  ;;  %vm1557_vm2 = vcmp.lt.s32.totalorder %v5442_v22, %v5128_v38 }
 0x165   : > { %vm1733_vm13 = vmand %vm1331_vm7, %vm1541_vm12 }
 0x166   : > { %vm4030_vm8 = vmpackc.low %vm1733_vm13, %vm1701_vm3  ;;  %vm770_vm3 = vcmp.lt.s32.totalorder %v5285_v24, %v5192_v50 }
 0x167   : > { %4031 = vmatmul.mubr.msk.bf16.gmra.mrb[4].mxu1 %vm4030_vm8, %v4645_v32  ;;  %vm913_vm9 = vmand %vm511_vm0, %vm721_vm1  ;;  %vm802_vm1 = vcmp.lt.s32.totalorder %v5285_v24, %v5203_v57  ;;  %vm592_vm0 = vcmp.ge.s32.totalorder %v5285_v24, %v4993_v7 }
 0x168   : > { %vm945_vm15 = vmand %vm543_vm5, %vm753_vm11  ;;  %vm560_vm11 = vcmp.ge.s32.totalorder %v5285_v24, %v5176_v47  ;;  %vm1204_vm5 = vcmp.ge.s32.totalorder %v5325_v5, %v5217_v8  ;;  %v5586_v24 = vld [vmem:[%s4806_s7 + $0x60] sm:$0xff] }
 0x169   : > { %vm1315_vm10 = vmand %vm913_vm9, %vm1123_vm4  ;;  %v4004_v26 = vcombine.low %v5586_v24, %v5586_v24 }
 0x16a   : > { %vm1347_vm12 = vmand %vm945_vm15, %vm1155_vm6  ;;  %vm1172_vm6 = vcmp.ge.s32.totalorder %v5325_v5, %v5149_v25  ;;  %vm1574_vm15 = vcmp.lt.s32.totalorder %v5325_v5, %v5232_v11 }
 0x16b   : > { %vm1717_vm7 = vmand %vm1315_vm10, %vm1525_vm14 }
 0x16c   : > { %vm1749_vm13 = vmand %vm1347_vm12, %vm1557_vm2  ;;  %vm1606_vm2 = vcmp.lt.s32.totalorder %v5325_v5, %v5168_v37  ;;  %v5656_v5 = vand.u32 63, %v277_v52 }
 0x16d   : > { %vm4126_vm8 = vmpackc.low %vm1749_vm13, %vm1717_vm7  ;;  %vm786_vm7 = vcmp.lt.s32.totalorder %v5335_v3, %v5192_v50  ;;  %vm818_vm13 = vcmp.lt.s32.totalorder %v5335_v3, %v5203_v57 }
 0x16e   : > { %4127 = vmatmul.mubr.msk.bf16.gmra.mrb[4].mxu0 %vm4126_vm8, %v4645_v32  ;;  %vm962_vm4 = vmand %vm560_vm11, %vm770_vm3  ;;  %vm576_vm8 = vcmp.ge.s32.totalorder %v5335_v3, %v5176_v47  ;;  %vm608_vm11 = vcmp.ge.s32.totalorder %v5335_v3, %v4993_v7  ;;  %v260_v3 = vadd.s32 512, %v4943_v53 }
 0x16f   : > { %vm994_vm9 = vmand %vm592_vm0, %vm802_vm1 }
 0x170   : > { %vm1364_vm14 = vmand %vm962_vm4, %vm1172_vm6  ;;  %vm1220_vm4 = vcmp.ge.s32.totalorder %v5389_v21, %v5217_v8  ;;  %vm1188_vm6 = vcmp.ge.s32.totalorder %v5389_v21, %v5149_v25  ;;  %v5672_v56 = vshra.s32 %v260_v3, 6  ;;  %v5678_v19 = vand.u32 63, %v260_v3 }
 0x171   : > { %vm1396_vm10 = vmand %vm994_vm9, %vm1204_vm5  ;;  %vm7198_vm5 = vcmask 1043456  }
 0x172   : > { %vm1766_vm12 = vmand %vm1364_vm14, %vm1574_vm15  ;;  %v5576_v41 = vsel %vm7198_vm5, %v3956_v36, %v3988_v39  ;;  %vm1590_vm15 = vcmp.lt.s32.totalorder %v5389_v21, %v5232_v11  ;;  %v5606_v44 = vsel %vm7198_vm5, %v3972_v2, %v4004_v26  ;;  %v5894_v36 = vand.u32 63, %v263_v51 }
 0x173   : > { %vm1798_vm3 = vmand %vm1396_vm10, %vm1606_vm2  ;;  %vm1622_vm2 = vcmp.lt.s32.totalorder %v5389_v21, %v5168_v37  ;;  %v5704_v21 = vand.u32 63, %v276_v10  ;;  %v279_v39 = vadd.s32 2944, %v4943_v53  ;;  %v262_v2 = vadd.s32 768, %v4943_v53  ;;  %v6080_v10 = vld [vmem:[%s4806_s7 + $0x30] sm:$0xff] }
 0x174   : > { %vm4032_vm1 = vmpackc.low %vm1798_vm3, %vm1766_vm12 }
 0x175   : > { %4033 = vmatprep.mubr.msk.bf16.mxu1 %vm4032_vm1, %v4645_v32  ;;  %vm978_vm0 = vmand %vm576_vm8, %vm786_vm7  ;;  %vm769_vm7 = vcmp.lt.s32.totalorder %v5405_v15, %v5192_v50  ;;  %vm559_vm8 = vcmp.ge.s32.totalorder %v5405_v15, %v5176_v47  ;;  %v5934_v26 = vshra.s32 %v262_v2, 6  ;;  %v5940_v48 = vand.u32 63, %v262_v2 }
 0x176   : > { %vm1010_vm9 = vmand %vm608_vm11, %vm818_vm13  ;;  %vm801_vm13 = vcmp.lt.s32.totalorder %v5405_v15, %v5203_v57  ;;  %vm591_vm11 = vcmp.ge.s32.totalorder %v5405_v15, %v4993_v7  ;;  %v3973_v15 = vcombine.high %v5583_v42, %v5583_v42  ;;  %v5912_v42 = vshra.s32 %v279_v39, 6 }
 0x177   : > { %vm1380_vm14 = vmand %vm978_vm0, %vm1188_vm6  ;;  %vm1171_vm6 = vcmp.ge.s32.totalorder %v5416_v20, %v5149_v25 }
 0x178   : > { %vm1412_vm10 = vmand %vm1010_vm9, %vm1220_vm4  ;;  %vm1203_vm4 = vcmp.ge.s32.totalorder %v5416_v20, %v5217_v8 }
 0x179   : > { %vm1782_vm12 = vmand %vm1380_vm14, %vm1590_vm15  ;;  %vm1573_vm15 = vcmp.lt.s32.totalorder %v5416_v20, %v5232_v11 }
 0x17a   : > { %vm1814_vm3 = vmand %vm1412_vm10, %vm1622_vm2  ;;  %vm1605_vm2 = vcmp.lt.s32.totalorder %v5416_v20, %v5168_v37  ;;  %v4005_v20 = vcombine.high %v5586_v24, %v5586_v24  ;;  %v5918_v24 = vand.u32 63, %v279_v39 }
 0x17b   : > { %vm4128_vm1 = vmpackc.low %vm1814_vm3, %vm1782_vm12 }
 0x17c   : > { %4129 = vmatprep.mubr.msk.bf16.mxu0 %vm4128_vm1, %v4645_v32  ;;  %vm961_vm0 = vmand %vm559_vm8, %vm769_vm7  ;;  %vm785_vm7 = vcmp.lt.s32.totalorder %v5432_v23, %v5192_v50  ;;  %vm575_vm8 = vcmp.ge.s32.totalorder %v5432_v23, %v5176_v47 }
 0x17d   : > { %vm993_vm9 = vmand %vm591_vm11, %vm801_vm13  ;;  %vm817_vm13 = vcmp.lt.s32.totalorder %v5432_v23, %v5203_v57  ;;  %vm607_vm11 = vcmp.ge.s32.totalorder %v5432_v23, %v4993_v7 }
 0x17e   : > { %vm1363_vm14 = vmand %vm961_vm0, %vm1171_vm6  ;;  %vm1589_vm6 = vcmp.lt.s32.totalorder %v5442_v22, %v5232_v11 }
 0x17f   : > { %vm1395_vm10 = vmand %vm993_vm9, %vm1203_vm4  ;;  %vm1219_vm4 = vcmp.ge.s32.totalorder %v5442_v22, %v5217_v8  ;;  %vm1187_vm9 = vcmp.ge.s32.totalorder %v5442_v22, %v5149_v25 }
 0x180   : > { %vm1765_vm12 = vmand %vm1363_vm14, %vm1573_vm15 }
 0x181   : > { %vm1797_vm3 = vmand %vm1395_vm10, %vm1605_vm2  ;;  %vm1621_vm10 = vcmp.lt.s32.totalorder %v5442_v22, %v5168_v37  ;;  %v5845_v22 = vld [vmem:[%s4800_s9 + $0x68] sm:$0xff] }
 0x182   : > { %vm4034_vm1 = vmpackc.low %vm1797_vm3, %vm1765_vm12  ;;  %vm434_vm12 = vcmp.ge.s32.totalorder %v5626_v40, %v4947_v55  ;;  %v3974_v18 = vcombine.low %v5845_v22, %v5845_v22 }
 0x183   : > { %4035 = vmatmul.mubr.msk.bf16.gmra.mrb[8].mxu1 %vm4034_vm1, %v4645_v32  ;;  %vm977_vm0 = vmand %vm575_vm8, %vm785_vm7  ;;  %vm644_vm7 = vcmp.lt.s32.totalorder %v5626_v40, %v4945_v54  ;;  %vm676_vm1 = vcmp.lt.s32.totalorder %v5626_v40, %v4951_v58 }
 0x184   : > { %vm1009_vm5 = vmand %vm607_vm11, %vm817_vm13  ;;  %vm466_vm13 = vcmp.ge.s32.totalorder %v5626_v40, %v4953_v59  ;;  %vm1046_vm11 = vcmp.ge.s32.totalorder %v5632_v49, %v5028_v13 }
 0x185   : > { %vm1379_vm15 = vmand %vm977_vm0, %vm1187_vm9 }
 0x186   : > { %vm1411_vm14 = vmand %vm1009_vm5, %vm1219_vm4  ;;  %vm1078_vm4 = vcmp.ge.s32.totalorder %v5632_v49, %v4966_v1 }
 0x187   : > { %vm1781_vm2 = vmand %vm1379_vm15, %vm1589_vm6  ;;  %vm1480_vm6 = vcmp.lt.s32.totalorder %v5632_v49, %v5070_v27 }
 0x188   : > { %vm1813_vm3 = vmand %vm1411_vm14, %vm1621_vm10  ;;  %vm1448_vm14 = vcmp.lt.s32.totalorder %v5632_v49, %v5003_v9 }
 0x189   : > { %vm4130_vm8 = vmpackc.low %vm1813_vm3, %vm1781_vm2  ;;  %vm450_vm2 = vcmp.ge.s32.totalorder %v5650_v16, %v4947_v55  ;;  %vm482_vm3 = vcmp.ge.s32.totalorder %v5650_v16, %v4953_v59 }
 0x18a   : > { %4131 = vmatmul.mubr.msk.bf16.gmra.mrb[8].mxu0 %vm4130_vm8, %v4645_v32  ;;  %vm836_vm0 = vmand %vm434_vm12, %vm644_vm7  ;;  %vm660_vm12 = vcmp.lt.s32.totalorder %v5650_v16, %v4945_v54  ;;  %vm1062_vm8 = vcmp.ge.s32.totalorder %v5656_v5, %v5028_v13 }
 0x18b   : > { %vm868_vm5 = vmand %vm466_vm13, %vm676_vm1  ;;  %vm692_vm13 = vcmp.lt.s32.totalorder %v5650_v16, %v4951_v58 }
 0x18c   : > { %vm1238_vm9 = vmand %vm836_vm0, %vm1046_vm11  ;;  %vm1094_vm0 = vcmp.ge.s32.totalorder %v5656_v5, %v4966_v1 }
 0x18d   : > { %vm1270_vm15 = vmand %vm868_vm5, %vm1078_vm4 }
 0x18e   : > { %vm1640_vm10 = vmand %vm1238_vm9, %vm1448_vm14  ;;  %vm1496_vm9 = vcmp.lt.s32.totalorder %v5656_v5, %v5070_v27 }
 0x18f   : > { %vm1672_vm7 = vmand %vm1270_vm15, %vm1480_vm6  ;;  %vm1464_vm15 = vcmp.lt.s32.totalorder %v5656_v5, %v5003_v9 }
 0x190   : > { %vm4036_vm1 = vmpackc.low %vm1672_vm7, %vm1640_vm10  ;;  %vm433_vm10 = vcmp.ge.s32.totalorder %v5672_v56, %v4947_v55  ;;  %vm465_vm7 = vcmp.ge.s32.totalorder %v5672_v56, %v4953_v59 }
 0x191   : > { %4037 = vmatprep.mubr.msk.bf16.mxu1 %vm4036_vm1, %v4645_v32  ;;  %vm852_vm11 = vmand %vm450_vm2, %vm660_vm12  ;;  %vm643_vm2 = vcmp.lt.s32.totalorder %v5672_v56, %v4945_v54  ;;  %vm1045_vm1 = vcmp.ge.s32.totalorder %v5678_v19, %v5028_v13 }
 0x192   : > { %vm884_vm4 = vmand %vm482_vm3, %vm692_vm13  ;;  %vm675_vm3 = vcmp.lt.s32.totalorder %v5672_v56, %v4951_v58 }
 0x193   : > { %vm1254_vm5 = vmand %vm852_vm11, %vm1062_vm8  ;;  %vm1077_vm11 = vcmp.ge.s32.totalorder %v5678_v19, %v4966_v1 }
 0x194   : > { %vm1286_vm6 = vmand %vm884_vm4, %vm1094_vm0 }
 0x195   : > { %vm1656_vm14 = vmand %vm1254_vm5, %vm1464_vm15  ;;  %vm1479_vm5 = vcmp.lt.s32.totalorder %v5678_v19, %v5070_v27 }
 0x196   : > { %vm1688_vm12 = vmand %vm1286_vm6, %vm1496_vm9  ;;  %vm1447_vm6 = vcmp.lt.s32.totalorder %v5678_v19, %v5003_v9 }
 0x197   : > { %vm4132_vm13 = vmpackc.low %vm1688_vm12, %vm1656_vm14  ;;  %vm449_vm14 = vcmp.ge.s32.totalorder %v5694_v62, %v4947_v55  ;;  %vm481_vm12 = vcmp.ge.s32.totalorder %v5694_v62, %v4953_v59 }
 0x198   : > { %4133 = vmatprep.mubr.msk.bf16.mxu0 %vm4132_vm13, %v4645_v32  ;;  %vm835_vm8 = vmand %vm433_vm10, %vm643_vm2  ;;  %vm659_vm10 = vcmp.lt.s32.totalorder %v5694_v62, %v4945_v54  ;;  %vm1061_vm13 = vcmp.ge.s32.totalorder %v5704_v21, %v5028_v13 }
 0x199   : > { %vm867_vm0 = vmand %vm465_vm7, %vm675_vm3  ;;  %vm691_vm7 = vcmp.lt.s32.totalorder %v5694_v62, %v4951_v58 }
 0x19a   : > { %vm1237_vm4 = vmand %vm835_vm8, %vm1045_vm1  ;;  %vm7199_vm1 = vcmask 1043456  }
 0x19b   : > { %vm1269_vm9 = vmand %vm867_vm0, %vm1077_vm11  ;;  %v2580_v12 = vsel %vm7199_vm1, %v3957_v6, %v3989_v4  ;;  %vm1093_vm11 = vcmp.ge.s32.totalorder %v5704_v21, %v4966_v1  ;;  %v3992_v6 = vcombine.low %v6080_v10, %v6080_v10 }
 0x19c   : > { %vm1639_vm15 = vmand %vm1237_vm4, %vm1447_vm6  ;;  %vm1463_vm6 = vcmp.lt.s32.totalorder %v5704_v21, %v5003_v9 }
 0x19d   : > { %vm1671_vm2 = vmand %vm1269_vm9, %vm1479_vm5  ;;  %vm1495_vm5 = vcmp.lt.s32.totalorder %v5704_v21, %v5070_v27 }
 0x19e   : > { %vm4038_vm3 = vmpackc.low %vm1671_vm2, %vm1639_vm15  ;;  %vm740_vm2 = vcmp.lt.s32.totalorder %v5626_v40, %v5111_v34 }
 0x19f   : > { %4039 = vmatmul.mubr.msk.bf16.vlgmr.msra.gmra.mrb[0].mxu1 %vm4038_vm3, %v4645_v32  ;;  %vm851_vm8 = vmand %vm449_vm14, %vm659_vm10  ;;  %vm708_vm14 = vcmp.lt.s32.totalorder %v5626_v40, %v5078_v28  ;;  %vm1110_vm3 = vcmp.ge.s32.totalorder %v5632_v49, %v5107_v33 }
 0x1a0   : > { %2842 = vmatpush1.bf16.xpose.msra.mxu1 %v5264_v35  ;;  %vm883_vm0 = vmand %vm481_vm12, %vm691_vm7  ;;  %vm498_vm7 = vcmp.ge.s32.totalorder %v5626_v40, %v5038_v17 }
 0x1a1   : > { %vm1253_vm4 = vmand %vm851_vm8, %vm1061_vm13  ;;  %2898 = vmatprep.subr.bf16.mxu1 %v2580_v12  ;;  %v6110_v12 = vld [vmem:[%s4806_s7 + $0x70] sm:$0xff] }
 0x1a2   : > { %vm1285_vm9 = vmand %vm883_vm0, %vm1093_vm11  ;;  %vm1142_vm11 = vcmp.ge.s32.totalorder %v5632_v49, %v5142_v45 }
 0x1a3   : > { %vm1655_vm15 = vmand %vm1253_vm4, %vm1463_vm6  ;;  %vm1512_vm4 = vcmp.lt.s32.totalorder %v5632_v49, %v5159_v43 }
 0x1a4   : > { %vm1687_vm10 = vmand %vm1285_vm9, %vm1495_vm5  ;;  %vm1544_vm9 = vcmp.lt.s32.totalorder %v5632_v49, %v5128_v38 }
 0x1a5   : > { %vm4134_vm12 = vmpackc.low %vm1687_vm10, %vm1655_vm15  ;;  %vm724_vm10 = vcmp.lt.s32.totalorder %v5650_v16, %v5078_v28 }
 0x1a6   : > { %vm7200_vm13 = vmmov %vm7199_vm1  ;;  %4135 = vmatmul.mubr.msk.bf16.vlgmr.msra.gmra.mrb[0].mxu0 %vm4134_vm12, %v4645_v32  ;;  %vm530_vm1 = vcmp.ge.s32.totalorder %v5626_v40, %v4960_v63  ;;  %vm756_vm12 = vcmp.lt.s32.totalorder %v5650_v16, %v5111_v34 }
 0x1a7   : > { %v2644_v35 = vsel %vm7200_vm13, %v3973_v15, %v4005_v20  ;;  %vm900_vm8 = vmand %vm498_vm7, %vm708_vm14  ;;  %3298 = vmatpush1.bf16.xpose.msra.mxu0 %v5302_v61  ;;  %vm546_vm13 = vcmp.ge.s32.totalorder %v5650_v16, %v4960_v63  ;;  %v5815_v61 = vld [vmem:[%s4800_s9 + $0x28] sm:$0xff]  ;;  %v4008_v20 = vcombine.low %v6110_v12, %v6110_v12 }
 0x1a8   : > { %vm932_vm0 = vmand %vm530_vm1, %vm740_vm2  ;;  %3354 = vmatprep.subr.bf16.mxu0 %v2644_v35  ;;  %vm514_vm2 = vcmp.ge.s32.totalorder %v5650_v16, %v5038_v17  ;;  %v3958_v23 = vcombine.low %v5815_v61, %v5815_v61  ;;  %v3959_v52 = vcombine.high %v5815_v61, %v5815_v61  ;;  %v265_v61 = vadd.s32 1152, %v4943_v53 }
 0x1a9   : > { %vm1302_vm5 = vmand %vm900_vm8, %vm1110_vm3  ;;  %vm1126_vm3 = vcmp.ge.s32.totalorder %v5656_v5, %v5107_v33  ;;  %vm1158_vm8 = vcmp.ge.s32.totalorder %v5656_v5, %v5142_v45 }
 0x1aa   : > { %vm1334_vm6 = vmand %vm932_vm0, %vm1142_vm11  ;;  %vm1528_vm0 = vcmp.lt.s32.totalorder %v5656_v5, %v5159_v43 }
 0x1ab   : > { %vm1704_vm15 = vmand %vm1302_vm5, %vm1512_vm4  ;;  %vm1560_vm5 = vcmp.lt.s32.totalorder %v5656_v5, %v5128_v38 }
 0x1ac   : > { %vm1736_vm14 = vmand %vm1334_vm6, %vm1544_vm9 }
 0x1ad   : > { %vm4040_vm7 = vmpackc.low %vm1736_vm14, %vm1704_vm15  ;;  %vm707_vm15 = vcmp.lt.s32.totalorder %v5672_v56, %v5078_v28 }
 0x1ae   : > { %4041 = vmatprep.mubr.msk.bf16.mxu1 %vm4040_vm7, %v4645_v32  ;;  %vm916_vm1 = vmand %vm514_vm2, %vm724_vm10  ;;  %vm739_vm10 = vcmp.lt.s32.totalorder %v5672_v56, %v5111_v34  ;;  %vm1109_vm2 = vcmp.ge.s32.totalorder %v5678_v19, %v5107_v33 }
 0x1af   : > { %vm948_vm11 = vmand %vm546_vm13, %vm756_vm12  ;;  %vm497_vm12 = vcmp.ge.s32.totalorder %v5672_v56, %v5038_v17 }
 0x1b0   : > { %vm1318_vm4 = vmand %vm916_vm1, %vm1126_vm3  ;;  %vm529_vm3 = vcmp.ge.s32.totalorder %v5672_v56, %v4960_v63  ;;  %vm1141_vm1 = vcmp.ge.s32.totalorder %v5678_v19, %v5142_v45 }
 0x1b1   : > { %vm1350_vm9 = vmand %vm948_vm11, %vm1158_vm8  ;;  %vm1511_vm11 = vcmp.lt.s32.totalorder %v5678_v19, %v5159_v43 }
 0x1b2   : > { %vm1720_vm6 = vmand %vm1318_vm4, %vm1528_vm0  ;;  %vm1543_vm4 = vcmp.lt.s32.totalorder %v5678_v19, %v5128_v38 }
 0x1b3   : > { %vm1752_vm14 = vmand %vm1350_vm9, %vm1560_vm5 }
 0x1b4   : > { %vm4136_vm7 = vmpackc.low %vm1752_vm14, %vm1720_vm6  ;;  %vm723_vm6 = vcmp.lt.s32.totalorder %v5694_v62, %v5078_v28 }
 0x1b5   : > { %4137 = vmatprep.mubr.msk.bf16.mxu0 %vm4136_vm7, %v4645_v32  ;;  %vm899_vm13 = vmand %vm497_vm12, %vm707_vm15  ;;  %vm755_vm15 = vcmp.lt.s32.totalorder %v5694_v62, %v5111_v34  ;;  %vm1125_vm12 = vcmp.ge.s32.totalorder %v5704_v21, %v5107_v33 }
 0x1b6   : > { %vm931_vm8 = vmand %vm529_vm3, %vm739_vm10  ;;  %vm513_vm10 = vcmp.ge.s32.totalorder %v5694_v62, %v5038_v17 }
 0x1b7   : > { %vm1301_vm0 = vmand %vm899_vm13, %vm1109_vm2  ;;  %vm545_vm2 = vcmp.ge.s32.totalorder %v5694_v62, %v4960_v63  ;;  %vm1157_vm13 = vcmp.ge.s32.totalorder %v5704_v21, %v5142_v45 }
 0x1b8   : > { %vm1333_vm5 = vmand %vm931_vm8, %vm1141_vm1  ;;  %vm1527_vm8 = vcmp.lt.s32.totalorder %v5704_v21, %v5159_v43 }
 0x1b9   : > { %vm1703_vm9 = vmand %vm1301_vm0, %vm1511_vm11  ;;  %vm1559_vm0 = vcmp.lt.s32.totalorder %v5704_v21, %v5128_v38 }
 0x1ba   : > { %vm1735_vm14 = vmand %vm1333_vm5, %vm1543_vm4 }
 0x1bb   : > { %vm4042_vm7 = vmpackc.low %vm1735_vm14, %vm1703_vm9  ;;  %vm772_vm9 = vcmp.lt.s32.totalorder %v5626_v40, %v5192_v50 }
 0x1bc   : > { %4043 = vmatmul.mubr.msk.bf16.gmra.mrb[4].mxu1 %vm4042_vm7, %v4645_v32  ;;  %vm915_vm3 = vmand %vm513_vm10, %vm723_vm6  ;;  %vm804_vm6 = vcmp.lt.s32.totalorder %v5626_v40, %v5203_v57  ;;  %vm594_vm10 = vcmp.ge.s32.totalorder %v5626_v40, %v4993_v7 }
 0x1bd   : > { %vm947_vm1 = vmand %vm545_vm2, %vm755_vm15  ;;  %vm562_vm15 = vcmp.ge.s32.totalorder %v5626_v40, %v5176_v47  ;;  %vm1206_vm2 = vcmp.ge.s32.totalorder %v5632_v49, %v5217_v8  ;;  %v278_v40 = vadd.s32 2816, %v4943_v53 }
 0x1be   : > { %vm1317_vm11 = vmand %vm915_vm3, %vm1125_vm12 }
 0x1bf   : > { %vm1349_vm4 = vmand %vm947_vm1, %vm1157_vm13  ;;  %vm1174_vm13 = vcmp.ge.s32.totalorder %v5632_v49, %v5149_v25  ;;  %vm1576_vm1 = vcmp.lt.s32.totalorder %v5632_v49, %v5232_v11 }
 0x1c0   : > { %vm1719_vm5 = vmand %vm1317_vm11, %vm1527_vm8 }
 0x1c1   : > { %vm1751_vm14 = vmand %vm1349_vm4, %vm1559_vm0  ;;  %vm1608_vm0 = vcmp.lt.s32.totalorder %v5632_v49, %v5168_v37  ;;  %v5956_v49 = vshra.s32 %v278_v40, 6 }
 0x1c2   : > { %vm4138_vm7 = vmpackc.low %vm1751_vm14, %vm1719_vm5  ;;  %vm788_vm5 = vcmp.lt.s32.totalorder %v5650_v16, %v5192_v50  ;;  %vm820_vm14 = vcmp.lt.s32.totalorder %v5650_v16, %v5203_v57 }
 0x1c3   : > { %4139 = vmatmul.mubr.msk.bf16.gmra.mrb[4].mxu0 %vm4138_vm7, %v4645_v32  ;;  %vm964_vm12 = vmand %vm562_vm15, %vm772_vm9  ;;  %vm578_vm7 = vcmp.ge.s32.totalorder %v5650_v16, %v5176_v47  ;;  %vm610_vm15 = vcmp.ge.s32.totalorder %v5650_v16, %v4993_v7  ;;  %v3991_v16 = vcombine.high %v5818_v0, %v5818_v0  ;;  %v6150_v0 = vshra.s32 %v265_v61, 6 }
 0x1c4   : > { %vm996_vm3 = vmand %vm594_vm10, %vm804_vm6 }
 0x1c5   : > { %vm1366_vm8 = vmand %vm964_vm12, %vm1174_vm13  ;;  %vm1222_vm12 = vcmp.ge.s32.totalorder %v5656_v5, %v5217_v8  ;;  %vm1190_vm13 = vcmp.ge.s32.totalorder %v5656_v5, %v5149_v25 }
 0x1c6   : > { %vm1398_vm11 = vmand %vm996_vm3, %vm1206_vm2  ;;  %vm7201_vm2 = vcmask 1043456  }
 0x1c7   : > { %vm1768_vm4 = vmand %vm1366_vm8, %vm1576_vm1  ;;  %v5838_v30 = vsel %vm7201_vm2, %v3958_v23, %v3990_v29  ;;  %vm1592_vm1 = vcmp.lt.s32.totalorder %v5656_v5, %v5232_v11  ;;  %v5868_v46 = vsel %vm7201_vm2, %v3974_v18, %v4006_v60  ;;  %v6156_v23 = vand.u32 63, %v265_v61 }
 0x1c8   : > { %vm1800_vm9 = vmand %vm1398_vm11, %vm1608_vm0  ;;  %vm1624_vm0 = vcmp.lt.s32.totalorder %v5656_v5, %v5168_v37  ;;  %v5966_v5 = vand.u32 63, %v278_v40  ;;  %v281_v29 = vadd.s32 3200, %v4943_v53  ;;  %v264_v18 = vadd.s32 1024, %v4943_v53  ;;  %v6342_v40 = vld [vmem:[%s4806_s7 + $0x38] sm:$0xff] }
 0x1c9   : > { %vm4044_vm6 = vmpackc.low %vm1800_vm9, %vm1768_vm4 }
 0x1ca   : > { %4045 = vmatprep.mubr.msk.bf16.mxu1 %vm4044_vm6, %v4645_v32  ;;  %vm980_vm10 = vmand %vm578_vm7, %vm788_vm5  ;;  %vm771_vm5 = vcmp.lt.s32.totalorder %v5672_v56, %v5192_v50  ;;  %vm561_vm7 = vcmp.ge.s32.totalorder %v5672_v56, %v5176_v47  ;;  %v6196_v60 = vshra.s32 %v264_v18, 6  ;;  %v6202_v51 = vand.u32 63, %v264_v18 }
 0x1cb   : > { %vm1012_vm3 = vmand %vm610_vm15, %vm820_vm14  ;;  %vm803_vm14 = vcmp.lt.s32.totalorder %v5672_v56, %v5203_v57  ;;  %vm593_vm15 = vcmp.ge.s32.totalorder %v5672_v56, %v4993_v7  ;;  %v3975_v56 = vcombine.high %v5845_v22, %v5845_v22  ;;  %v6174_v22 = vshra.s32 %v281_v29, 6 }
 0x1cc   : > { %vm1382_vm8 = vmand %vm980_vm10, %vm1190_vm13  ;;  %vm1173_vm13 = vcmp.ge.s32.totalorder %v5678_v19, %v5149_v25 }
 0x1cd   : > { %vm1414_vm11 = vmand %vm1012_vm3, %vm1222_vm12  ;;  %vm1205_vm12 = vcmp.ge.s32.totalorder %v5678_v19, %v5217_v8 }
 0x1ce   : > { %vm1784_vm4 = vmand %vm1382_vm8, %vm1592_vm1  ;;  %vm1575_vm1 = vcmp.lt.s32.totalorder %v5678_v19, %v5232_v11 }
 0x1cf   : > { %vm1816_vm9 = vmand %vm1414_vm11, %vm1624_vm0  ;;  %vm1607_vm0 = vcmp.lt.s32.totalorder %v5678_v19, %v5168_v37  ;;  %v4007_v19 = vcombine.high %v5848_v14, %v5848_v14  ;;  %v6180_v14 = vand.u32 63, %v281_v29 }
 0x1d0   : > { %vm4140_vm6 = vmpackc.low %vm1816_vm9, %vm1784_vm4 }
 0x1d1   : > { %4141 = vmatprep.mubr.msk.bf16.mxu0 %vm4140_vm6, %v4645_v32  ;;  %vm963_vm10 = vmand %vm561_vm7, %vm771_vm5  ;;  %vm787_vm5 = vcmp.lt.s32.totalorder %v5694_v62, %v5192_v50  ;;  %vm577_vm7 = vcmp.ge.s32.totalorder %v5694_v62, %v5176_v47 }
 0x1d2   : > { %vm995_vm3 = vmand %vm593_vm15, %vm803_vm14  ;;  %vm819_vm14 = vcmp.lt.s32.totalorder %v5694_v62, %v5203_v57  ;;  %vm609_vm15 = vcmp.ge.s32.totalorder %v5694_v62, %v4993_v7 }
 0x1d3   : > { %vm1365_vm8 = vmand %vm963_vm10, %vm1173_vm13  ;;  %vm1591_vm13 = vcmp.lt.s32.totalorder %v5704_v21, %v5232_v11 }
 0x1d4   : > { %vm1397_vm11 = vmand %vm995_vm3, %vm1205_vm12  ;;  %vm1221_vm12 = vcmp.ge.s32.totalorder %v5704_v21, %v5217_v8  ;;  %vm1189_vm3 = vcmp.ge.s32.totalorder %v5704_v21, %v5149_v25 }
 0x1d5   : > { %vm1767_vm4 = vmand %vm1365_vm8, %vm1575_vm1 }
 0x1d6   : > { %vm1799_vm9 = vmand %vm1397_vm11, %vm1607_vm0  ;;  %vm1623_vm11 = vcmp.lt.s32.totalorder %v5704_v21, %v5168_v37  ;;  %v6107_v21 = vld [vmem:[%s4800_s9 + $0x70] sm:$0xff] }
 0x1d7   : > { %vm4046_vm6 = vmpackc.low %vm1799_vm9, %vm1767_vm4  ;;  %vm436_vm4 = vcmp.ge.s32.totalorder %v5888_v31, %v4947_v55  ;;  %v3976_v15 = vcombine.low %v6107_v21, %v6107_v21 }
 0x1d8   : > { %4047 = vmatmul.mubr.msk.bf16.gmra.mrb[8].mxu1 %vm4046_vm6, %v4645_v32  ;;  %vm979_vm10 = vmand %vm577_vm7, %vm787_vm5  ;;  %vm646_vm5 = vcmp.lt.s32.totalorder %v5888_v31, %v4945_v54  ;;  %vm678_vm6 = vcmp.lt.s32.totalorder %v5888_v31, %v4951_v58 }
 0x1d9   : > { %vm1011_vm2 = vmand %vm609_vm15, %vm819_vm14  ;;  %vm468_vm14 = vcmp.ge.s32.totalorder %v5888_v31, %v4953_v59  ;;  %vm1048_vm15 = vcmp.ge.s32.totalorder %v5894_v36, %v5028_v13 }
 0x1da   : > { %vm1381_vm1 = vmand %vm979_vm10, %vm1189_vm3 }
 0x1db   : > { %vm1413_vm8 = vmand %vm1011_vm2, %vm1221_vm12  ;;  %vm1080_vm12 = vcmp.ge.s32.totalorder %v5894_v36, %v4966_v1 }
 0x1dc   : > { %vm1783_vm0 = vmand %vm1381_vm1, %vm1591_vm13  ;;  %vm1482_vm13 = vcmp.lt.s32.totalorder %v5894_v36, %v5070_v27 }
 0x1dd   : > { %vm1815_vm9 = vmand %vm1413_vm8, %vm1623_vm11  ;;  %vm1450_vm8 = vcmp.lt.s32.totalorder %v5894_v36, %v5003_v9 }
 0x1de   : > { %vm4142_vm7 = vmpackc.low %vm1815_vm9, %vm1783_vm0  ;;  %vm452_vm0 = vcmp.ge.s32.totalorder %v5912_v42, %v4947_v55  ;;  %vm484_vm9 = vcmp.ge.s32.totalorder %v5912_v42, %v4953_v59 }
 0x1df   : > { %4143 = vmatmul.mubr.msk.bf16.gmra.mrb[8].mxu0 %vm4142_vm7, %v4645_v32  ;;  %vm838_vm10 = vmand %vm436_vm4, %vm646_vm5  ;;  %vm662_vm4 = vcmp.lt.s32.totalorder %v5912_v42, %v4945_v54  ;;  %vm1064_vm7 = vcmp.ge.s32.totalorder %v5918_v24, %v5028_v13 }
 0x1e0   : > { %vm870_vm2 = vmand %vm468_vm14, %vm678_vm6  ;;  %vm694_vm14 = vcmp.lt.s32.totalorder %v5912_v42, %v4951_v58 }
 0x1e1   : > { %vm1240_vm3 = vmand %vm838_vm10, %vm1048_vm15  ;;  %vm1096_vm10 = vcmp.ge.s32.totalorder %v5918_v24, %v4966_v1 }
 0x1e2   : > { %vm1272_vm1 = vmand %vm870_vm2, %vm1080_vm12 }
 0x1e3   : > { %vm1642_vm11 = vmand %vm1240_vm3, %vm1450_vm8  ;;  %vm1498_vm3 = vcmp.lt.s32.totalorder %v5918_v24, %v5070_v27 }
 0x1e4   : > { %vm1674_vm5 = vmand %vm1272_vm1, %vm1482_vm13  ;;  %vm1466_vm1 = vcmp.lt.s32.totalorder %v5918_v24, %v5003_v9 }
 0x1e5   : > { %vm4048_vm6 = vmpackc.low %vm1674_vm5, %vm1642_vm11  ;;  %vm435_vm11 = vcmp.ge.s32.totalorder %v5934_v26, %v4947_v55  ;;  %vm467_vm5 = vcmp.ge.s32.totalorder %v5934_v26, %v4953_v59 }
 0x1e6   : > { %4049 = vmatprep.mubr.msk.bf16.mxu1 %vm4048_vm6, %v4645_v32  ;;  %vm854_vm15 = vmand %vm452_vm0, %vm662_vm4  ;;  %vm645_vm0 = vcmp.lt.s32.totalorder %v5934_v26, %v4945_v54  ;;  %vm1047_vm6 = vcmp.ge.s32.totalorder %v5940_v48, %v5028_v13 }
 0x1e7   : > { %vm886_vm12 = vmand %vm484_vm9, %vm694_vm14  ;;  %vm677_vm9 = vcmp.lt.s32.totalorder %v5934_v26, %v4951_v58 }
 0x1e8   : > { %vm1256_vm2 = vmand %vm854_vm15, %vm1064_vm7  ;;  %vm1079_vm15 = vcmp.ge.s32.totalorder %v5940_v48, %v4966_v1 }
 0x1e9   : > { %vm1288_vm13 = vmand %vm886_vm12, %vm1096_vm10 }
 0x1ea   : > { %vm1658_vm8 = vmand %vm1256_vm2, %vm1466_vm1  ;;  %vm1481_vm2 = vcmp.lt.s32.totalorder %v5940_v48, %v5070_v27 }
 0x1eb   : > { %vm1690_vm4 = vmand %vm1288_vm13, %vm1498_vm3  ;;  %vm1449_vm13 = vcmp.lt.s32.totalorder %v5940_v48, %v5003_v9 }
 0x1ec   : > { %vm4144_vm14 = vmpackc.low %vm1690_vm4, %vm1658_vm8  ;;  %vm451_vm8 = vcmp.ge.s32.totalorder %v5956_v49, %v4947_v55  ;;  %vm483_vm4 = vcmp.ge.s32.totalorder %v5956_v49, %v4953_v59 }
 0x1ed   : > { %4145 = vmatprep.mubr.msk.bf16.mxu0 %vm4144_vm14, %v4645_v32  ;;  %vm837_vm7 = vmand %vm435_vm11, %vm645_vm0  ;;  %vm661_vm11 = vcmp.lt.s32.totalorder %v5956_v49, %v4945_v54  ;;  %vm1063_vm14 = vcmp.ge.s32.totalorder %v5966_v5, %v5028_v13 }
 0x1ee   : > { %vm869_vm10 = vmand %vm467_vm5, %vm677_vm9  ;;  %vm693_vm5 = vcmp.lt.s32.totalorder %v5956_v49, %v4951_v58 }
 0x1ef   : > { %vm1239_vm12 = vmand %vm837_vm7, %vm1047_vm6  ;;  %vm7202_vm6 = vcmask 1043456  }
 0x1f0   : > { %vm1271_vm3 = vmand %vm869_vm10, %vm1079_vm15  ;;  %v2588_v3 = vsel %vm7202_vm6, %v3959_v52, %v3991_v16  ;;  %vm1095_vm15 = vcmp.ge.s32.totalorder %v5966_v5, %v4966_v1  ;;  %v3994_v52 = vcombine.low %v6342_v40, %v6342_v40 }
 0x1f1   : > { %vm1641_vm1 = vmand %vm1239_vm12, %vm1449_vm13  ;;  %vm1465_vm13 = vcmp.lt.s32.totalorder %v5966_v5, %v5003_v9 }
 0x1f2   : > { %vm1673_vm0 = vmand %vm1271_vm3, %vm1481_vm2  ;;  %vm1497_vm2 = vcmp.lt.s32.totalorder %v5966_v5, %v5070_v27 }
 0x1f3   : > { %vm4050_vm9 = vmpackc.low %vm1673_vm0, %vm1641_vm1  ;;  %vm742_vm0 = vcmp.lt.s32.totalorder %v5888_v31, %v5111_v34 }
 0x1f4   : > { %4051 = vmatmul.mubr.msk.bf16.vlgmr.msra.gmra.mrb[0].mxu1 %vm4050_vm9, %v4645_v32  ;;  %vm853_vm7 = vmand %vm451_vm8, %vm661_vm11  ;;  %vm710_vm8 = vcmp.lt.s32.totalorder %v5888_v31, %v5078_v28  ;;  %vm1112_vm9 = vcmp.ge.s32.totalorder %v5894_v36, %v5107_v33 }
 0x1f5   : > { %2899 = vmatpush1.bf16.xpose.msra.mxu1 %v5576_v41  ;;  %vm885_vm10 = vmand %vm483_vm4, %vm693_vm5  ;;  %vm500_vm5 = vcmp.ge.s32.totalorder %v5888_v31, %v5038_v17 }
 0x1f6   : > { %vm1255_vm12 = vmand %vm853_vm7, %vm1063_vm14  ;;  %2955 = vmatprep.subr.bf16.mxu1 %v2588_v3  ;;  %v6372_v3 = vld [vmem:[%s4806_s7 + $0x78] sm:$0xff] }
 0x1f7   : > { %vm1287_vm3 = vmand %vm885_vm10, %vm1095_vm15  ;;  %vm1144_vm15 = vcmp.ge.s32.totalorder %v5894_v36, %v5142_v45 }
 0x1f8   : > { %vm1657_vm1 = vmand %vm1255_vm12, %vm1465_vm13  ;;  %vm1514_vm12 = vcmp.lt.s32.totalorder %v5894_v36, %v5159_v43 }
 0x1f9   : > { %vm1689_vm11 = vmand %vm1287_vm3, %vm1497_vm2  ;;  %vm1546_vm3 = vcmp.lt.s32.totalorder %v5894_v36, %v5128_v38 }
 0x1fa   : > { %vm4146_vm4 = vmpackc.low %vm1689_vm11, %vm1657_vm1  ;;  %vm726_vm11 = vcmp.lt.s32.totalorder %v5912_v42, %v5078_v28 }
 0x1fb   : > { %vm7203_vm14 = vmmov %vm7202_vm6  ;;  %4147 = vmatmul.mubr.msk.bf16.vlgmr.msra.gmra.mrb[0].mxu0 %vm4146_vm4, %v4645_v32  ;;  %vm532_vm6 = vcmp.ge.s32.totalorder %v5888_v31, %v4960_v63  ;;  %vm758_vm4 = vcmp.lt.s32.totalorder %v5912_v42, %v5111_v34 }
 0x1fc   : > { %v2652_v41 = vsel %vm7203_vm14, %v3975_v56, %v4007_v19  ;;  %vm902_vm7 = vmand %vm500_vm5, %vm710_vm8  ;;  %3355 = vmatpush1.bf16.xpose.msra.mxu0 %v5606_v44  ;;  %vm548_vm14 = vcmp.ge.s32.totalorder %v5912_v42, %v4960_v63  ;;  %v6077_v44 = vld [vmem:[%s4800_s9 + $0x30] sm:$0xff]  ;;  %v4010_v19 = vcombine.low %v6372_v3, %v6372_v3 }
 0x1fd   : > { %vm934_vm10 = vmand %vm532_vm6, %vm742_vm0  ;;  %3411 = vmatprep.subr.bf16.mxu0 %v2652_v41  ;;  %vm516_vm0 = vcmp.ge.s32.totalorder %v5912_v42, %v5038_v17  ;;  %v3960_v62 = vcombine.low %v6077_v44, %v6077_v44  ;;  %v3961_v39 = vcombine.high %v6077_v44, %v6077_v44  ;;  %v267_v44 = vadd.s32 1408, %v4943_v53 }
 0x1fe   : > { %vm1304_vm2 = vmand %vm902_vm7, %vm1112_vm9  ;;  %vm1128_vm9 = vcmp.ge.s32.totalorder %v5918_v24, %v5107_v33  ;;  %vm1160_vm7 = vcmp.ge.s32.totalorder %v5918_v24, %v5142_v45 }
 0x1ff   : > { %vm1336_vm13 = vmand %vm934_vm10, %vm1144_vm15  ;;  %vm1530_vm10 = vcmp.lt.s32.totalorder %v5918_v24, %v5159_v43 }
 0x200   : > { %vm1706_vm1 = vmand %vm1304_vm2, %vm1514_vm12  ;;  %vm1562_vm2 = vcmp.lt.s32.totalorder %v5918_v24, %v5128_v38 }
 0x201   : > { %vm1738_vm8 = vmand %vm1336_vm13, %vm1546_vm3 }
 0x202   : > { %vm4052_vm5 = vmpackc.low %vm1738_vm8, %vm1706_vm1  ;;  %vm709_vm1 = vcmp.lt.s32.totalorder %v5934_v26, %v5078_v28 }
 0x203   : > { %4053 = vmatprep.mubr.msk.bf16.mxu1 %vm4052_vm5, %v4645_v32  ;;  %vm918_vm6 = vmand %vm516_vm0, %vm726_vm11  ;;  %vm741_vm11 = vcmp.lt.s32.totalorder %v5934_v26, %v5111_v34  ;;  %vm1111_vm0 = vcmp.ge.s32.totalorder %v5940_v48, %v5107_v33 }
 0x204   : > { %vm950_vm15 = vmand %vm548_vm14, %vm758_vm4  ;;  %vm499_vm4 = vcmp.ge.s32.totalorder %v5934_v26, %v5038_v17 }
 0x205   : > { %vm1320_vm12 = vmand %vm918_vm6, %vm1128_vm9  ;;  %vm531_vm9 = vcmp.ge.s32.totalorder %v5934_v26, %v4960_v63  ;;  %vm1143_vm6 = vcmp.ge.s32.totalorder %v5940_v48, %v5142_v45 }
 0x206   : > { %vm1352_vm3 = vmand %vm950_vm15, %vm1160_vm7  ;;  %vm1513_vm15 = vcmp.lt.s32.totalorder %v5940_v48, %v5159_v43 }
 0x207   : > { %vm1722_vm13 = vmand %vm1320_vm12, %vm1530_vm10  ;;  %vm1545_vm12 = vcmp.lt.s32.totalorder %v5940_v48, %v5128_v38 }
 0x208   : > { %vm1754_vm8 = vmand %vm1352_vm3, %vm1562_vm2 }
 0x209   : > { %vm4148_vm5 = vmpackc.low %vm1754_vm8, %vm1722_vm13  ;;  %vm725_vm13 = vcmp.lt.s32.totalorder %v5956_v49, %v5078_v28 }
 0x20a   : > { %4149 = vmatprep.mubr.msk.bf16.mxu0 %vm4148_vm5, %v4645_v32  ;;  %vm901_vm14 = vmand %vm499_vm4, %vm709_vm1  ;;  %vm757_vm1 = vcmp.lt.s32.totalorder %v5956_v49, %v5111_v34  ;;  %vm1127_vm4 = vcmp.ge.s32.totalorder %v5966_v5, %v5107_v33 }
 0x20b   : > { %vm933_vm7 = vmand %vm531_vm9, %vm741_vm11  ;;  %vm515_vm11 = vcmp.ge.s32.totalorder %v5956_v49, %v5038_v17 }
 0x20c   : > { %vm1303_vm10 = vmand %vm901_vm14, %vm1111_vm0  ;;  %vm547_vm0 = vcmp.ge.s32.totalorder %v5956_v49, %v4960_v63  ;;  %vm1159_vm14 = vcmp.ge.s32.totalorder %v5966_v5, %v5142_v45 }
 0x20d   : > { %vm1335_vm2 = vmand %vm933_vm7, %vm1143_vm6  ;;  %vm1529_vm7 = vcmp.lt.s32.totalorder %v5966_v5, %v5159_v43 }
 0x20e   : > { %vm1705_vm3 = vmand %vm1303_vm10, %vm1513_vm15  ;;  %vm1561_vm10 = vcmp.lt.s32.totalorder %v5966_v5, %v5128_v38 }
 0x20f   : > { %vm1737_vm8 = vmand %vm1335_vm2, %vm1545_vm12 }
 0x210   : > { %vm4054_vm5 = vmpackc.low %vm1737_vm8, %vm1705_vm3  ;;  %vm774_vm3 = vcmp.lt.s32.totalorder %v5888_v31, %v5192_v50 }
 0x211   : > { %4055 = vmatmul.mubr.msk.bf16.gmra.mrb[4].mxu1 %vm4054_vm5, %v4645_v32  ;;  %vm917_vm9 = vmand %vm515_vm11, %vm725_vm13  ;;  %vm806_vm13 = vcmp.lt.s32.totalorder %v5888_v31, %v5203_v57  ;;  %vm596_vm11 = vcmp.ge.s32.totalorder %v5888_v31, %v4993_v7 }
 0x212   : > { %vm949_vm6 = vmand %vm547_vm0, %vm757_vm1  ;;  %vm564_vm1 = vcmp.ge.s32.totalorder %v5888_v31, %v5176_v47  ;;  %vm1208_vm0 = vcmp.ge.s32.totalorder %v5894_v36, %v5217_v8  ;;  %v280_v31 = vadd.s32 3072, %v4943_v53 }
 0x213   : > { %vm1319_vm15 = vmand %vm917_vm9, %vm1127_vm4 }
 0x214   : > { %vm1351_vm12 = vmand %vm949_vm6, %vm1159_vm14  ;;  %vm1176_vm14 = vcmp.ge.s32.totalorder %v5894_v36, %v5149_v25  ;;  %vm1578_vm6 = vcmp.lt.s32.totalorder %v5894_v36, %v5232_v11 }
 0x215   : > { %vm1721_vm2 = vmand %vm1319_vm15, %vm1529_vm7 }
 0x216   : > { %vm1753_vm8 = vmand %vm1351_vm12, %vm1561_vm10  ;;  %vm1610_vm10 = vcmp.lt.s32.totalorder %v5894_v36, %v5168_v37  ;;  %v6218_v36 = vshra.s32 %v280_v31, 6 }
 0x217   : > { %vm4150_vm5 = vmpackc.low %vm1753_vm8, %vm1721_vm2  ;;  %vm790_vm2 = vcmp.lt.s32.totalorder %v5912_v42, %v5192_v50  ;;  %vm822_vm8 = vcmp.lt.s32.totalorder %v5912_v42, %v5203_v57 }
 0x218   : > { %4151 = vmatmul.mubr.msk.bf16.gmra.mrb[4].mxu0 %vm4150_vm5, %v4645_v32  ;;  %vm966_vm4 = vmand %vm564_vm1, %vm774_vm3  ;;  %vm580_vm5 = vcmp.ge.s32.totalorder %v5912_v42, %v5176_v47  ;;  %vm612_vm1 = vcmp.ge.s32.totalorder %v5912_v42, %v4993_v7  ;;  %v3993_v42 = vcombine.high %v6080_v10, %v6080_v10  ;;  %v6412_v10 = vshra.s32 %v267_v44, 6 }
 0x219   : > { %vm998_vm9 = vmand %vm596_vm11, %vm806_vm13 }
 0x21a   : > { %vm1368_vm7 = vmand %vm966_vm4, %vm1176_vm14  ;;  %vm1224_vm4 = vcmp.ge.s32.totalorder %v5918_v24, %v5217_v8  ;;  %vm1192_vm14 = vcmp.ge.s32.totalorder %v5918_v24, %v5149_v25 }
 0x21b   : > { %vm1400_vm15 = vmand %vm998_vm9, %vm1208_vm0  ;;  %vm7204_vm0 = vcmask 1043456  }
 0x21c   : > { %vm1770_vm12 = vmand %vm1368_vm7, %vm1578_vm6  ;;  %v6100_v4 = vsel %vm7204_vm0, %v3960_v62, %v3992_v6  ;;  %vm1594_vm6 = vcmp.lt.s32.totalorder %v5918_v24, %v5232_v11  ;;  %v6130_v35 = vsel %vm7204_vm0, %v3976_v15, %v4008_v20  ;;  %v6418_v62 = vand.u32 63, %v267_v44 }
 0x21d   : > { %vm1802_vm3 = vmand %vm1400_vm15, %vm1610_vm10  ;;  %vm1626_vm10 = vcmp.lt.s32.totalorder %v5918_v24, %v5168_v37  ;;  %v6228_v24 = vand.u32 63, %v280_v31  ;;  %v283_v6 = vadd.s32 3456, %v4943_v53  ;;  %v266_v15 = vadd.s32 1280, %v4943_v53 }
 0x21e   : > { %vm4056_vm13 = vmpackc.low %vm1802_vm3, %vm1770_vm12 }
 0x21f   : > { %4057 = vmatprep.mubr.msk.bf16.mxu1 %vm4056_vm13, %v4645_v32  ;;  %vm982_vm11 = vmand %vm580_vm5, %vm790_vm2  ;;  %vm773_vm2 = vcmp.lt.s32.totalorder %v5934_v26, %v5192_v50  ;;  %vm563_vm5 = vcmp.ge.s32.totalorder %v5934_v26, %v5176_v47  ;;  %v6458_v20 = vshra.s32 %v266_v15, 6  ;;  %v6464_v61 = vand.u32 63, %v266_v15 }
 0x220   : > { %vm1014_vm9 = vmand %vm612_vm1, %vm822_vm8  ;;  %vm805_vm8 = vcmp.lt.s32.totalorder %v5934_v26, %v5203_v57  ;;  %vm595_vm1 = vcmp.ge.s32.totalorder %v5934_v26, %v4993_v7  ;;  %v3977_v26 = vcombine.high %v6107_v21, %v6107_v21  ;;  %v6436_v21 = vshra.s32 %v283_v6, 6 }
 0x221   : > { %vm1384_vm7 = vmand %vm982_vm11, %vm1192_vm14  ;;  %vm1175_vm14 = vcmp.ge.s32.totalorder %v5940_v48, %v5149_v25 }
 0x222   : > { %vm1416_vm15 = vmand %vm1014_vm9, %vm1224_vm4  ;;  %vm1207_vm4 = vcmp.ge.s32.totalorder %v5940_v48, %v5217_v8 }
 0x223   : > { %vm1786_vm12 = vmand %vm1384_vm7, %vm1594_vm6  ;;  %vm1577_vm6 = vcmp.lt.s32.totalorder %v5940_v48, %v5232_v11 }
 0x224   : > { %vm1818_vm3 = vmand %vm1416_vm15, %vm1626_vm10  ;;  %vm1609_vm10 = vcmp.lt.s32.totalorder %v5940_v48, %v5168_v37  ;;  %v4009_v48 = vcombine.high %v6110_v12, %v6110_v12  ;;  %v6442_v12 = vand.u32 63, %v283_v6 }
 0x225   : > { %vm4152_vm13 = vmpackc.low %vm1818_vm3, %vm1786_vm12 }
 0x226   : > { %4153 = vmatprep.mubr.msk.bf16.mxu0 %vm4152_vm13, %v4645_v32  ;;  %vm965_vm11 = vmand %vm563_vm5, %vm773_vm2  ;;  %vm789_vm2 = vcmp.lt.s32.totalorder %v5956_v49, %v5192_v50  ;;  %vm579_vm5 = vcmp.ge.s32.totalorder %v5956_v49, %v5176_v47 }
 0x227   : > { %vm997_vm9 = vmand %vm595_vm1, %vm805_vm8  ;;  %vm821_vm8 = vcmp.lt.s32.totalorder %v5956_v49, %v5203_v57  ;;  %vm611_vm1 = vcmp.ge.s32.totalorder %v5956_v49, %v4993_v7 }
 0x228   : > { %vm1367_vm7 = vmand %vm965_vm11, %vm1175_vm14  ;;  %vm1593_vm14 = vcmp.lt.s32.totalorder %v5966_v5, %v5232_v11 }
 0x229   : > { %vm1399_vm15 = vmand %vm997_vm9, %vm1207_vm4  ;;  %vm1223_vm4 = vcmp.ge.s32.totalorder %v5966_v5, %v5217_v8  ;;  %vm1191_vm9 = vcmp.ge.s32.totalorder %v5966_v5, %v5149_v25 }
 0x22a   : > { %vm1769_vm12 = vmand %vm1367_vm7, %vm1577_vm6 }
 0x22b   : > { %vm1801_vm3 = vmand %vm1399_vm15, %vm1609_vm10  ;;  %vm1625_vm15 = vcmp.lt.s32.totalorder %v5966_v5, %v5168_v37  ;;  %v6369_v5 = vld [vmem:[%s4800_s9 + $0x78] sm:$0xff] }
 0x22c   : > { %vm4058_vm13 = vmpackc.low %vm1801_vm3, %vm1769_vm12  ;;  %vm438_vm12 = vcmp.ge.s32.totalorder %v6150_v0, %v4947_v55  ;;  %v3978_v56 = vcombine.low %v6369_v5, %v6369_v5 }
 0x22d   : > { %4059 = vmatmul.mubr.msk.bf16.gmra.mrb[8].mxu1 %vm4058_vm13, %v4645_v32  ;;  %vm981_vm11 = vmand %vm579_vm5, %vm789_vm2  ;;  %vm648_vm2 = vcmp.lt.s32.totalorder %v6150_v0, %v4945_v54  ;;  %vm680_vm13 = vcmp.lt.s32.totalorder %v6150_v0, %v4951_v58 }
 0x22e   : > { %vm1013_vm0 = vmand %vm611_vm1, %vm821_vm8  ;;  %vm470_vm8 = vcmp.ge.s32.totalorder %v6150_v0, %v4953_v59  ;;  %vm1050_vm1 = vcmp.ge.s32.totalorder %v6156_v23, %v5028_v13 }
 0x22f   : > { %vm1383_vm6 = vmand %vm981_vm11, %vm1191_vm9 }
 0x230   : > { %vm1415_vm7 = vmand %vm1013_vm0, %vm1223_vm4  ;;  %vm1082_vm4 = vcmp.ge.s32.totalorder %v6156_v23, %v4966_v1 }
 0x231   : > { %vm1785_vm10 = vmand %vm1383_vm6, %vm1593_vm14  ;;  %vm1484_vm14 = vcmp.lt.s32.totalorder %v6156_v23, %v5070_v27 }
 0x232   : > { %vm1817_vm3 = vmand %vm1415_vm7, %vm1625_vm15  ;;  %vm1452_vm7 = vcmp.lt.s32.totalorder %v6156_v23, %v5003_v9 }
 0x233   : > { %vm4154_vm5 = vmpackc.low %vm1817_vm3, %vm1785_vm10  ;;  %vm454_vm10 = vcmp.ge.s32.totalorder %v6174_v22, %v4947_v55  ;;  %vm486_vm3 = vcmp.ge.s32.totalorder %v6174_v22, %v4953_v59 }
 0x234   : > { %4155 = vmatmul.mubr.msk.bf16.gmra.mrb[8].mxu0 %vm4154_vm5, %v4645_v32  ;;  %vm840_vm11 = vmand %vm438_vm12, %vm648_vm2  ;;  %vm664_vm12 = vcmp.lt.s32.totalorder %v6174_v22, %v4945_v54  ;;  %vm1066_vm5 = vcmp.ge.s32.totalorder %v6180_v14, %v5028_v13 }
 0x235   : > { %vm872_vm0 = vmand %vm470_vm8, %vm680_vm13  ;;  %vm696_vm8 = vcmp.lt.s32.totalorder %v6174_v22, %v4951_v58 }
 0x236   : > { %vm1242_vm9 = vmand %vm840_vm11, %vm1050_vm1  ;;  %vm1098_vm11 = vcmp.ge.s32.totalorder %v6180_v14, %v4966_v1 }
 0x237   : > { %vm1274_vm6 = vmand %vm872_vm0, %vm1082_vm4 }
 0x238   : > { %vm1644_vm15 = vmand %vm1242_vm9, %vm1452_vm7  ;;  %vm1500_vm9 = vcmp.lt.s32.totalorder %v6180_v14, %v5070_v27 }
 0x239   : > { %vm1676_vm2 = vmand %vm1274_vm6, %vm1484_vm14  ;;  %vm1468_vm6 = vcmp.lt.s32.totalorder %v6180_v14, %v5003_v9 }
 0x23a   : > { %vm4060_vm13 = vmpackc.low %vm1676_vm2, %vm1644_vm15  ;;  %vm437_vm15 = vcmp.ge.s32.totalorder %v6196_v60, %v4947_v55  ;;  %vm469_vm2 = vcmp.ge.s32.totalorder %v6196_v60, %v4953_v59 }
 0x23b   : > { %4061 = vmatprep.mubr.msk.bf16.mxu1 %vm4060_vm13, %v4645_v32  ;;  %vm856_vm1 = vmand %vm454_vm10, %vm664_vm12  ;;  %vm647_vm10 = vcmp.lt.s32.totalorder %v6196_v60, %v4945_v54  ;;  %vm1049_vm13 = vcmp.ge.s32.totalorder %v6202_v51, %v5028_v13 }
 0x23c   : > { %vm888_vm4 = vmand %vm486_vm3, %vm696_vm8  ;;  %vm679_vm3 = vcmp.lt.s32.totalorder %v6196_v60, %v4951_v58 }
 0x23d   : > { %vm1258_vm0 = vmand %vm856_vm1, %vm1066_vm5  ;;  %vm1081_vm1 = vcmp.ge.s32.totalorder %v6202_v51, %v4966_v1 }
 0x23e   : > { %vm1290_vm14 = vmand %vm888_vm4, %vm1098_vm11 }
 0x23f   : > { %vm1660_vm7 = vmand %vm1258_vm0, %vm1468_vm6  ;;  %vm1483_vm0 = vcmp.lt.s32.totalorder %v6202_v51, %v5070_v27 }
 0x240   : > { %vm1692_vm12 = vmand %vm1290_vm14, %vm1500_vm9  ;;  %vm1451_vm14 = vcmp.lt.s32.totalorder %v6202_v51, %v5003_v9 }
 0x241   : > { %vm4156_vm8 = vmpackc.low %vm1692_vm12, %vm1660_vm7  ;;  %vm453_vm7 = vcmp.ge.s32.totalorder %v6218_v36, %v4947_v55  ;;  %vm485_vm12 = vcmp.ge.s32.totalorder %v6218_v36, %v4953_v59 }
 0x242   : > { %4157 = vmatprep.mubr.msk.bf16.mxu0 %vm4156_vm8, %v4645_v32  ;;  %vm839_vm5 = vmand %vm437_vm15, %vm647_vm10  ;;  %vm663_vm15 = vcmp.lt.s32.totalorder %v6218_v36, %v4945_v54  ;;  %vm1065_vm8 = vcmp.ge.s32.totalorder %v6228_v24, %v5028_v13 }
 0x243   : > { %vm871_vm11 = vmand %vm469_vm2, %vm679_vm3  ;;  %vm695_vm2 = vcmp.lt.s32.totalorder %v6218_v36, %v4951_v58 }
 0x244   : > { %vm1241_vm4 = vmand %vm839_vm5, %vm1049_vm13  ;;  %vm7205_vm13 = vcmask 1043456  }
 0x245   : > { %vm1273_vm9 = vmand %vm871_vm11, %vm1081_vm1  ;;  %v2596_v2 = vsel %vm7205_vm13, %v3961_v39, %v3993_v42  ;;  %vm1097_vm1 = vcmp.ge.s32.totalorder %v6228_v24, %v4966_v1  ;;  %v285_v39 = vadd.s32 3712, %v4943_v53 }
 0x246   : > { %vm1643_vm6 = vmand %vm1241_vm4, %vm1451_vm14  ;;  %vm1467_vm14 = vcmp.lt.s32.totalorder %v6228_v24, %v5003_v9 }
 0x247   : > { %vm1675_vm10 = vmand %vm1273_vm9, %vm1483_vm0  ;;  %vm1499_vm0 = vcmp.lt.s32.totalorder %v6228_v24, %v5070_v27  ;;  %v6672_v42 = vshra.s32 %v285_v39, 6 }
 0x248   : > { %vm4062_vm3 = vmpackc.low %vm1675_vm10, %vm1643_vm6  ;;  %vm744_vm10 = vcmp.lt.s32.totalorder %v6150_v0, %v5111_v34 }
 0x249   : > { %4063 = vmatmul.mubr.msk.bf16.vlgmr.msra.gmra.mrb[0].mxu1 %vm4062_vm3, %v4645_v32  ;;  %vm855_vm5 = vmand %vm453_vm7, %vm663_vm15  ;;  %vm712_vm7 = vcmp.lt.s32.totalorder %v6150_v0, %v5078_v28  ;;  %vm1114_vm3 = vcmp.ge.s32.totalorder %v6156_v23, %v5107_v33 }
 0x24a   : > { %2956 = vmatpush1.bf16.xpose.msra.mxu1 %v5838_v30  ;;  %vm887_vm11 = vmand %vm485_vm12, %vm695_vm2  ;;  %vm502_vm2 = vcmp.ge.s32.totalorder %v6150_v0, %v5038_v17 }
 0x24b   : > { %vm1257_vm4 = vmand %vm855_vm5, %vm1065_vm8  ;;  %3012 = vmatprep.subr.bf16.mxu1 %v2596_v2  ;;  %v268_v2 = vadd.s32 1536, %v4943_v53 }
 0x24c   : > { %vm1289_vm9 = vmand %vm887_vm11, %vm1097_vm1  ;;  %vm1146_vm1 = vcmp.ge.s32.totalorder %v6156_v23, %v5142_v45 }
 0x24d   : > { %vm1659_vm6 = vmand %vm1257_vm4, %vm1467_vm14  ;;  %vm1516_vm4 = vcmp.lt.s32.totalorder %v6156_v23, %v5159_v43 }
 0x24e   : > { %vm1691_vm15 = vmand %vm1289_vm9, %vm1499_vm0  ;;  %vm1548_vm9 = vcmp.lt.s32.totalorder %v6156_v23, %v5128_v38 }
 0x24f   : > { %vm4158_vm12 = vmpackc.low %vm1691_vm15, %vm1659_vm6  ;;  %vm728_vm15 = vcmp.lt.s32.totalorder %v6174_v22, %v5078_v28 }
 0x250   : > { %vm7206_vm8 = vmmov %vm7205_vm13  ;;  %4159 = vmatmul.mubr.msk.bf16.vlgmr.msra.gmra.mrb[0].mxu0 %vm4158_vm12, %v4645_v32  ;;  %vm534_vm13 = vcmp.ge.s32.totalorder %v6150_v0, %v4960_v63  ;;  %vm760_vm12 = vcmp.lt.s32.totalorder %v6174_v22, %v5111_v34 }
 0x251   : > { %v2660_v30 = vsel %vm7206_vm8, %v3977_v26, %v4009_v48  ;;  %vm904_vm5 = vmand %vm502_vm2, %vm712_vm7  ;;  %3412 = vmatpush1.bf16.xpose.msra.mxu0 %v5868_v46  ;;  %vm550_vm8 = vcmp.ge.s32.totalorder %v6174_v22, %v4960_v63  ;;  %v6339_v46 = vld [vmem:[%s4800_s9 + $0x38] sm:$0xff]  ;;  %v6694_v26 = vshra.s32 %v268_v2, 6  ;;  %v6700_v48 = vand.u32 63, %v268_v2 }
 0x252   : > { %vm936_vm11 = vmand %vm534_vm13, %vm744_vm10  ;;  %3468 = vmatprep.subr.bf16.mxu0 %v2660_v30  ;;  %vm518_vm10 = vcmp.ge.s32.totalorder %v6174_v22, %v5038_v17  ;;  %v3962_v49 = vcombine.low %v6339_v46, %v6339_v46  ;;  %v3963_v29 = vcombine.high %v6339_v46, %v6339_v46  ;;  %v284_v30 = vadd.s32 3584, %v4943_v53 }
 0x253   : > { %vm1306_vm0 = vmand %vm904_vm5, %vm1114_vm3  ;;  %vm1130_vm3 = vcmp.ge.s32.totalorder %v6180_v14, %v5107_v33  ;;  %vm1162_vm5 = vcmp.ge.s32.totalorder %v6180_v14, %v5142_v45 }
 0x254   : > { %vm1338_vm14 = vmand %vm936_vm11, %vm1146_vm1  ;;  %vm1532_vm11 = vcmp.lt.s32.totalorder %v6180_v14, %v5159_v43  ;;  %v6716_v46 = vshra.s32 %v284_v30, 6 }
 0x255   : > { %vm1708_vm6 = vmand %vm1306_vm0, %vm1516_vm4  ;;  %vm1564_vm0 = vcmp.lt.s32.totalorder %v6180_v14, %v5128_v38 }
 0x256   : > { %vm1740_vm7 = vmand %vm1338_vm14, %vm1548_vm9 }
 0x257   : > { %vm4064_vm2 = vmpackc.low %vm1740_vm7, %vm1708_vm6  ;;  %vm711_vm6 = vcmp.lt.s32.totalorder %v6196_v60, %v5078_v28 }
 0x258   : > { %4065 = vmatprep.mubr.msk.bf16.mxu1 %vm4064_vm2, %v4645_v32  ;;  %vm920_vm13 = vmand %vm518_vm10, %vm728_vm15  ;;  %vm743_vm15 = vcmp.lt.s32.totalorder %v6196_v60, %v5111_v34  ;;  %vm1113_vm10 = vcmp.ge.s32.totalorder %v6202_v51, %v5107_v33 }
 0x259   : > { %vm952_vm1 = vmand %vm550_vm8, %vm760_vm12  ;;  %vm501_vm12 = vcmp.ge.s32.totalorder %v6196_v60, %v5038_v17 }
 0x25a   : > { %vm1322_vm4 = vmand %vm920_vm13, %vm1130_vm3  ;;  %vm533_vm3 = vcmp.ge.s32.totalorder %v6196_v60, %v4960_v63  ;;  %vm1145_vm13 = vcmp.ge.s32.totalorder %v6202_v51, %v5142_v45 }
 0x25b   : > { %vm1354_vm9 = vmand %vm952_vm1, %vm1162_vm5  ;;  %vm1515_vm1 = vcmp.lt.s32.totalorder %v6202_v51, %v5159_v43 }
 0x25c   : > { %vm1724_vm14 = vmand %vm1322_vm4, %vm1532_vm11  ;;  %vm1547_vm4 = vcmp.lt.s32.totalorder %v6202_v51, %v5128_v38 }
 0x25d   : > { %vm1756_vm7 = vmand %vm1354_vm9, %vm1564_vm0 }
 0x25e   : > { %vm4160_vm2 = vmpackc.low %vm1756_vm7, %vm1724_vm14  ;;  %vm727_vm14 = vcmp.lt.s32.totalorder %v6218_v36, %v5078_v28 }
 0x25f   : > { %4161 = vmatprep.mubr.msk.bf16.mxu0 %vm4160_vm2, %v4645_v32  ;;  %vm903_vm8 = vmand %vm501_vm12, %vm711_vm6  ;;  %vm759_vm6 = vcmp.lt.s32.totalorder %v6218_v36, %v5111_v34  ;;  %vm1129_vm12 = vcmp.ge.s32.totalorder %v6228_v24, %v5107_v33 }
 0x260   : > { %vm935_vm5 = vmand %vm533_vm3, %vm743_vm15  ;;  %vm517_vm15 = vcmp.ge.s32.totalorder %v6218_v36, %v5038_v17 }
 0x261   : > { %vm1305_vm11 = vmand %vm903_vm8, %vm1113_vm10  ;;  %vm549_vm10 = vcmp.ge.s32.totalorder %v6218_v36, %v4960_v63  ;;  %vm1161_vm8 = vcmp.ge.s32.totalorder %v6228_v24, %v5142_v45 }
 0x262   : > { %vm1337_vm0 = vmand %vm935_vm5, %vm1145_vm13  ;;  %vm1531_vm5 = vcmp.lt.s32.totalorder %v6228_v24, %v5159_v43 }
 0x263   : > { %vm1707_vm9 = vmand %vm1305_vm11, %vm1515_vm1  ;;  %vm1563_vm11 = vcmp.lt.s32.totalorder %v6228_v24, %v5128_v38 }
 0x264   : > { %vm1739_vm7 = vmand %vm1337_vm0, %vm1547_vm4 }
 0x265   : > { %vm4066_vm2 = vmpackc.low %vm1739_vm7, %vm1707_vm9  ;;  %vm776_vm9 = vcmp.lt.s32.totalorder %v6150_v0, %v5192_v50 }
 0x266   : > { %4067 = vmatmul.mubr.msk.bf16.gmra.mrb[4].mxu1 %vm4066_vm2, %v4645_v32  ;;  %vm919_vm3 = vmand %vm517_vm15, %vm727_vm14  ;;  %vm808_vm14 = vcmp.lt.s32.totalorder %v6150_v0, %v5203_v57  ;;  %vm598_vm15 = vcmp.ge.s32.totalorder %v6150_v0, %v4993_v7 }
 0x267   : > { %vm951_vm13 = vmand %vm549_vm10, %vm759_vm6  ;;  %vm566_vm6 = vcmp.ge.s32.totalorder %v6150_v0, %v5176_v47  ;;  %vm1210_vm10 = vcmp.ge.s32.totalorder %v6156_v23, %v5217_v8  ;;  %v282_v0 = vadd.s32 3328, %v4943_v53 }
 0x268   : > { %vm1321_vm1 = vmand %vm919_vm3, %vm1129_vm12 }
 0x269   : > { %vm1353_vm4 = vmand %vm951_vm13, %vm1161_vm8  ;;  %vm1178_vm8 = vcmp.ge.s32.totalorder %v6156_v23, %v5149_v25  ;;  %vm1580_vm13 = vcmp.lt.s32.totalorder %v6156_v23, %v5232_v11 }
 0x26a   : > { %vm1723_vm0 = vmand %vm1321_vm1, %vm1531_vm5 }
 0x26b   : > { %vm1755_vm7 = vmand %vm1353_vm4, %vm1563_vm11  ;;  %vm1612_vm11 = vcmp.lt.s32.totalorder %v6156_v23, %v5168_v37  ;;  %v6480_v23 = vshra.s32 %v282_v0, 6 }
 0x26c   : > { %vm4162_vm2 = vmpackc.low %vm1755_vm7, %vm1723_vm0  ;;  %vm792_vm0 = vcmp.lt.s32.totalorder %v6174_v22, %v5192_v50  ;;  %vm824_vm7 = vcmp.lt.s32.totalorder %v6174_v22, %v5203_v57 }
 0x26d   : > { %4163 = vmatmul.mubr.msk.bf16.gmra.mrb[4].mxu0 %vm4162_vm2, %v4645_v32  ;;  %vm968_vm12 = vmand %vm566_vm6, %vm776_vm9  ;;  %vm582_vm2 = vcmp.ge.s32.totalorder %v6174_v22, %v5176_v47  ;;  %vm614_vm6 = vcmp.ge.s32.totalorder %v6174_v22, %v4993_v7  ;;  %v3995_v22 = vcombine.high %v6342_v40, %v6342_v40  ;;  %v6722_v40 = vand.u32 63, %v284_v30 }
 0x26e   : > { %vm1000_vm3 = vmand %vm598_vm15, %vm808_vm14 }
 0x26f   : > { %vm1370_vm5 = vmand %vm968_vm12, %vm1178_vm8  ;;  %vm1226_vm12 = vcmp.ge.s32.totalorder %v6180_v14, %v5217_v8  ;;  %vm1194_vm8 = vcmp.ge.s32.totalorder %v6180_v14, %v5149_v25 }
 0x270   : > { %vm1402_vm1 = vmand %vm1000_vm3, %vm1210_vm10  ;;  %vm7207_vm10 = vcmask 1043456  }
 0x271   : > { %vm1772_vm4 = vmand %vm1370_vm5, %vm1580_vm13  ;;  %v6362_v16 = vsel %vm7207_vm10, %v3962_v49, %v3994_v52  ;;  %vm1596_vm13 = vcmp.lt.s32.totalorder %v6180_v14, %v5232_v11  ;;  %v6392_v41 = vsel %vm7207_vm10, %v3978_v56, %v4010_v19  ;;  %v271_v49 = vadd.s32 1920, %v4943_v53 }
 0x272   : > { %vm1804_vm9 = vmand %vm1402_vm1, %vm1612_vm11  ;;  %vm1628_vm11 = vcmp.lt.s32.totalorder %v6180_v14, %v5168_v37  ;;  %v6490_v14 = vand.u32 63, %v282_v0  ;;  %v270_v19 = vadd.s32 1792, %v4943_v53 }
 0x273   : > { %vm4068_vm14 = vmpackc.low %vm1804_vm9, %vm1772_vm4  ;;  %v6874_v52 = vshra.s32 %v271_v49, 6 }
 0x274   : > { %4069 = vmatprep.mubr.msk.bf16.mxu1 %vm4068_vm14, %v4645_v32  ;;  %vm984_vm15 = vmand %vm582_vm2, %vm792_vm0  ;;  %vm775_vm0 = vcmp.lt.s32.totalorder %v6196_v60, %v5192_v50  ;;  %vm565_vm2 = vcmp.ge.s32.totalorder %v6196_v60, %v5176_v47  ;;  %v6926_v44 = vand.u32 63, %v270_v19 }
 0x275   : > { %vm1016_vm3 = vmand %vm614_vm6, %vm824_vm7  ;;  %vm807_vm7 = vcmp.lt.s32.totalorder %v6196_v60, %v5203_v57  ;;  %vm597_vm6 = vcmp.ge.s32.totalorder %v6196_v60, %v4993_v7  ;;  %v3979_v60 = vcombine.high %v6369_v5, %v6369_v5  ;;  %v287_v5 = vadd.s32 3968, %v4943_v53 }
 0x276   : > { %vm1386_vm5 = vmand %vm984_vm15, %vm1194_vm8  ;;  %vm1177_vm8 = vcmp.ge.s32.totalorder %v6202_v51, %v5149_v25 }
 0x277   : > { %vm1418_vm1 = vmand %vm1016_vm3, %vm1226_vm12  ;;  %vm1209_vm12 = vcmp.ge.s32.totalorder %v6202_v51, %v5217_v8  ;;  %v6904_v56 = vand.u32 63, %v287_v5 }
 0x278   : > { %vm1788_vm4 = vmand %vm1386_vm5, %vm1596_vm13  ;;  %vm1579_vm13 = vcmp.lt.s32.totalorder %v6202_v51, %v5232_v11 }
 0x279   : > { %vm1820_vm9 = vmand %vm1418_vm1, %vm1628_vm11  ;;  %vm1611_vm11 = vcmp.lt.s32.totalorder %v6202_v51, %v5168_v37  ;;  %v4011_v51 = vcombine.high %v6372_v3, %v6372_v3  ;;  %v6898_v3 = vshra.s32 %v287_v5, 6 }
 0x27a   : > { %vm4164_vm14 = vmpackc.low %vm1820_vm9, %vm1788_vm4 }
 0x27b   : > { %4165 = vmatprep.mubr.msk.bf16.mxu0 %vm4164_vm14, %v4645_v32  ;;  %vm967_vm15 = vmand %vm565_vm2, %vm775_vm0  ;;  %vm791_vm0 = vcmp.lt.s32.totalorder %v6218_v36, %v5192_v50  ;;  %vm581_vm2 = vcmp.ge.s32.totalorder %v6218_v36, %v5176_v47 }
 0x27c   : > { %vm999_vm3 = vmand %vm597_vm6, %vm807_vm7  ;;  %vm823_vm7 = vcmp.lt.s32.totalorder %v6218_v36, %v5203_v57  ;;  %vm613_vm6 = vcmp.ge.s32.totalorder %v6218_v36, %v4993_v7 }
 0x27d   : > { %vm1369_vm5 = vmand %vm967_vm15, %vm1177_vm8  ;;  %vm1595_vm8 = vcmp.lt.s32.totalorder %v6228_v24, %v5232_v11 }
 0x27e   : > { %vm1401_vm1 = vmand %vm999_vm3, %vm1209_vm12  ;;  %vm1225_vm12 = vcmp.ge.s32.totalorder %v6228_v24, %v5217_v8  ;;  %vm1193_vm3 = vcmp.ge.s32.totalorder %v6228_v24, %v5149_v25 }
 0x27f   : > { %vm1771_vm4 = vmand %vm1369_vm5, %vm1579_vm13 }
 0x280   : > { %vm1803_vm9 = vmand %vm1401_vm1, %vm1611_vm11  ;;  %vm1627_vm1 = vcmp.lt.s32.totalorder %v6228_v24, %v5168_v37  ;;  %v6678_v24 = vand.u32 63, %v285_v39 }
 0x281   : > { %vm4070_vm14 = vmpackc.low %vm1803_vm9, %vm1771_vm4  ;;  %vm440_vm4 = vcmp.ge.s32.totalorder %v6412_v10, %v4947_v55 }
 0x282   : > { %4071 = vmatmul.mubr.msk.bf16.gmra.mrb[8].mxu1 %vm4070_vm14, %v4645_v32  ;;  %vm983_vm15 = vmand %vm581_vm2, %vm791_vm0  ;;  %vm650_vm0 = vcmp.lt.s32.totalorder %v6412_v10, %v4945_v54  ;;  %vm682_vm14 = vcmp.lt.s32.totalorder %v6412_v10, %v4951_v58 }
 0x283   : > { %vm1015_vm10 = vmand %vm613_vm6, %vm823_vm7  ;;  %vm472_vm7 = vcmp.ge.s32.totalorder %v6412_v10, %v4953_v59  ;;  %vm1052_vm6 = vcmp.ge.s32.totalorder %v6418_v62, %v5028_v13 }
 0x284   : > { %vm1385_vm13 = vmand %vm983_vm15, %vm1193_vm3 }
 0x285   : > { %vm1417_vm5 = vmand %vm1015_vm10, %vm1225_vm12  ;;  %vm1084_vm12 = vcmp.ge.s32.totalorder %v6418_v62, %v4966_v1 }
 0x286   : > { %vm1787_vm11 = vmand %vm1385_vm13, %vm1595_vm8  ;;  %vm1486_vm8 = vcmp.lt.s32.totalorder %v6418_v62, %v5070_v27 }
 0x287   : > { %vm1819_vm9 = vmand %vm1417_vm5, %vm1627_vm1  ;;  %vm1454_vm5 = vcmp.lt.s32.totalorder %v6418_v62, %v5003_v9 }
 0x288   : > { %vm4166_vm2 = vmpackc.low %vm1819_vm9, %vm1787_vm11  ;;  %vm456_vm11 = vcmp.ge.s32.totalorder %v6436_v21, %v4947_v55  ;;  %vm488_vm9 = vcmp.ge.s32.totalorder %v6436_v21, %v4953_v59 }
 0x289   : > { %4167 = vmatmul.mubr.msk.bf16.gmra.mrb[8].mxu0 %vm4166_vm2, %v4645_v32  ;;  %vm842_vm15 = vmand %vm440_vm4, %vm650_vm0  ;;  %vm666_vm4 = vcmp.lt.s32.totalorder %v6436_v21, %v4945_v54  ;;  %vm1068_vm2 = vcmp.ge.s32.totalorder %v6442_v12, %v5028_v13 }
 0x28a   : > { %vm874_vm10 = vmand %vm472_vm7, %vm682_vm14  ;;  %vm698_vm7 = vcmp.lt.s32.totalorder %v6436_v21, %v4951_v58 }
 0x28b   : > { %vm1244_vm3 = vmand %vm842_vm15, %vm1052_vm6  ;;  %vm1100_vm15 = vcmp.ge.s32.totalorder %v6442_v12, %v4966_v1 }
 0x28c   : > { %vm1276_vm13 = vmand %vm874_vm10, %vm1084_vm12 }
 0x28d   : > { %vm1646_vm1 = vmand %vm1244_vm3, %vm1454_vm5  ;;  %vm1502_vm3 = vcmp.lt.s32.totalorder %v6442_v12, %v5070_v27 }
 0x28e   : > { %vm1678_vm0 = vmand %vm1276_vm13, %vm1486_vm8  ;;  %vm1470_vm13 = vcmp.lt.s32.totalorder %v6442_v12, %v5003_v9 }
 0x28f   : > { %vm4072_vm14 = vmpackc.low %vm1678_vm0, %vm1646_vm1  ;;  %vm439_vm1 = vcmp.ge.s32.totalorder %v6458_v20, %v4947_v55  ;;  %vm471_vm0 = vcmp.ge.s32.totalorder %v6458_v20, %v4953_v59 }
 0x290   : > { %4073 = vmatprep.mubr.msk.bf16.mxu1 %vm4072_vm14, %v4645_v32  ;;  %vm858_vm6 = vmand %vm456_vm11, %vm666_vm4  ;;  %vm649_vm11 = vcmp.lt.s32.totalorder %v6458_v20, %v4945_v54  ;;  %vm1051_vm14 = vcmp.ge.s32.totalorder %v6464_v61, %v5028_v13 }
 0x291   : > { %vm890_vm12 = vmand %vm488_vm9, %vm698_vm7  ;;  %vm681_vm9 = vcmp.lt.s32.totalorder %v6458_v20, %v4951_v58 }
 0x292   : > { %vm1260_vm10 = vmand %vm858_vm6, %vm1068_vm2  ;;  %vm1083_vm6 = vcmp.ge.s32.totalorder %v6464_v61, %v4966_v1 }
 0x293   : > { %vm1292_vm8 = vmand %vm890_vm12, %vm1100_vm15 }
 0x294   : > { %vm1662_vm5 = vmand %vm1260_vm10, %vm1470_vm13  ;;  %vm1485_vm10 = vcmp.lt.s32.totalorder %v6464_v61, %v5070_v27 }
 0x295   : > { %vm1694_vm4 = vmand %vm1292_vm8, %vm1502_vm3  ;;  %vm1453_vm8 = vcmp.lt.s32.totalorder %v6464_v61, %v5003_v9 }
 0x296   : > { %vm4168_vm7 = vmpackc.low %vm1694_vm4, %vm1662_vm5  ;;  %vm455_vm5 = vcmp.ge.s32.totalorder %v6480_v23, %v4947_v55  ;;  %vm487_vm4 = vcmp.ge.s32.totalorder %v6480_v23, %v4953_v59 }
 0x297   : > { %4169 = vmatprep.mubr.msk.bf16.mxu0 %vm4168_vm7, %v4645_v32  ;;  %vm841_vm2 = vmand %vm439_vm1, %vm649_vm11  ;;  %vm665_vm1 = vcmp.lt.s32.totalorder %v6480_v23, %v4945_v54  ;;  %vm1067_vm7 = vcmp.ge.s32.totalorder %v6490_v14, %v5028_v13 }
 0x298   : > { %vm873_vm15 = vmand %vm471_vm0, %vm681_vm9  ;;  %vm697_vm0 = vcmp.lt.s32.totalorder %v6480_v23, %v4951_v58 }
 0x299   : > { %vm1243_vm12 = vmand %vm841_vm2, %vm1051_vm14  ;;  %vm7208_vm14 = vcmask 1043456  }
 0x29a   : > { %vm1275_vm3 = vmand %vm873_vm15, %vm1083_vm6  ;;  %v2604_v18 = vsel %vm7208_vm14, %v3963_v29, %v3995_v22  ;;  %vm1099_vm6 = vcmp.ge.s32.totalorder %v6490_v14, %v4966_v1 }
 0x29b   : > { %vm1645_vm13 = vmand %vm1243_vm12, %vm1453_vm8  ;;  %vm1469_vm8 = vcmp.lt.s32.totalorder %v6490_v14, %v5003_v9 }
 0x29c   : > { %vm1677_vm11 = vmand %vm1275_vm3, %vm1485_vm10  ;;  %vm1501_vm10 = vcmp.lt.s32.totalorder %v6490_v14, %v5070_v27 }
 0x29d   : > { %vm4074_vm9 = vmpackc.low %vm1677_vm11, %vm1645_vm13  ;;  %vm746_vm11 = vcmp.lt.s32.totalorder %v6412_v10, %v5111_v34 }
 0x29e   : > { %4075 = vmatmul.mubr.msk.bf16.vlgmr.msra.gmra.mrb[0].mxu1 %vm4074_vm9, %v4645_v32  ;;  %vm857_vm2 = vmand %vm455_vm5, %vm665_vm1  ;;  %vm714_vm5 = vcmp.lt.s32.totalorder %v6412_v10, %v5078_v28  ;;  %vm1116_vm9 = vcmp.ge.s32.totalorder %v6418_v62, %v5107_v33 }
 0x29f   : > { %3013 = vmatpush1.bf16.xpose.msra.mxu1 %v6100_v4  ;;  %vm889_vm15 = vmand %vm487_vm4, %vm697_vm0  ;;  %vm504_vm0 = vcmp.ge.s32.totalorder %v6412_v10, %v5038_v17 }
 0x2a0   : > { %vm1259_vm12 = vmand %vm857_vm2, %vm1067_vm7  ;;  %3069 = vmatprep.subr.bf16.mxu1 %v2604_v18 }
 0x2a1   : > { %vm1291_vm3 = vmand %vm889_vm15, %vm1099_vm6  ;;  %vm1148_vm6 = vcmp.ge.s32.totalorder %v6418_v62, %v5142_v45 }
 0x2a2   : > { %vm1661_vm13 = vmand %vm1259_vm12, %vm1469_vm8  ;;  %vm1518_vm12 = vcmp.lt.s32.totalorder %v6418_v62, %v5159_v43 }
 0x2a3   : > { %vm1693_vm1 = vmand %vm1291_vm3, %vm1501_vm10  ;;  %vm1550_vm3 = vcmp.lt.s32.totalorder %v6418_v62, %v5128_v38 }
 0x2a4   : > { %vm4170_vm4 = vmpackc.low %vm1693_vm1, %vm1661_vm13  ;;  %vm730_vm1 = vcmp.lt.s32.totalorder %v6436_v21, %v5078_v28 }
 0x2a5   : > { %vm7209_vm7 = vmmov %vm7208_vm14  ;;  %4171 = vmatmul.mubr.msk.bf16.vlgmr.msra.gmra.mrb[0].mxu0 %vm4170_vm4, %v4645_v32  ;;  %vm536_vm14 = vcmp.ge.s32.totalorder %v6412_v10, %v4960_v63  ;;  %vm762_vm4 = vcmp.lt.s32.totalorder %v6436_v21, %v5111_v34 }
 0x2a6   : > { %v2668_v4 = vsel %vm7209_vm7, %v3979_v60, %v4011_v51  ;;  %vm906_vm2 = vmand %vm504_vm0, %vm714_vm5  ;;  %3469 = vmatpush1.bf16.xpose.msra.mxu0 %v6130_v35  ;;  %vm552_vm7 = vcmp.ge.s32.totalorder %v6436_v21, %v4960_v63  ;;  %v269_v35 = vadd.s32 1664, %v4943_v53 }
 0x2a7   : > { %vm938_vm15 = vmand %vm536_vm14, %vm746_vm11  ;;  %3525 = vmatprep.subr.bf16.mxu0 %v2668_v4  ;;  %vm520_vm11 = vcmp.ge.s32.totalorder %v6436_v21, %v5038_v17 }
 0x2a8   : > { %vm1308_vm10 = vmand %vm906_vm2, %vm1116_vm9  ;;  %vm1132_vm9 = vcmp.ge.s32.totalorder %v6442_v12, %v5107_v33  ;;  %vm1164_vm2 = vcmp.ge.s32.totalorder %v6442_v12, %v5142_v45  ;;  %v6648_v31 = vshra.s32 %v269_v35, 6  ;;  %v6654_v36 = vand.u32 63, %v269_v35 }
 0x2a9   : > { %vm1340_vm8 = vmand %vm938_vm15, %vm1148_vm6  ;;  %vm1534_vm15 = vcmp.lt.s32.totalorder %v6442_v12, %v5159_v43 }
 0x2aa   : > { %vm1710_vm13 = vmand %vm1308_vm10, %vm1518_vm12  ;;  %vm1566_vm10 = vcmp.lt.s32.totalorder %v6442_v12, %v5128_v38 }
 0x2ab   : > { %vm1742_vm5 = vmand %vm1340_vm8, %vm1550_vm3 }
 0x2ac   : > { %vm4076_vm0 = vmpackc.low %vm1742_vm5, %vm1710_vm13  ;;  %vm713_vm13 = vcmp.lt.s32.totalorder %v6458_v20, %v5078_v28 }
 0x2ad   : > { %4077 = vmatprep.mubr.msk.bf16.mxu1 %vm4076_vm0, %v4645_v32  ;;  %vm922_vm14 = vmand %vm520_vm11, %vm730_vm1  ;;  %vm745_vm1 = vcmp.lt.s32.totalorder %v6458_v20, %v5111_v34  ;;  %vm1115_vm11 = vcmp.ge.s32.totalorder %v6464_v61, %v5107_v33 }
 0x2ae   : > { %vm954_vm6 = vmand %vm552_vm7, %vm762_vm4  ;;  %vm503_vm4 = vcmp.ge.s32.totalorder %v6458_v20, %v5038_v17 }
 0x2af   : > { %vm1324_vm12 = vmand %vm922_vm14, %vm1132_vm9  ;;  %vm535_vm9 = vcmp.ge.s32.totalorder %v6458_v20, %v4960_v63  ;;  %vm1147_vm14 = vcmp.ge.s32.totalorder %v6464_v61, %v5142_v45 }
 0x2b0   : > { %vm1356_vm3 = vmand %vm954_vm6, %vm1164_vm2  ;;  %vm1517_vm6 = vcmp.lt.s32.totalorder %v6464_v61, %v5159_v43 }
 0x2b1   : > { %vm1726_vm8 = vmand %vm1324_vm12, %vm1534_vm15  ;;  %vm1549_vm12 = vcmp.lt.s32.totalorder %v6464_v61, %v5128_v38 }
 0x2b2   : > { %vm1758_vm5 = vmand %vm1356_vm3, %vm1566_vm10 }
 0x2b3   : > { %vm4172_vm0 = vmpackc.low %vm1758_vm5, %vm1726_vm8  ;;  %vm729_vm8 = vcmp.lt.s32.totalorder %v6480_v23, %v5078_v28 }
 0x2b4   : > { %4173 = vmatprep.mubr.msk.bf16.mxu0 %vm4172_vm0, %v4645_v32  ;;  %vm905_vm7 = vmand %vm503_vm4, %vm713_vm13  ;;  %vm761_vm13 = vcmp.lt.s32.totalorder %v6480_v23, %v5111_v34  ;;  %vm1131_vm4 = vcmp.ge.s32.totalorder %v6490_v14, %v5107_v33 }
 0x2b5   : > { %vm937_vm2 = vmand %vm535_vm9, %vm745_vm1  ;;  %vm519_vm1 = vcmp.ge.s32.totalorder %v6480_v23, %v5038_v17 }
 0x2b6   : > { %vm1307_vm15 = vmand %vm905_vm7, %vm1115_vm11  ;;  %vm551_vm11 = vcmp.ge.s32.totalorder %v6480_v23, %v4960_v63  ;;  %vm1163_vm7 = vcmp.ge.s32.totalorder %v6490_v14, %v5142_v45 }
 0x2b7   : > { %vm1339_vm10 = vmand %vm937_vm2, %vm1147_vm14  ;;  %vm1533_vm2 = vcmp.lt.s32.totalorder %v6490_v14, %v5159_v43 }
 0x2b8   : > { %vm1709_vm3 = vmand %vm1307_vm15, %vm1517_vm6  ;;  %vm1565_vm15 = vcmp.lt.s32.totalorder %v6490_v14, %v5128_v38 }
 0x2b9   : > { %vm1741_vm5 = vmand %vm1339_vm10, %vm1549_vm12 }
 0x2ba   : > { %vm4078_vm0 = vmpackc.low %vm1741_vm5, %vm1709_vm3  ;;  %vm778_vm3 = vcmp.lt.s32.totalorder %v6412_v10, %v5192_v50 }
 0x2bb   : > { %4079 = vmatmul.mubr.msk.bf16.gmra.mrb[4].mxu1 %vm4078_vm0, %v4645_v32  ;;  %vm921_vm9 = vmand %vm519_vm1, %vm729_vm8  ;;  %vm810_vm8 = vcmp.lt.s32.totalorder %v6412_v10, %v5203_v57  ;;  %vm600_vm1 = vcmp.ge.s32.totalorder %v6412_v10, %v4993_v7 }
 0x2bc   : > { %vm953_vm14 = vmand %vm551_vm11, %vm761_vm13  ;;  %vm568_vm13 = vcmp.ge.s32.totalorder %v6412_v10, %v5176_v47  ;;  %vm1212_vm11 = vcmp.ge.s32.totalorder %v6418_v62, %v5217_v8  ;;  %v286_v10 = vadd.s32 3840, %v4943_v53 }
 0x2bd   : > { %vm1323_vm6 = vmand %vm921_vm9, %vm1131_vm4 }
 0x2be   : > { %vm1355_vm12 = vmand %vm953_vm14, %vm1163_vm7  ;;  %vm1180_vm7 = vcmp.ge.s32.totalorder %v6418_v62, %v5149_v25  ;;  %vm1582_vm14 = vcmp.lt.s32.totalorder %v6418_v62, %v5232_v11  ;;  %v6942_v53 = vshra.s32 %v286_v10, 6 }
 0x2bf   : > { %vm1725_vm10 = vmand %vm1323_vm6, %vm1533_vm2 }
 0x2c0   : > { %vm1757_vm5 = vmand %vm1355_vm12, %vm1565_vm15  ;;  %vm1614_vm15 = vcmp.lt.s32.totalorder %v6418_v62, %v5168_v37  ;;  %v6948_v62 = vand.u32 63, %v286_v10 }
 0x2c1   : > { %vm4174_vm0 = vmpackc.low %vm1757_vm5, %vm1725_vm10  ;;  %vm794_vm10 = vcmp.lt.s32.totalorder %v6436_v21, %v5192_v50  ;;  %vm826_vm5 = vcmp.lt.s32.totalorder %v6436_v21, %v5203_v57 }
 0x2c2   : > { %4175 = vmatmul.mubr.msk.bf16.gmra.mrb[4].mxu0 %vm4174_vm0, %v4645_v32  ;;  %vm970_vm4 = vmand %vm568_vm13, %vm778_vm3  ;;  %vm584_vm0 = vcmp.ge.s32.totalorder %v6436_v21, %v5176_v47  ;;  %vm616_vm13 = vcmp.ge.s32.totalorder %v6436_v21, %v4993_v7 }
 0x2c3   : > { %vm1002_vm9 = vmand %vm600_vm1, %vm810_vm8 }
 0x2c4   : > { %vm1372_vm2 = vmand %vm970_vm4, %vm1180_vm7  ;;  %vm1228_vm4 = vcmp.ge.s32.totalorder %v6442_v12, %v5217_v8  ;;  %vm1598_vm7 = vcmp.lt.s32.totalorder %v6442_v12, %v5232_v11 }
 0x2c5   : > { %vm1404_vm6 = vmand %vm1002_vm9, %vm1212_vm11  ;;  %vm1196_vm9 = vcmp.ge.s32.totalorder %v6442_v12, %v5149_v25 }
 0x2c6   : > { %vm1774_vm12 = vmand %vm1372_vm2, %vm1582_vm14 }
 0x2c7   : > { %vm1806_vm3 = vmand %vm1404_vm6, %vm1614_vm15  ;;  %vm1630_vm6 = vcmp.lt.s32.totalorder %v6442_v12, %v5168_v37 }
 0x2c8   : > { %vm4080_vm8 = vmpackc.low %vm1806_vm3, %vm1774_vm12  ;;  %vm777_vm12 = vcmp.lt.s32.totalorder %v6458_v20, %v5192_v50  ;;  %vm809_vm3 = vcmp.lt.s32.totalorder %v6458_v20, %v5203_v57 }
 0x2c9   : > { %4081 = vmatprep.mubr.msk.bf16.mxu1 %vm4080_vm8, %v4645_v32  ;;  %vm986_vm1 = vmand %vm584_vm0, %vm794_vm10  ;;  %vm567_vm8 = vcmp.ge.s32.totalorder %v6458_v20, %v5176_v47  ;;  %vm599_vm0 = vcmp.ge.s32.totalorder %v6458_v20, %v4993_v7 }
 0x2ca   : > { %vm1018_vm11 = vmand %vm616_vm13, %vm826_vm5 }
 0x2cb   : > { %vm1388_vm14 = vmand %vm986_vm1, %vm1196_vm9  ;;  %vm1211_vm1 = vcmp.ge.s32.totalorder %v6464_v61, %v5217_v8  ;;  %vm1581_vm9 = vcmp.lt.s32.totalorder %v6464_v61, %v5232_v11 }
 0x2cc   : > { %vm1420_vm2 = vmand %vm1018_vm11, %vm1228_vm4  ;;  %vm1179_vm11 = vcmp.ge.s32.totalorder %v6464_v61, %v5149_v25 }
 0x2cd   : > { %vm1790_vm15 = vmand %vm1388_vm14, %vm1598_vm7 }
 0x2ce   : > { %vm1822_vm10 = vmand %vm1420_vm2, %vm1630_vm6  ;;  %vm1613_vm2 = vcmp.lt.s32.totalorder %v6464_v61, %v5168_v37 }
 0x2cf   : > { %vm4176_vm5 = vmpackc.low %vm1822_vm10, %vm1790_vm15  ;;  %vm793_vm15 = vcmp.lt.s32.totalorder %v6480_v23, %v5192_v50  ;;  %vm825_vm10 = vcmp.lt.s32.totalorder %v6480_v23, %v5203_v57 }
 0x2d0   : > { %4177 = vmatprep.mubr.msk.bf16.mxu0 %vm4176_vm5, %v4645_v32  ;;  %vm969_vm13 = vmand %vm567_vm8, %vm777_vm12  ;;  %vm583_vm5 = vcmp.ge.s32.totalorder %v6480_v23, %v5176_v47  ;;  %vm615_vm8 = vcmp.ge.s32.totalorder %v6480_v23, %v4993_v7 }
 0x2d1   : > { %vm1001_vm4 = vmand %vm599_vm0, %vm809_vm3 }
 0x2d2   : > { %vm1371_vm7 = vmand %vm969_vm13, %vm1179_vm11  ;;  %vm1227_vm13 = vcmp.ge.s32.totalorder %v6490_v14, %v5217_v8  ;;  %vm1597_vm11 = vcmp.lt.s32.totalorder %v6490_v14, %v5232_v11 }
 0x2d3   : > { %vm1403_vm14 = vmand %vm1001_vm4, %vm1211_vm1  ;;  %vm1195_vm4 = vcmp.ge.s32.totalorder %v6490_v14, %v5149_v25 }
 0x2d4   : > { %vm1773_vm6 = vmand %vm1371_vm7, %vm1581_vm9 }
 0x2d5   : > { %vm1805_vm12 = vmand %vm1403_vm14, %vm1613_vm2  ;;  %vm1629_vm14 = vcmp.lt.s32.totalorder %v6490_v14, %v5168_v37 }
 0x2d6   : > { %vm4082_vm3 = vmpackc.low %vm1805_vm12, %vm1773_vm6  ;;  %vm442_vm6 = vcmp.ge.s32.totalorder %v6648_v31, %v4947_v55 }
 0x2d7   : > { %4083 = vmatmul.mubr.msk.bf16.gmra.mrb[8].mxu1 %vm4082_vm3, %v4645_v32  ;;  %vm985_vm0 = vmand %vm583_vm5, %vm793_vm15  ;;  %vm652_vm15 = vcmp.lt.s32.totalorder %v6648_v31, %v4945_v54  ;;  %vm684_vm3 = vcmp.lt.s32.totalorder %v6648_v31, %v4951_v58 }
 0x2d8   : > { %vm1017_vm1 = vmand %vm615_vm8, %vm825_vm10  ;;  %vm474_vm10 = vcmp.ge.s32.totalorder %v6648_v31, %v4953_v59  ;;  %vm1054_vm8 = vcmp.ge.s32.totalorder %v6654_v36, %v5028_v13 }
 0x2d9   : > { %vm1387_vm9 = vmand %vm985_vm0, %vm1195_vm4 }
 0x2da   : > { %vm1419_vm7 = vmand %vm1017_vm1, %vm1227_vm13  ;;  %vm1086_vm13 = vcmp.ge.s32.totalorder %v6654_v36, %v4966_v1 }
 0x2db   : > { %vm1789_vm2 = vmand %vm1387_vm9, %vm1597_vm11  ;;  %vm1488_vm11 = vcmp.lt.s32.totalorder %v6654_v36, %v5070_v27 }
 0x2dc   : > { %vm1821_vm12 = vmand %vm1419_vm7, %vm1629_vm14  ;;  %vm1456_vm7 = vcmp.lt.s32.totalorder %v6654_v36, %v5003_v9 }
 0x2dd   : > { %vm4178_vm5 = vmpackc.low %vm1821_vm12, %vm1789_vm2  ;;  %vm458_vm2 = vcmp.ge.s32.totalorder %v6672_v42, %v4947_v55  ;;  %vm490_vm12 = vcmp.ge.s32.totalorder %v6672_v42, %v4953_v59 }
 0x2de   : > { %4179 = vmatmul.mubr.msk.bf16.gmra.mrb[8].mxu0 %vm4178_vm5, %v4645_v32  ;;  %vm844_vm0 = vmand %vm442_vm6, %vm652_vm15  ;;  %vm668_vm6 = vcmp.lt.s32.totalorder %v6672_v42, %v4945_v54  ;;  %vm1070_vm5 = vcmp.ge.s32.totalorder %v6678_v24, %v5028_v13 }
 0x2df   : > { %vm876_vm1 = vmand %vm474_vm10, %vm684_vm3  ;;  %vm700_vm10 = vcmp.lt.s32.totalorder %v6672_v42, %v4951_v58 }
 0x2e0   : > { %vm1246_vm4 = vmand %vm844_vm0, %vm1054_vm8  ;;  %vm1102_vm0 = vcmp.ge.s32.totalorder %v6678_v24, %v4966_v1 }
 0x2e1   : > { %vm1278_vm9 = vmand %vm876_vm1, %vm1086_vm13 }
 0x2e2   : > { %vm1648_vm14 = vmand %vm1246_vm4, %vm1456_vm7  ;;  %vm1504_vm4 = vcmp.lt.s32.totalorder %v6678_v24, %v5070_v27 }
 0x2e3   : > { %vm1680_vm15 = vmand %vm1278_vm9, %vm1488_vm11  ;;  %vm1472_vm9 = vcmp.lt.s32.totalorder %v6678_v24, %v5003_v9 }
 0x2e4   : > { %vm4084_vm3 = vmpackc.low %vm1680_vm15, %vm1648_vm14  ;;  %vm441_vm14 = vcmp.ge.s32.totalorder %v6694_v26, %v4947_v55  ;;  %vm473_vm15 = vcmp.ge.s32.totalorder %v6694_v26, %v4953_v59 }
 0x2e5   : > { %4085 = vmatprep.mubr.msk.bf16.mxu1 %vm4084_vm3, %v4645_v32  ;;  %vm860_vm8 = vmand %vm458_vm2, %vm668_vm6  ;;  %vm651_vm2 = vcmp.lt.s32.totalorder %v6694_v26, %v4945_v54  ;;  %vm1053_vm3 = vcmp.ge.s32.totalorder %v6700_v48, %v5028_v13 }
 0x2e6   : > { %vm892_vm13 = vmand %vm490_vm12, %vm700_vm10  ;;  %vm683_vm12 = vcmp.lt.s32.totalorder %v6694_v26, %v4951_v58 }
 0x2e7   : > { %vm1262_vm1 = vmand %vm860_vm8, %vm1070_vm5  ;;  %vm1085_vm8 = vcmp.ge.s32.totalorder %v6700_v48, %v4966_v1 }
 0x2e8   : > { %vm1294_vm11 = vmand %vm892_vm13, %vm1102_vm0 }
 0x2e9   : > { %vm1664_vm7 = vmand %vm1262_vm1, %vm1472_vm9  ;;  %vm1487_vm1 = vcmp.lt.s32.totalorder %v6700_v48, %v5070_v27 }
 0x2ea   : > { %vm1696_vm6 = vmand %vm1294_vm11, %vm1504_vm4  ;;  %vm1455_vm11 = vcmp.lt.s32.totalorder %v6700_v48, %v5003_v9 }
 0x2eb   : > { %vm4180_vm10 = vmpackc.low %vm1696_vm6, %vm1664_vm7  ;;  %vm457_vm7 = vcmp.ge.s32.totalorder %v6716_v46, %v4947_v55  ;;  %vm489_vm6 = vcmp.ge.s32.totalorder %v6716_v46, %v4953_v59 }
 0x2ec   : > { %4181 = vmatprep.mubr.msk.bf16.mxu0 %vm4180_vm10, %v4645_v32  ;;  %vm843_vm5 = vmand %vm441_vm14, %vm651_vm2  ;;  %vm667_vm14 = vcmp.lt.s32.totalorder %v6716_v46, %v4945_v54  ;;  %vm1069_vm10 = vcmp.ge.s32.totalorder %v6722_v40, %v5028_v13 }
 0x2ed   : > { %vm875_vm0 = vmand %vm473_vm15, %vm683_vm12  ;;  %vm699_vm15 = vcmp.lt.s32.totalorder %v6716_v46, %v4951_v58 }
 0x2ee   : > { %vm1245_vm13 = vmand %vm843_vm5, %vm1053_vm3  ;;  %vm1101_vm5 = vcmp.ge.s32.totalorder %v6722_v40, %v4966_v1 }
 0x2ef   : > { %vm1277_vm4 = vmand %vm875_vm0, %vm1085_vm8 }
 0x2f0   : > { %vm1647_vm9 = vmand %vm1245_vm13, %vm1455_vm11  ;;  %vm1503_vm13 = vcmp.lt.s32.totalorder %v6722_v40, %v5070_v27 }
 0x2f1   : > { %vm1679_vm2 = vmand %vm1277_vm4, %vm1487_vm1  ;;  %vm1471_vm4 = vcmp.lt.s32.totalorder %v6722_v40, %v5003_v9 }
 0x2f2   : > { %vm4086_vm12 = vmpackc.low %vm1679_vm2, %vm1647_vm9  ;;  %vm716_vm9 = vcmp.lt.s32.totalorder %v6648_v31, %v5078_v28 }
 0x2f3   : > { %4087 = vmatmul.mubr.msk.bf16.vlgmr.msra.gmra.mrb[0].mxu1 %vm4086_vm12, %v4645_v32  ;;  %vm859_vm3 = vmand %vm457_vm7, %vm667_vm14  ;;  %vm748_vm7 = vcmp.lt.s32.totalorder %v6648_v31, %v5111_v34  ;;  %vm538_vm12 = vcmp.ge.s32.totalorder %v6648_v31, %v4960_v63 }
 0x2f4   : > { %3070 = vmatpush1.bf16.xpose.msra.mxu1 %v6362_v16  ;;  %vm891_vm8 = vmand %vm489_vm6, %vm699_vm15  ;;  %vm506_vm6 = vcmp.ge.s32.totalorder %v6648_v31, %v5038_v17  ;;  %vm1118_vm15 = vcmp.ge.s32.totalorder %v6654_v36, %v5107_v33  ;;  %v6880_v16 = vand.u32 63, %v271_v49 }
 0x2f5   : > { %vm1261_vm0 = vmand %vm859_vm3, %vm1069_vm10  ;;  %vm1150_vm3 = vcmp.ge.s32.totalorder %v6654_v36, %v5142_v45 }
 0x2f6   : > { %vm1293_vm1 = vmand %vm891_vm8, %vm1101_vm5  ;;  %vm1520_vm8 = vcmp.lt.s32.totalorder %v6654_v36, %v5159_v43 }
 0x2f7   : > { %vm1663_vm11 = vmand %vm1261_vm0, %vm1471_vm4 }
 0x2f8   : > { %vm1695_vm2 = vmand %vm1293_vm1, %vm1503_vm13  ;;  %vm1552_vm13 = vcmp.lt.s32.totalorder %v6654_v36, %v5128_v38 }
 0x2f9   : > { %vm4182_vm14 = vmpackc.low %vm1695_vm2, %vm1663_vm11  ;;  %vm732_vm11 = vcmp.lt.s32.totalorder %v6672_v42, %v5078_v28 }
 0x2fa   : > { %4183 = vmatmul.mubr.msk.bf16.vlgmr.msra.gmra.mrb[0].mxu0 %vm4182_vm14, %v4645_v32  ;;  %vm908_vm10 = vmand %vm506_vm6, %vm716_vm9  ;;  %vm764_vm9 = vcmp.lt.s32.totalorder %v6672_v42, %v5111_v34  ;;  %vm1134_vm6 = vcmp.ge.s32.totalorder %v6678_v24, %v5107_v33 }
 0x2fb   : > { %3526 = vmatpush1.bf16.xpose.msra.mxu0 %v6392_v41  ;;  %vm940_vm5 = vmand %vm538_vm12, %vm748_vm7  ;;  %vm522_vm7 = vcmp.ge.s32.totalorder %v6672_v42, %v5038_v17  ;;  %v6920_v41 = vshra.s32 %v270_v19, 6 }
 0x2fc   : > { %vm1310_vm0 = vmand %vm908_vm10, %vm1118_vm15  ;;  %vm554_vm15 = vcmp.ge.s32.totalorder %v6672_v42, %v4960_v63  ;;  %vm1166_vm10 = vcmp.ge.s32.totalorder %v6678_v24, %v5142_v45 }
 0x2fd   : > { %vm1342_vm1 = vmand %vm940_vm5, %vm1150_vm3  ;;  %vm1536_vm5 = vcmp.lt.s32.totalorder %v6678_v24, %v5159_v43 }
 0x2fe   : > { %vm1712_vm4 = vmand %vm1310_vm0, %vm1520_vm8  ;;  %vm1568_vm0 = vcmp.lt.s32.totalorder %v6678_v24, %v5128_v38 }
 0x2ff   : > { %vm1744_vm2 = vmand %vm1342_vm1, %vm1552_vm13 }
 0x300   : > { %vm4088_vm14 = vmpackc.low %vm1744_vm2, %vm1712_vm4  ;;  %vm715_vm4 = vcmp.lt.s32.totalorder %v6694_v26, %v5078_v28 }
 0x301   : > { %4089 = vmatprep.mubr.msk.bf16.mxu1 %vm4088_vm14, %v4645_v32  ;;  %vm924_vm12 = vmand %vm522_vm7, %vm732_vm11  ;;  %vm747_vm11 = vcmp.lt.s32.totalorder %v6694_v26, %v5111_v34  ;;  %vm1117_vm7 = vcmp.ge.s32.totalorder %v6700_v48, %v5107_v33 }
 0x302   : > { %vm956_vm3 = vmand %vm554_vm15, %vm764_vm9  ;;  %vm505_vm9 = vcmp.ge.s32.totalorder %v6694_v26, %v5038_v17 }
 0x303   : > { %vm1326_vm8 = vmand %vm924_vm12, %vm1134_vm6  ;;  %vm537_vm6 = vcmp.ge.s32.totalorder %v6694_v26, %v4960_v63  ;;  %vm1149_vm12 = vcmp.ge.s32.totalorder %v6700_v48, %v5142_v45 }
 0x304   : > { %vm1358_vm13 = vmand %vm956_vm3, %vm1166_vm10  ;;  %vm1519_vm3 = vcmp.lt.s32.totalorder %v6700_v48, %v5159_v43 }
 0x305   : > { %vm1728_vm1 = vmand %vm1326_vm8, %vm1536_vm5  ;;  %vm1551_vm8 = vcmp.lt.s32.totalorder %v6700_v48, %v5128_v38 }
 0x306   : > { %vm1760_vm2 = vmand %vm1358_vm13, %vm1568_vm0 }
 0x307   : > { %vm4184_vm14 = vmpackc.low %vm1760_vm2, %vm1728_vm1  ;;  %vm731_vm1 = vcmp.lt.s32.totalorder %v6716_v46, %v5078_v28 }
 0x308   : > { %4185 = vmatprep.mubr.msk.bf16.mxu0 %vm4184_vm14, %v4645_v32  ;;  %vm907_vm15 = vmand %vm505_vm9, %vm715_vm4  ;;  %vm763_vm4 = vcmp.lt.s32.totalorder %v6716_v46, %v5111_v34  ;;  %vm1133_vm9 = vcmp.ge.s32.totalorder %v6722_v40, %v5107_v33 }
 0x309   : > { %vm939_vm10 = vmand %vm537_vm6, %vm747_vm11  ;;  %vm521_vm11 = vcmp.ge.s32.totalorder %v6716_v46, %v5038_v17 }
 0x30a   : > { %vm1309_vm5 = vmand %vm907_vm15, %vm1117_vm7  ;;  %vm553_vm7 = vcmp.ge.s32.totalorder %v6716_v46, %v4960_v63  ;;  %vm1165_vm15 = vcmp.ge.s32.totalorder %v6722_v40, %v5142_v45 }
 0x30b   : > { %vm1341_vm0 = vmand %vm939_vm10, %vm1149_vm12  ;;  %vm1535_vm10 = vcmp.lt.s32.totalorder %v6722_v40, %v5159_v43 }
 0x30c   : > { %vm1711_vm13 = vmand %vm1309_vm5, %vm1519_vm3  ;;  %vm1567_vm5 = vcmp.lt.s32.totalorder %v6722_v40, %v5128_v38 }
 0x30d   : > { %vm1743_vm2 = vmand %vm1341_vm0, %vm1551_vm8 }
 0x30e   : > { %vm4090_vm14 = vmpackc.low %vm1743_vm2, %vm1711_vm13  ;;  %vm780_vm13 = vcmp.lt.s32.totalorder %v6648_v31, %v5192_v50 }
 0x30f   : > { %4091 = vmatmul.mubr.msk.bf16.gmra.mrb[4].mxu1 %vm4090_vm14, %v4645_v32  ;;  %vm923_vm6 = vmand %vm521_vm11, %vm731_vm1  ;;  %vm812_vm1 = vcmp.lt.s32.totalorder %v6648_v31, %v5203_v57  ;;  %vm602_vm11 = vcmp.ge.s32.totalorder %v6648_v31, %v4993_v7 }
 0x310   : > { %vm955_vm12 = vmand %vm553_vm7, %vm763_vm4  ;;  %vm570_vm4 = vcmp.ge.s32.totalorder %v6648_v31, %v5176_v47  ;;  %vm1214_vm7 = vcmp.ge.s32.totalorder %v6654_v36, %v5217_v8 }
 0x311   : > { %vm1325_vm3 = vmand %vm923_vm6, %vm1133_vm9 }
 0x312   : > { %vm1357_vm8 = vmand %vm955_vm12, %vm1165_vm15  ;;  %vm1182_vm15 = vcmp.ge.s32.totalorder %v6654_v36, %v5149_v25  ;;  %vm1584_vm12 = vcmp.lt.s32.totalorder %v6654_v36, %v5232_v11 }
 0x313   : > { %vm1727_vm0 = vmand %vm1325_vm3, %vm1535_vm10 }
 0x314   : > { %vm1759_vm2 = vmand %vm1357_vm8, %vm1567_vm5  ;;  %vm1616_vm5 = vcmp.lt.s32.totalorder %v6654_v36, %v5168_v37 }
 0x315   : > { %vm4186_vm14 = vmpackc.low %vm1759_vm2, %vm1727_vm0  ;;  %vm796_vm0 = vcmp.lt.s32.totalorder %v6672_v42, %v5192_v50  ;;  %vm828_vm2 = vcmp.lt.s32.totalorder %v6672_v42, %v5203_v57 }
 0x316   : > { %4187 = vmatmul.mubr.msk.bf16.gmra.mrb[4].mxu0 %vm4186_vm14, %v4645_v32  ;;  %vm972_vm9 = vmand %vm570_vm4, %vm780_vm13  ;;  %vm586_vm14 = vcmp.ge.s32.totalorder %v6672_v42, %v5176_v47  ;;  %vm618_vm4 = vcmp.ge.s32.totalorder %v6672_v42, %v4993_v7 }
 0x317   : > { %vm1004_vm6 = vmand %vm602_vm11, %vm812_vm1 }
 0x318   : > { %vm1374_vm10 = vmand %vm972_vm9, %vm1182_vm15  ;;  %vm1230_vm9 = vcmp.ge.s32.totalorder %v6678_v24, %v5217_v8  ;;  %vm1600_vm15 = vcmp.lt.s32.totalorder %v6678_v24, %v5232_v11 }
 0x319   : > { %vm1406_vm3 = vmand %vm1004_vm6, %vm1214_vm7  ;;  %vm1198_vm6 = vcmp.ge.s32.totalorder %v6678_v24, %v5149_v25 }
 0x31a   : > { %vm1776_vm8 = vmand %vm1374_vm10, %vm1584_vm12 }
 0x31b   : > { %vm1808_vm13 = vmand %vm1406_vm3, %vm1616_vm5  ;;  %vm1632_vm3 = vcmp.lt.s32.totalorder %v6678_v24, %v5168_v37 }
 0x31c   : > { %vm4092_vm1 = vmpackc.low %vm1808_vm13, %vm1776_vm8  ;;  %vm779_vm8 = vcmp.lt.s32.totalorder %v6694_v26, %v5192_v50  ;;  %vm811_vm13 = vcmp.lt.s32.totalorder %v6694_v26, %v5203_v57 }
 0x31d   : > { %4093 = vmatprep.mubr.msk.bf16.mxu1 %vm4092_vm1, %v4645_v32  ;;  %vm988_vm11 = vmand %vm586_vm14, %vm796_vm0  ;;  %vm569_vm1 = vcmp.ge.s32.totalorder %v6694_v26, %v5176_v47  ;;  %vm601_vm14 = vcmp.ge.s32.totalorder %v6694_v26, %v4993_v7 }
 0x31e   : > { %vm1020_vm7 = vmand %vm618_vm4, %vm828_vm2 }
 0x31f   : > { %vm1390_vm12 = vmand %vm988_vm11, %vm1198_vm6  ;;  %vm1213_vm11 = vcmp.ge.s32.totalorder %v6700_v48, %v5217_v8  ;;  %vm1583_vm6 = vcmp.lt.s32.totalorder %v6700_v48, %v5232_v11 }
 0x320   : > { %vm1422_vm10 = vmand %vm1020_vm7, %vm1230_vm9  ;;  %vm1181_vm7 = vcmp.ge.s32.totalorder %v6700_v48, %v5149_v25 }
 0x321   : > { %vm1792_vm5 = vmand %vm1390_vm12, %vm1600_vm15 }
 0x322   : > { %vm1824_vm0 = vmand %vm1422_vm10, %vm1632_vm3  ;;  %vm1615_vm10 = vcmp.lt.s32.totalorder %v6700_v48, %v5168_v37 }
 0x323   : > { %vm4188_vm2 = vmpackc.low %vm1824_vm0, %vm1792_vm5  ;;  %vm795_vm5 = vcmp.lt.s32.totalorder %v6716_v46, %v5192_v50  ;;  %vm827_vm0 = vcmp.lt.s32.totalorder %v6716_v46, %v5203_v57 }
 0x324   : > { %4189 = vmatprep.mubr.msk.bf16.mxu0 %vm4188_vm2, %v4645_v32  ;;  %vm971_vm4 = vmand %vm569_vm1, %vm779_vm8  ;;  %vm585_vm2 = vcmp.ge.s32.totalorder %v6716_v46, %v5176_v47  ;;  %vm617_vm1 = vcmp.ge.s32.totalorder %v6716_v46, %v4993_v7 }
 0x325   : > { %vm1003_vm9 = vmand %vm601_vm14, %vm811_vm13 }
 0x326   : > { %vm1373_vm15 = vmand %vm971_vm4, %vm1181_vm7  ;;  %vm1229_vm4 = vcmp.ge.s32.totalorder %v6722_v40, %v5217_v8  ;;  %vm1599_vm7 = vcmp.lt.s32.totalorder %v6722_v40, %v5232_v11 }
 0x327   : > { %vm1405_vm12 = vmand %vm1003_vm9, %vm1213_vm11  ;;  %vm1197_vm9 = vcmp.ge.s32.totalorder %v6722_v40, %v5149_v25 }
 0x328   : > { %vm1775_vm3 = vmand %vm1373_vm15, %vm1583_vm6 }
 0x329   : > { %vm1807_vm8 = vmand %vm1405_vm12, %vm1615_vm10  ;;  %vm1631_vm12 = vcmp.lt.s32.totalorder %v6722_v40, %v5168_v37 }
 0x32a   : > { %vm4094_vm13 = vmpackc.low %vm1807_vm8, %vm1775_vm3  ;;  %vm444_vm3 = vcmp.ge.s32.totalorder %v6874_v52, %v4947_v55 }
 0x32b   : > { %4095 = vmatmul.mubr.msk.bf16.gmra.mrb[8].mxu1 %vm4094_vm13, %v4645_v32  ;;  %vm987_vm14 = vmand %vm585_vm2, %vm795_vm5  ;;  %vm654_vm5 = vcmp.lt.s32.totalorder %v6874_v52, %v4945_v54  ;;  %vm686_vm13 = vcmp.lt.s32.totalorder %v6874_v52, %v4951_v58 }
 0x32c   : > { %vm1019_vm11 = vmand %vm617_vm1, %vm827_vm0  ;;  %vm476_vm0 = vcmp.ge.s32.totalorder %v6874_v52, %v4953_v59  ;;  %vm1056_vm1 = vcmp.ge.s32.totalorder %v6880_v16, %v5028_v13 }
 0x32d   : > { %vm1389_vm6 = vmand %vm987_vm14, %vm1197_vm9 }
 0x32e   : > { %vm1421_vm15 = vmand %vm1019_vm11, %vm1229_vm4  ;;  %vm1088_vm4 = vcmp.ge.s32.totalorder %v6880_v16, %v4966_v1 }
 0x32f   : > { %vm1791_vm10 = vmand %vm1389_vm6, %vm1599_vm7  ;;  %vm1490_vm7 = vcmp.lt.s32.totalorder %v6880_v16, %v5070_v27 }
 0x330   : > { %vm1823_vm8 = vmand %vm1421_vm15, %vm1631_vm12  ;;  %vm1458_vm15 = vcmp.lt.s32.totalorder %v6880_v16, %v5003_v9 }
 0x331   : > { %vm4190_vm2 = vmpackc.low %vm1823_vm8, %vm1791_vm10  ;;  %vm460_vm10 = vcmp.ge.s32.totalorder %v6898_v3, %v4947_v55  ;;  %vm492_vm8 = vcmp.ge.s32.totalorder %v6898_v3, %v4953_v59 }
 0x332   : > { %4191 = vmatmul.mubr.msk.bf16.gmra.mrb[8].mxu0 %vm4190_vm2, %v4645_v32  ;;  %vm846_vm14 = vmand %vm444_vm3, %vm654_vm5  ;;  %vm670_vm3 = vcmp.lt.s32.totalorder %v6898_v3, %v4945_v54  ;;  %vm1072_vm2 = vcmp.ge.s32.totalorder %v6904_v56, %v5028_v13 }
 0x333   : > { %vm878_vm11 = vmand %vm476_vm0, %vm686_vm13  ;;  %vm702_vm0 = vcmp.lt.s32.totalorder %v6898_v3, %v4951_v58 }
 0x334   : > { %vm1248_vm9 = vmand %vm846_vm14, %vm1056_vm1  ;;  %vm1104_vm14 = vcmp.ge.s32.totalorder %v6904_v56, %v4966_v1 }
 0x335   : > { %vm1280_vm6 = vmand %vm878_vm11, %vm1088_vm4 }
 0x336   : > { %vm1650_vm12 = vmand %vm1248_vm9, %vm1458_vm15  ;;  %vm1506_vm9 = vcmp.lt.s32.totalorder %v6904_v56, %v5070_v27 }
 0x337   : > { %vm1682_vm5 = vmand %vm1280_vm6, %vm1490_vm7  ;;  %vm1474_vm6 = vcmp.lt.s32.totalorder %v6904_v56, %v5003_v9 }
 0x338   : > { %vm4096_vm13 = vmpackc.low %vm1682_vm5, %vm1650_vm12  ;;  %vm443_vm12 = vcmp.ge.s32.totalorder %v6920_v41, %v4947_v55  ;;  %vm475_vm5 = vcmp.ge.s32.totalorder %v6920_v41, %v4953_v59 }
 0x339   : > { %4097 = vmatprep.mubr.msk.bf16.mxu1 %vm4096_vm13, %v4645_v32  ;;  %vm862_vm1 = vmand %vm460_vm10, %vm670_vm3  ;;  %vm653_vm10 = vcmp.lt.s32.totalorder %v6920_v41, %v4945_v54  ;;  %vm1055_vm13 = vcmp.ge.s32.totalorder %v6926_v44, %v5028_v13 }
 0x33a   : > { %vm894_vm4 = vmand %vm492_vm8, %vm702_vm0  ;;  %vm685_vm8 = vcmp.lt.s32.totalorder %v6920_v41, %v4951_v58 }
 0x33b   : > { %vm1264_vm11 = vmand %vm862_vm1, %vm1072_vm2  ;;  %vm1087_vm1 = vcmp.ge.s32.totalorder %v6926_v44, %v4966_v1 }
 0x33c   : > { %vm1296_vm7 = vmand %vm894_vm4, %vm1104_vm14 }
 0x33d   : > { %vm1666_vm15 = vmand %vm1264_vm11, %vm1474_vm6  ;;  %vm1489_vm11 = vcmp.lt.s32.totalorder %v6926_v44, %v5070_v27 }
 0x33e   : > { %vm1698_vm3 = vmand %vm1296_vm7, %vm1506_vm9  ;;  %vm1457_vm7 = vcmp.lt.s32.totalorder %v6926_v44, %v5003_v9 }
 0x33f   : > { %vm4192_vm0 = vmpackc.low %vm1698_vm3, %vm1666_vm15  ;;  %vm459_vm15 = vcmp.ge.s32.totalorder %v6942_v53, %v4947_v55  ;;  %vm491_vm3 = vcmp.ge.s32.totalorder %v6942_v53, %v4953_v59  ;;  %v3603_v55 = vpop.permute.xlu0 %3602 }
 0x340   : > { %4193 = vmatprep.mubr.msk.bf16.mxu0 %vm4192_vm0, %v4645_v32  ;;  %vm845_vm2 = vmand %vm443_vm12, %vm653_vm10  ;;  %vm669_vm12 = vcmp.lt.s32.totalorder %v6942_v53, %v4945_v54  ;;  %vm1071_vm0 = vcmp.ge.s32.totalorder %v6948_v62, %v5028_v13  ;;  %v3595_v54 = vpop.permute.xlu1 %3594 }
 0x341   : > { %vm877_vm14 = vmand %vm475_vm5, %vm685_vm8  ;;  %vm701_vm5 = vcmp.lt.s32.totalorder %v6942_v53, %v4951_v58 }
 0x342   : > { %vm1247_vm4 = vmand %vm845_vm2, %vm1055_vm13  ;;  %vm1103_vm2 = vcmp.ge.s32.totalorder %v6948_v62, %v4966_v1 }
 0x343   : > { %vm1279_vm9 = vmand %vm877_vm14, %vm1087_vm1 }
 0x344   : > { %vm1649_vm6 = vmand %vm1247_vm4, %vm1457_vm7  ;;  %vm1505_vm4 = vcmp.lt.s32.totalorder %v6948_v62, %v5070_v27  ;;  %v3608_v1 = vpop.permute.xlu1 %3607 }
 0x345   : > { %vm1681_vm10 = vmand %vm1279_vm9, %vm1489_vm11  ;;  %vm1473_vm9 = vcmp.lt.s32.totalorder %v6948_v62, %v5003_v9  ;;  %v3613_v9 = vpop.permute.xlu0 %3612 }
 0x346   : > { %vm4098_vm8 = vmpackc.low %vm1681_vm10, %vm1649_vm6  ;;  %vm718_vm6 = vcmp.lt.s32.totalorder %v6874_v52, %v5078_v28 }
 0x347   : > { %4099 = vmatmul.mubr.msk.bf16.vlgmr.msra.gmra.mrb[0].mxu1 %vm4098_vm8, %v4645_v32  ;;  %vm861_vm13 = vmand %vm459_vm15, %vm669_vm12  ;;  %vm750_vm15 = vcmp.lt.s32.totalorder %v6874_v52, %v5111_v34  ;;  %vm540_vm8 = vcmp.ge.s32.totalorder %v6874_v52, %v4960_v63 }
 0x348   : > { %vm893_vm1 = vmand %vm491_vm3, %vm701_vm5  ;;  %vm508_vm3 = vcmp.ge.s32.totalorder %v6874_v52, %v5038_v17  ;;  %vm1120_vm5 = vcmp.ge.s32.totalorder %v6880_v16, %v5107_v33 }
 0x349   : > { %vm1263_vm14 = vmand %vm861_vm13, %vm1071_vm0  ;;  %vm1152_vm13 = vcmp.ge.s32.totalorder %v6880_v16, %v5142_v45 }
 0x34a   : > { %vm1295_vm11 = vmand %vm893_vm1, %vm1103_vm2  ;;  %vm1522_vm1 = vcmp.lt.s32.totalorder %v6880_v16, %v5159_v43 }
 0x34b   : > { %vm1665_vm7 = vmand %vm1263_vm14, %vm1473_vm9 }
 0x34c   : > { %vm1697_vm10 = vmand %vm1295_vm11, %vm1505_vm4  ;;  %vm1554_vm4 = vcmp.lt.s32.totalorder %v6880_v16, %v5128_v38 }
 0x34d   : > { %vm4194_vm12 = vmpackc.low %vm1697_vm10, %vm1665_vm7  ;;  %vm734_vm7 = vcmp.lt.s32.totalorder %v6898_v3, %v5078_v28 }
 0x34e   : > { %4195 = vmatmul.mubr.msk.bf16.vlgmr.msra.gmra.mrb[0].mxu0 %vm4194_vm12, %v4645_v32  ;;  %vm910_vm0 = vmand %vm508_vm3, %vm718_vm6  ;;  %vm766_vm6 = vcmp.lt.s32.totalorder %v6898_v3, %v5111_v34  ;;  %vm1136_vm3 = vcmp.ge.s32.totalorder %v6904_v56, %v5107_v33 }
 0x34f   : > { %vm942_vm2 = vmand %vm540_vm8, %vm750_vm15  ;;  %vm524_vm15 = vcmp.ge.s32.totalorder %v6898_v3, %v5038_v17 }
 0x350   : > { %vm1312_vm14 = vmand %vm910_vm0, %vm1120_vm5  ;;  %vm556_vm5 = vcmp.ge.s32.totalorder %v6898_v3, %v4960_v63  ;;  %vm1168_vm0 = vcmp.ge.s32.totalorder %v6904_v56, %v5142_v45 }
 0x351   : > { %vm1344_vm11 = vmand %vm942_vm2, %vm1152_vm13  ;;  %vm1538_vm2 = vcmp.lt.s32.totalorder %v6904_v56, %v5159_v43 }
 0x352   : > { %vm1714_vm9 = vmand %vm1312_vm14, %vm1522_vm1  ;;  %vm1570_vm14 = vcmp.lt.s32.totalorder %v6904_v56, %v5128_v38 }
 0x353   : > { %vm1746_vm10 = vmand %vm1344_vm11, %vm1554_vm4 }
 0x354   : > { %vm4100_vm12 = vmpackc.low %vm1746_vm10, %vm1714_vm9  ;;  %vm717_vm9 = vcmp.lt.s32.totalorder %v6920_v41, %v5078_v28 }
 0x355   : > { %4101 = vmatprep.mubr.msk.bf16.mxu1 %vm4100_vm12, %v4645_v32  ;;  %vm926_vm8 = vmand %vm524_vm15, %vm734_vm7  ;;  %vm749_vm7 = vcmp.lt.s32.totalorder %v6920_v41, %v5111_v34  ;;  %vm1119_vm15 = vcmp.ge.s32.totalorder %v6926_v44, %v5107_v33 }
 0x356   : > { %vm958_vm13 = vmand %vm556_vm5, %vm766_vm6  ;;  %vm507_vm6 = vcmp.ge.s32.totalorder %v6920_v41, %v5038_v17 }
 0x357   : > { %vm1328_vm1 = vmand %vm926_vm8, %vm1136_vm3  ;;  %vm539_vm3 = vcmp.ge.s32.totalorder %v6920_v41, %v4960_v63  ;;  %vm1151_vm8 = vcmp.ge.s32.totalorder %v6926_v44, %v5142_v45 }
 0x358   : > { %vm1360_vm4 = vmand %vm958_vm13, %vm1168_vm0  ;;  %vm1521_vm13 = vcmp.lt.s32.totalorder %v6926_v44, %v5159_v43 }
 0x359   : > { %vm1730_vm11 = vmand %vm1328_vm1, %vm1538_vm2  ;;  %vm1553_vm1 = vcmp.lt.s32.totalorder %v6926_v44, %v5128_v38 }
 0x35a   : > { %vm1762_vm10 = vmand %vm1360_vm4, %vm1570_vm14 }
 0x35b   : > { %vm4196_vm12 = vmpackc.low %vm1762_vm10, %vm1730_vm11  ;;  %vm733_vm11 = vcmp.lt.s32.totalorder %v6942_v53, %v5078_v28  ;;  %v3585_v28 = vpop.permute.xlu1 %3584 }
 0x35c   : > { %4197 = vmatprep.mubr.msk.bf16.mxu0 %vm4196_vm12, %v4645_v32  ;;  %vm909_vm5 = vmand %vm507_vm6, %vm717_vm9  ;;  %vm765_vm9 = vcmp.lt.s32.totalorder %v6942_v53, %v5111_v34  ;;  %vm1135_vm6 = vcmp.ge.s32.totalorder %v6948_v62, %v5107_v33 }
 0x35d   : > { %vm941_vm0 = vmand %vm539_vm3, %vm749_vm7  ;;  %vm523_vm7 = vcmp.ge.s32.totalorder %v6942_v53, %v5038_v17 }
 0x35e   : > { %vm1311_vm2 = vmand %vm909_vm5, %vm1119_vm15  ;;  %vm555_vm15 = vcmp.ge.s32.totalorder %v6942_v53, %v4960_v63  ;;  %vm1167_vm5 = vcmp.ge.s32.totalorder %v6948_v62, %v5142_v45  ;;  %v3590_v45 = vpop.permute.xlu0 %3589 }
 0x35f   : > { %vm1343_vm14 = vmand %vm941_vm0, %vm1151_vm8  ;;  %vm1537_vm0 = vcmp.lt.s32.totalorder %v6948_v62, %v5159_v43 }
 0x360   : > { %vm1713_vm4 = vmand %vm1311_vm2, %vm1521_vm13  ;;  %vm1569_vm2 = vcmp.lt.s32.totalorder %v6948_v62, %v5128_v38 }
 0x361   : > { %vm1745_vm10 = vmand %vm1343_vm14, %vm1553_vm1 }
 0x362   : > { %vm4102_vm12 = vmpackc.low %vm1745_vm10, %vm1713_vm4  ;;  %vm782_vm4 = vcmp.lt.s32.totalorder %v6874_v52, %v5192_v50 }
 0x363   : > { %4103 = vmatmul.mubr.msk.bf16.gmra.mrb[4].mxu1 %vm4102_vm12, %v4645_v32  ;;  %vm925_vm3 = vmand %vm523_vm7, %vm733_vm11  ;;  %vm814_vm11 = vcmp.lt.s32.totalorder %v6874_v52, %v5203_v57  ;;  %vm604_vm7 = vcmp.ge.s32.totalorder %v6874_v52, %v4993_v7 }
 0x364   : > { %vm957_vm8 = vmand %vm555_vm15, %vm765_vm9  ;;  %vm572_vm9 = vcmp.ge.s32.totalorder %v6874_v52, %v5176_v47  ;;  %vm1216_vm15 = vcmp.ge.s32.totalorder %v6880_v16, %v5217_v8 }
 0x365   : > { %vm1327_vm13 = vmand %vm925_vm3, %vm1135_vm6 }
 0x366   : > { %vm1359_vm1 = vmand %vm957_vm8, %vm1167_vm5  ;;  %vm1184_vm5 = vcmp.ge.s32.totalorder %v6880_v16, %v5149_v25  ;;  %vm1586_vm8 = vcmp.lt.s32.totalorder %v6880_v16, %v5232_v11 }
 0x367   : > { %vm1729_vm14 = vmand %vm1327_vm13, %vm1537_vm0 }
 0x368   : > { %vm1761_vm10 = vmand %vm1359_vm1, %vm1569_vm2  ;;  %vm1618_vm2 = vcmp.lt.s32.totalorder %v6880_v16, %v5168_v37 }
 0x369   : > { %vm4198_vm12 = vmpackc.low %vm1761_vm10, %vm1729_vm14  ;;  %vm798_vm14 = vcmp.lt.s32.totalorder %v6898_v3, %v5192_v50  ;;  %vm830_vm10 = vcmp.lt.s32.totalorder %v6898_v3, %v5203_v57 }
 0x36a   : > { %4199 = vmatmul.mubr.msk.bf16.gmra.mrb[4].mxu0 %vm4198_vm12, %v4645_v32  ;;  %vm974_vm6 = vmand %vm572_vm9, %vm782_vm4  ;;  %vm588_vm12 = vcmp.ge.s32.totalorder %v6898_v3, %v5176_v47  ;;  %vm620_vm9 = vcmp.ge.s32.totalorder %v6898_v3, %v4993_v7 }
 0x36b   : > { %vm1006_vm3 = vmand %vm604_vm7, %vm814_vm11 }
 0x36c   : > { %vm1376_vm0 = vmand %vm974_vm6, %vm1184_vm5  ;;  %vm1232_vm6 = vcmp.ge.s32.totalorder %v6904_v56, %v5217_v8  ;;  %vm1602_vm5 = vcmp.lt.s32.totalorder %v6904_v56, %v5232_v11 }
 0x36d   : > { %vm1408_vm13 = vmand %vm1006_vm3, %vm1216_vm15  ;;  %vm1200_vm3 = vcmp.ge.s32.totalorder %v6904_v56, %v5149_v25 }
 0x36e   : > { %vm1778_vm1 = vmand %vm1376_vm0, %vm1586_vm8 }
 0x36f   : > { %vm1810_vm4 = vmand %vm1408_vm13, %vm1618_vm2  ;;  %vm1634_vm13 = vcmp.lt.s32.totalorder %v6904_v56, %v5168_v37 }
 0x370   : > { %vm4104_vm11 = vmpackc.low %vm1810_vm4, %vm1778_vm1  ;;  %vm781_vm1 = vcmp.lt.s32.totalorder %v6920_v41, %v5192_v50  ;;  %vm813_vm4 = vcmp.lt.s32.totalorder %v6920_v41, %v5203_v57 }
 0x371   : > { %4105 = vmatprep.mubr.msk.bf16.mxu1 %vm4104_vm11, %v4645_v32  ;;  %vm990_vm7 = vmand %vm588_vm12, %vm798_vm14  ;;  %vm571_vm11 = vcmp.ge.s32.totalorder %v6920_v41, %v5176_v47  ;;  %vm603_vm12 = vcmp.ge.s32.totalorder %v6920_v41, %v4993_v7 }
 0x372   : > { %vm1022_vm15 = vmand %vm620_vm9, %vm830_vm10 }
 0x373   : > { %vm1392_vm8 = vmand %vm990_vm7, %vm1200_vm3  ;;  %vm1215_vm7 = vcmp.ge.s32.totalorder %v6926_v44, %v5217_v8  ;;  %vm1585_vm3 = vcmp.lt.s32.totalorder %v6926_v44, %v5232_v11 }
 0x374   : > { %vm1424_vm0 = vmand %vm1022_vm15, %vm1232_vm6  ;;  %vm1183_vm15 = vcmp.ge.s32.totalorder %v6926_v44, %v5149_v25 }
 0x375   : > { %vm1794_vm2 = vmand %vm1392_vm8, %vm1602_vm5 }
 0x376   : > { %vm1826_vm14 = vmand %vm1424_vm0, %vm1634_vm13  ;;  %vm1617_vm0 = vcmp.lt.s32.totalorder %v6926_v44, %v5168_v37 }
 0x377   : > { %vm4200_vm10 = vmpackc.low %vm1826_vm14, %vm1794_vm2  ;;  %vm797_vm2 = vcmp.lt.s32.totalorder %v6942_v53, %v5192_v50  ;;  %vm829_vm14 = vcmp.lt.s32.totalorder %v6942_v53, %v5203_v57 }
 0x378   : > { %4201 = vmatprep.mubr.msk.bf16.mxu0 %vm4200_vm10, %v4645_v32  ;;  %vm973_vm9 = vmand %vm571_vm11, %vm781_vm1  ;;  %vm587_vm10 = vcmp.ge.s32.totalorder %v6942_v53, %v5176_v47  ;;  %vm619_vm11 = vcmp.ge.s32.totalorder %v6942_v53, %v4993_v7 }
 0x379   : > { %vm1005_vm6 = vmand %vm603_vm12, %vm813_vm4 }
 0x37a   : > { %vm1375_vm5 = vmand %vm973_vm9, %vm1183_vm15  ;;  %vm1231_vm9 = vcmp.ge.s32.totalorder %v6948_v62, %v5217_v8  ;;  %vm1601_vm15 = vcmp.lt.s32.totalorder %v6948_v62, %v5232_v11 }
 0x37b   : > { %vm1407_vm8 = vmand %vm1005_vm6, %vm1215_vm7  ;;  %vm1199_vm6 = vcmp.ge.s32.totalorder %v6948_v62, %v5149_v25 }
 0x37c   : > { %vm1777_vm13 = vmand %vm1375_vm5, %vm1585_vm3 }
 0x37d   : > { %vm1809_vm1 = vmand %vm1407_vm8, %vm1617_vm0  ;;  %vm1633_vm8 = vcmp.lt.s32.totalorder %v6948_v62, %v5168_v37 }
 0x37e   : > { %vm4106_vm4 = vmpackc.low %vm1809_vm1, %vm1777_vm13 }
 0x37f   : > { %4107 = vmatmul.mubr.msk.bf16.gmra.mrb[8].mxu1 %vm4106_vm4, %v4645_v32  ;;  %vm989_vm12 = vmand %vm587_vm10, %vm797_vm2  ;;  %vm3635_vm2 = vcmask 64512   ;;  %vm3641_vm4 = vcmask 58368  }
 0x380   : > { %vm1021_vm7 = vmand %vm619_vm11, %vm829_vm14  ;;  %vm7210_vm14 = vcmask 1044480  }
 0x381   : > { %vm1391_vm3 = vmand %vm989_vm12, %vm1199_vm6 }
 0x382   : > { %vm1423_vm5 = vmand %vm1021_vm7, %vm1231_vm9 }
 0x383   : > { %vm1793_vm0 = vmand %vm1391_vm3, %vm1601_vm15 }
 0x384   : > { %vm1825_vm13 = vmand %vm1423_vm5, %vm1633_vm8 }
 0x385   : > { %vm4202_vm1 = vmpackc.low %vm1825_vm13, %vm1793_vm0 }
 0x386   : > { %4203 = vmatmul.mubr.msk.bf16.gmra.mrb[8].mxu0 %vm4202_vm1, %v4645_v32 }
 0x41a   : > { %v3103_v58 = vpop.f32.mrb[0].mxu1 }
 0x41b   : > { %v3105_v59 = vpop.f32.mrb[1].mxu1 }
 0x41c   : > { %v3106_v63 = vpop.f32.mrb[2].mxu1 }
 0x41d   : > { %v3108_v7 = vpop.f32.mrb[3].mxu1 }
 0x421   : > { %v3559_v13 = vpop.f32.mrb[0].mxu0 }
 0x422   : > { %v4208_v17 = vadd.f32 %v3559_v13, %v3103_v58  ;;  %v3561_v27 = vpop.f32.mrb[1].mxu0 }
 0x423   : > { %v3562_v33 = vpop.f32.mrb[2].mxu0 }
 0x424   : > { %v3597_v32 = vmul.f32 %v4208_v17, %v3585_v28  ;;  %v4209_v34 = vadd.f32 %v3562_v33, %v3106_v63  ;;  %v3564_v38 = vpop.f32.mrb[3].mxu0 }
 0x426   : > { %v3598_v25 = vmul.f32 %v4209_v34, %v3590_v45  ;;  %3636 = vst.msk [vmem:[%s7109_s25] sm:$0xff] %vm3635_vm2, %v3597_v32 }
 0x428   : > { %3637 = vst.msk [vmem:[%s7109_s25 + $0x8] sm:$0xff] %vm3635_vm2, %v3598_v25 }
 0x436   : > { %v3111_v43 = vpop.f32.mrb[4].mxu1 }
 0x437   : > { %v3113_v37 = vpop.f32.mrb[5].mxu1 }
 0x438   : > { %v3114_v47 = vpop.f32.mrb[6].mxu1 }
 0x439   : > { %v3116_v50 = vpop.f32.mrb[7].mxu1 }
 0x43d   : > { %v3567_v57 = vpop.f32.mrb[4].mxu0 }
 0x43e   : > { %v4210_v8 = vadd.f32 %v3567_v57, %v3111_v43  ;;  %v3569_v11 = vpop.f32.mrb[5].mxu0 }
 0x43f   : > { %v3570_v6 = vpop.f32.mrb[6].mxu0 }
 0x440   : > { %v3599_v21 = vmul.f32 %v4210_v8, %v3595_v54  ;;  %v4211_v12 = vadd.f32 %v3570_v6, %v3114_v47  ;;  %v3572_v15 = vpop.f32.mrb[7].mxu0 }
 0x442   : > { %v3615_v20 = vmul.f32 %v4211_v12, %v3603_v55  ;;  %3622 = vrot.lane.b32.xlu1 %v3599_v21, %s4646_s19 }
 0x444   : > { %3624 = vrot.lane.b32.xlu0 %v3615_v20, %s4646_s19 }
 0x452   : > { %v3119_v61 = vpop.f32.mrb[8].mxu1 }
 0x453   : > { %v3121_v0 = vpop.f32.mrb[9].mxu1 }
 0x454   : > { %v3122_v23 = vpop.f32.mrb[10].mxu1 }
 0x455   : > { %v3124_v29 = vpop.f32.mrb[11].mxu1 }
 0x459   : > { %v3575_v22 = vpop.f32.mrb[8].mxu0 }
 0x45a   : > { %v4212_v14 = vadd.f32 %v3575_v22, %v3119_v61  ;;  %v3577_v18 = vpop.f32.mrb[9].mxu0 }
 0x45b   : > { %v3578_v60 = vpop.f32.mrb[10].mxu0 }
 0x45c   : > { %v3616_v51 = vmul.f32 %v4212_v14, %v3608_v1  ;;  %v4213_v4 = vadd.f32 %v3578_v60, %v3122_v23  ;;  %v3580_v35 = vpop.f32.mrb[11].mxu0 }
 0x45e   : > { %v3617_v31 = vmul.f32 %v4213_v4, %v3613_v9  ;;  %3626 = vrot.lane.b32.xlu1 %v3616_v51, %s4646_s19 }
 0x460   : > { %3628 = vrot.lane.b32.xlu0 %v3617_v31, %s4646_s19 }
 0x4b4   : > { %v3623_v36 = vpop.permute.xlu1 %3622 }
 0x4b5   : > { %v3634_v39 = vsel %vm7210_vm14, %v3599_v21, %v3623_v36 }
 0x4b6   : > { %3638 = vst.msk [vmem:[%s7109_s25 + $0x10] sm:$0xff] %vm3635_vm2, %v3634_v39  ;;  %v3625_v42 = vpop.permute.xlu0 %3624 }
 0x4b7   : > { %3639 = vst.msk [vmem:[%s7109_s25 + $0x18] sm:$0xff] %vm3635_vm2, %v3625_v42 }
 0x4d0   : > { %v3627_v24 = vpop.permute.xlu1 %3626 }
 0x4d1   : > { %3640 = vst.msk [vmem:[%s7109_s25 + $0x20] sm:$0xff] %vm3635_vm2, %v3627_v24 }
 0x4d2   : > { %v3629_v2 = vpop.permute.xlu0 %3628 }
 0x4d3   : > { %3642 = vst.msk [vmem:[%s7109_s25 + $0x28] sm:$0x3] %vm3641_vm4, %v3629_v2 }
 0x4d4 PF: > { %p17_p8 = scmp.ge.s32.totalorder %s4694_s20, 4   ;;  %s7211_s15 = smov %s4630_s16 }
 0x4d5   : > { %s7212_s16 = smov %s4634_s17  ;;  %s7213_s17 = smov %s4704_s23 }
 0x4d6   : > { %s7214_s18 = smov %s4694_s20  ;;  %19 = sbr.rel (!%p17_p8) target bundleno = 5 (0x5), region = 91 }
 0x4dd   :  { %3664 = vsyncpa [#allocation3], 1 }
 0x4de   :  { %3666 = vsyncpa [#allocation3 + $0x1], 1 }
 0x4df   :  { %3667 = vsyncpa [#allocation5], 1 }
 0x4e0   :  { %3669 = vsyncpa [#allocation5 + $0x1], 1 }

</bundles_post_ra>
